<compile_context>
chip_gen: v7x
topology: tpu7x:2x2x1
jax: 0.10.0
libtpu: 0.0.40
codegen_flags: <defaults>
</compile_context>

<pallas_src>
import jax
import jax.numpy as jnp
from jax.experimental import pallas as pl
from jax.experimental.pallas import tpu as pltpu

# MXU / activation-boundary dtype. bf16 recommended for v5e/v6e/v7x (full-rate
# MXU, half the activation HBM bytes); set to jnp.float32 for reference numerics.
MXU_DTYPE = jnp.bfloat16


def _lane_chunk(p_pad, min_chunk=512, cap=8192):
    """Lane-dim chunk: multiple of 128, divides p_pad, ~p_pad//4 (>=2 grid steps
    per v7x TensorCore where possible), floored at min_chunk to keep tiles big
    enough to amortize ~0.35us/step, capped so double-buffered blocks stay well
    under the v7x 32 MiB scoped-VMEM default."""
    if p_pad <= min_chunk:
        return p_pad
    target = min(cap, max(min_chunk, p_pad // 4))
    c = max(128, (target // 128) * 128)
    while p_pad % c != 0:
        c -= 128
    return c


# ----------------------------------------------------------------------------
# Pallas kernel 1: channel-first fused pointwise linear
#   y = [tanh]( W @ x + b [+ add] ),  x: (Cin, P), y: (Cout, P)
# Covers fc0 and the 1x1 Conv1d "w" branches (fused with the spectral-branch add
# and the tanh activation).  x/W are bf16 at the boundary; math is f32.
# ----------------------------------------------------------------------------
def _make_cf_pointwise_kernel(has_add, apply_tanh):
    def kernel(x_ref, w_ref, b_ref, *rest):
        if has_add:
            add_ref, o_ref = rest
        else:
            (o_ref,) = rest
        y = jnp.dot(w_ref[...], x_ref[...], preferred_element_type=jnp.float32)
        y = y + b_ref[...]                       # (Cout,1) f32 broadcast over lanes
        if has_add:
            y = y + add_ref[...].astype(jnp.float32)
        if apply_tanh:
            y = jnp.tanh(y)                      # EUP, f32 (v5e-safe)
        o_ref[...] = y.astype(o_ref.dtype)
    return kernel


def pointwise_cf(x_cf, w, b, add=None, act=False, out_dtype=None):
    """x_cf: (Cin, P); w: (Cout, Cin); b: (Cout,); add: optional (Cout, P) f32."""
    Cin, P = x_cf.shape
    Cout = w.shape[0]
    if out_dtype is None:
        out_dtype = MXU_DTYPE
    P_pad = ((P + 127) // 128) * 128
    if P_pad != P:  # not hit at these shapes (P is a multiple of 128)
        x_cf = jnp.pad(x_cf, ((0, 0), (0, P_pad - P)))
        if add is not None:
            add = jnp.pad(add, ((0, 0), (0, P_pad - P)))
    chunk = _lane_chunk(P_pad)

    in_specs = [
        pl.BlockSpec((Cin, chunk), lambda i: (0, i)),
        pl.BlockSpec((Cout, Cin), lambda i: (0, 0)),
        pl.BlockSpec((Cout, 1), lambda i: (0, 0)),
    ]
    args = [x_cf.astype(MXU_DTYPE), w.astype(MXU_DTYPE),
            b.reshape(Cout, 1).astype(jnp.float32)]
    if add is not None:
        in_specs.append(pl.BlockSpec((Cout, chunk), lambda i: (0, i)))
        args.append(add.astype(jnp.float32))    # spectral branch stays f32

    out = pl.pallas_call(
        _make_cf_pointwise_kernel(add is not None, act),
        out_shape=jax.ShapeDtypeStruct((Cout, P_pad), out_dtype),
        grid=(P_pad // chunk,),
        in_specs=in_specs,
        out_specs=pl.BlockSpec((Cout, chunk), lambda i: (0, i)),
        compiler_params=pltpu.CompilerParams(dimension_semantics=("parallel",)),
    )(*args)
    return out[:, :P] if P_pad != P else out


# ----------------------------------------------------------------------------
# Pallas kernel 2: lane-dense spectral contraction with block-diagonal weights.
#   out_r = xr @ Wr - xi @ Wi ;  out_i = xr @ Wi + xi @ Wr
#   xr, xi: (Nb, M*Ci); Wr/Wi block-diagonal (M*Ci, M*Co)  [M = 2*m1*m2]
# ----------------------------------------------------------------------------
def _specmul_kernel(xr_ref, xi_ref, wr_ref, wi_ref, or_ref, oi_ref):
    xr = xr_ref[...]
    xi = xi_ref[...]
    wr = wr_ref[...]
    wi = wi_ref[...]
    rr = jnp.dot(xr, wr, preferred_element_type=jnp.float32)
    ii = jnp.dot(xi, wi, preferred_element_type=jnp.float32)
    ri = jnp.dot(xr, wi, preferred_element_type=jnp.float32)
    ir = jnp.dot(xi, wr, preferred_element_type=jnp.float32)
    or_ref[...] = rr - ii
    oi_ref[...] = ri + ir


def spectral_mode_matmul(xr, xi, wr_blk, wi_blk):
    """xr, xi: (Nb, K); wr_blk, wi_blk: (K, N) -> (out_r, out_i): (Nb, N) f32."""
    Nb, K = xr.shape
    N = wr_blk.shape[1]
    nchunk = N // 2 if (N >= 256 and N % 256 == 0) else N   # >=2 grid steps
    x_spec = pl.BlockSpec((Nb, K), lambda i: (0, 0))
    w_spec = pl.BlockSpec((K, nchunk), lambda i: (0, i))
    o_spec = pl.BlockSpec((Nb, nchunk), lambda i: (0, i))
    return pl.pallas_call(
        _specmul_kernel,
        out_shape=(jax.ShapeDtypeStruct((Nb, N), jnp.float32),
                   jax.ShapeDtypeStruct((Nb, N), jnp.float32)),
        grid=(N // nchunk,),
        in_specs=[x_spec, x_spec, w_spec, w_spec],
        out_specs=(o_spec, o_spec),
        compiler_params=pltpu.CompilerParams(dimension_semantics=("parallel",)),
    )(xr, xi, wr_blk, wi_blk)


# ----------------------------------------------------------------------------
# Pallas kernel 3: fused projection head with in-kernel feature assembly.
#   h = tanh(W1_q@qf + W1_d@df + W1_y@dY + b1);  y = W2@h + b2
# ----------------------------------------------------------------------------
def _head_kernel(q_ref, d_ref, y_ref, w1q_ref, w1d_ref, w1y_ref,
                 b1_ref, w2_ref, b2_ref, o_ref):
    h = jnp.dot(w1q_ref[...], q_ref[...], preferred_element_type=jnp.float32)
    h = h + jnp.dot(w1d_ref[...], d_ref[...], preferred_element_type=jnp.float32)
    h = h + jnp.dot(w1y_ref[...], y_ref[...], preferred_element_type=jnp.float32)
    h = jnp.tanh(h + b1_ref[...])
    out = jnp.dot(w2_ref[...], h.astype(w2_ref.dtype),
                  preferred_element_type=jnp.float32)
    o_ref[...] = (out + b2_ref[...]).astype(o_ref.dtype)


def fused_head(qf, df, dY, params):
    """qf: (C_fno, P); df: (J*C_fno, P); dY: (J, P) -> (out_dim, P) f32."""
    C_fno, P = qf.shape
    JC = df.shape[0]
    J = dY.shape[0]
    fc_dim = params['fc1_wq'].shape[0]
    out_dim = params['out_dim']
    P_pad = ((P + 127) // 128) * 128
    if P_pad != P:
        qf = jnp.pad(qf, ((0, 0), (0, P_pad - P)))
        df = jnp.pad(df, ((0, 0), (0, P_pad - P)))
        dY = jnp.pad(dY, ((0, 0), (0, P_pad - P)))
    chunk = _lane_chunk(P_pad, cap=4096)
    out = pl.pallas_call(
        _head_kernel,
        out_shape=jax.ShapeDtypeStruct((out_dim, P_pad), jnp.float32),
        grid=(P_pad // chunk,),
        in_specs=[
            pl.BlockSpec((C_fno, chunk), lambda i: (0, i)),
            pl.BlockSpec((JC, chunk), lambda i: (0, i)),
            pl.BlockSpec((J, chunk), lambda i: (0, i)),
            pl.BlockSpec((fc_dim, C_fno), lambda i: (0, 0)),
            pl.BlockSpec((fc_dim, JC), lambda i: (0, 0)),
            pl.BlockSpec((fc_dim, J), lambda i: (0, 0)),
            pl.BlockSpec((fc_dim, 1), lambda i: (0, 0)),
            pl.BlockSpec((out_dim, fc_dim), lambda i: (0, 0)),
            pl.BlockSpec((out_dim, 1), lambda i: (0, 0)),
        ],
        out_specs=pl.BlockSpec((out_dim, chunk), lambda i: (0, i)),
        compiler_params=pltpu.CompilerParams(dimension_semantics=("parallel",)),
    )(qf.astype(MXU_DTYPE), df.astype(MXU_DTYPE), dY.astype(MXU_DTYPE),
      params['fc1_wq'], params['fc1_wd'], params['fc1_wy'],
      params['fc1_b'].reshape(fc_dim, 1).astype(jnp.float32),
      params['fc2_w'], params['fc2_b'].reshape(out_dim, 1).astype(jnp.float32))
    return out[:, :P] if P_pad != P else out


# ----------------------------------------------------------------------------
# SpectralConv2dV2 (channel-first layout).  FFT in plain JAX, block-diagonal
# mode-contraction in Pallas.  x_cf: (Ci, Nb, H, W).
# ----------------------------------------------------------------------------
def spectral_conv2d_cf(x_cf, wr_blk, wi_blk, m1, m2, Co):
    Ci, Nb, H, W = x_cf.shape
    Wh = W // 2 + 1
    M = 2 * m1 * m2
    # TODO(synk): FFT has no Pallas TPU primitive; rfft2/irfft2 remain plain JAX.
    x_ft = jnp.fft.rfft2(x_cf.astype(jnp.float32), axes=(2, 3))   # (Ci,Nb,H,Wh) c64

    xm = jnp.concatenate([x_ft[:, :, :m1, :m2],
                          x_ft[:, :, H - m1:, :m2]], axis=2)      # (Ci,Nb,2m1,m2)
    xm = jnp.transpose(xm, (1, 2, 3, 0)).reshape(Nb, M * Ci)      # mode-major, Ci-minor
    xr = jnp.real(xm).astype(MXU_DTYPE)
    xi = jnp.imag(xm).astype(MXU_DTYPE)

    out_r, out_i = spectral_mode_matmul(xr, xi, wr_blk, wi_blk)   # (Nb, M*Co) f32
    out_c = (out_r + 1j * out_i).astype(jnp.complex64)
    out_c = jnp.transpose(out_c.reshape(Nb, 2 * m1, m2, Co),
                          (3, 0, 1, 2))                           # (Co,Nb,2m1,m2)

    # Build out_ft with one concat + one pad (no zeros + scatter pair).
    top = out_c[:, :, :m1]
    bot = out_c[:, :, m1:]
    mid = jnp.zeros((Co, Nb, H - 2 * m1, m2), jnp.complex64)
    left = jnp.concatenate([top, mid, bot], axis=2)               # (Co, Nb, H, m2)
    out_ft = jnp.pad(left, ((0, 0), (0, 0), (0, 0), (0, Wh - m2)))
    return jnp.fft.irfft2(out_ft, s=(H, W), axes=(2, 3)).astype(jnp.float32)


# ----------------------------------------------------------------------------
# FNN2d_Backbone forward; input channel-first (Cin, Nb, H, W).
# ----------------------------------------------------------------------------
def backbone_forward_cf(x_cf, bb):
    Cin, Nb, H, W = x_cf.shape
    layers = bb['layers']
    P = Nb * H * W
    h = pointwise_cf(x_cf.reshape(Cin, P), bb['fc0_w'], bb['fc0_b'])
    h = h.reshape(layers[0], Nb, H, W)
    n_layers = len(layers) - 1
    for i in range(n_layers):
        Ci, Co = layers[i], layers[i + 1]
        lp = bb['fourier'][i]
        x1 = spectral_conv2d_cf(h, lp['wr_blk'], lp['wi_blk'], lp['m1'], lp['m2'], Co)
        # x = activation(speconv(x) + w(x)) -- add + tanh fused into the kernel.
        h = pointwise_cf(h.reshape(Ci, P), lp['w_w'], lp['w_b'],
                         add=x1.reshape(Co, P),
                         act=(i != n_layers - 1))
        h = h.reshape(Co, Nb, H, W)
    return h  # (layers[-1], Nb, H, W), MXU_DTYPE


# ----------------------------------------------------------------------------
# FNN2d_FewShot_Baseline forward (input NCHW like PyTorch).  Dropout p=0 (eval).
# ----------------------------------------------------------------------------
def fewshot_forward(x_nchw, params):
    B, Ctot, H, W = x_nchw.shape
    C = params['in_dim']
    J = (Ctot - C) // (C + 1)
    C_fno = params['layers'][-1]
    out_dim = params['out_dim']

    query_x = x_nchw[:, -C:]                                    # (B, C, H, W)
    demo_X = x_nchw[:, :J * C].reshape(B * J, C, H, W)          # (B*J, C, H, W)
    demo_Y = x_nchw[:, J * C:J * C + J]                         # (B, J, H, W)

    # Single backbone pass over the concatenated batch (queries + demos).
    xb = jnp.concatenate([query_x, demo_X], axis=0)             # (Nb, C, H, W)
    xb_cf = jnp.transpose(xb, (1, 0, 2, 3)).astype(MXU_DTYPE)   # (C, Nb, H, W)
    z = backbone_forward_cf(xb_cf, params['backbone'])          # (C_fno, Nb, H, W)

    P = B * H * W
    qf = z[:, :B].reshape(C_fno, P)                             # (C_fno, B*H*W)
    df = z[:, B:].reshape(C_fno, B, J, H, W)
    df = jnp.transpose(df, (2, 0, 1, 3, 4)).reshape(J * C_fno, P)
    dY = jnp.transpose(demo_Y, (1, 0, 2, 3)).reshape(J, P)      # (J, B*H*W)

    # Feature assembly (query | demo | demo_Y·nh) happens inside the head kernel
    # via the pre-split fc1 weights -- no tile / concat through HBM.
    y = fused_head(qf, df, dY, params)                          # (out_dim, B*H*W)
    y = jnp.transpose(y.reshape(out_dim, B, H, W), (1, 0, 2, 3))
    if params['mean_constraint']:
        y = y - jnp.mean(y, axis=(-2, -1), keepdims=True)
    return y


# ----------------------------------------------------------------------------
# Deterministic parameter construction (PyTorch weight layouts), with all static
# weight reshuffling (block-diag spectral weights, fc1 split/pre-sum, bf16 casts)
# done once here instead of in the forward path.
# ----------------------------------------------------------------------------
def _init(key, shape, scale=0.1):
    return scale * jax.random.normal(key, shape, dtype=jnp.float32)


def _blockdiag(w, m1, m2):
    """(Ci, Co, m1, m2) stacked as two halves -> block-diagonal (M*Ci, M*Co)."""
    # w: list [w1, w2] each (Ci, Co, m1, m2)
    Ci, Co = w[0].shape[0], w[0].shape[1]
    M = 2 * m1 * m2
    wm = jnp.concatenate(
        [jnp.transpose(wi, (2, 3, 0, 1)).reshape(m1 * m2, Ci, Co) for wi in w],
        axis=0)                                                  # (M, Ci, Co)
    eye = jnp.eye(M, dtype=wm.dtype)
    blk = (eye[:, None, :, None] * wm[:, :, None, :]).reshape(M * Ci, M * Co)
    return blk


def init_params(key, *, modes1, modes2, fc_dim, layers, in_dim, out_dim,
                n_demos, num_heads=8, mean_constraint=False):
    assert out_dim == 1, "demo_Y channel layout (as in the torch module) needs out_dim=1"
    n_layers = len(layers) - 1
    ks = iter(jax.random.split(key, 8 + 6 * n_layers))

    bb = {'layers': tuple(layers),
          'fc0_w': _init(next(ks), (layers[0], in_dim)).astype(MXU_DTYPE),
          'fc0_b': _init(next(ks), (layers[0],)),
          'fourier': []}
    for i in range(n_layers):
        Ci, Co = layers[i], layers[i + 1]
        m1, m2 = modes1[i], modes2[i]
        scale = 1.0 / (Ci * Co)
        w1r = scale * jax.random.uniform(next(ks), (Ci, Co, m1, m2), dtype=jnp.float32)
        w1i = scale * jax.random.uniform(next(ks), (Ci, Co, m1, m2), dtype=jnp.float32)
        w2r = scale * jax.random.uniform(next(ks), (Ci, Co, m1, m2), dtype=jnp.float32)
        w2i = scale * jax.random.uniform(next(ks), (Ci, Co, m1, m2), dtype=jnp.float32)
        bb['fourier'].append({
            'm1': m1, 'm2': m2,
            'wr_blk': _blockdiag([w1r, w2r], m1, m2).astype(MXU_DTYPE),
            'wi_blk': _blockdiag([w1i, w2i], m1, m2).astype(MXU_DTYPE),
            'w_w': _init(next(ks), (Co, Ci)).astype(MXU_DTYPE),   # Conv1d(Ci,Co,1)
            'w_b': _init(next(ks), (Co,)),
        })

    C_fno = layers[-1]
    J = n_demos
    fc1_in = C_fno * (J + 1) + out_dim * J * num_heads
    fc1_w = _init(next(ks), (fc_dim, fc1_in))                    # nn.Linear (out,in)
    fc1_b = _init(next(ks), (fc_dim,))
    fc2_w = _init(next(ks), (out_dim, fc_dim))
    fc2_b = _init(next(ks), (out_dim,))

    # Split fc1 columns: [query C_fno | demo J*C_fno | demo_Y nh*J (pre-summed)].
    w1_q = fc1_w[:, :C_fno]
    w1_d = fc1_w[:, C_fno:C_fno * (J + 1)]
    w1_y = fc1_w[:, C_fno * (J + 1):].reshape(fc_dim, num_heads, J).sum(axis=1)

    return {
        'in_dim': in_dim, 'out_dim': out_dim, 'layers': tuple(layers),
        'num_heads': num_heads, 'mean_constraint': mean_constraint,
        'backbone': bb,
        'fc1_wq': w1_q.astype(MXU_DTYPE),
        'fc1_wd': w1_d.astype(MXU_DTYPE),
        'fc1_wy': w1_y.astype(MXU_DTYPE),
        'fc1_b': fc1_b,
        'fc2_w': fc2_w.astype(MXU_DTYPE),
        'fc2_b': fc2_b,
    }


if __name__ == "__main__":
    key = jax.random.PRNGKey(0)
    pkey, xkey = jax.random.split(key)

    B, H, W = 2, 16, 16
    in_dim, out_dim = 3, 1
    n_demos = 3
    layers = [16, 16, 16, 16, 16]           # 4 Fourier layers
    modes1 = [4, 4, 4, 4]
    modes2 = [4, 4, 4, 4]
    fc_dim = 32

    params = init_params(pkey, modes1=modes1, modes2=modes2, fc_dim=fc_dim,
                         layers=layers, in_dim=in_dim, out_dim=out_dim,
                         n_demos=n_demos)

    Ctot = n_demos * in_dim + n_demos * 1 + in_dim   # J*c + J*1 + c = 15
    x = jax.random.normal(xkey, (B, Ctot, H, W), dtype=jnp.float32)

    fwd = jax.jit(lambda inp: fewshot_forward(inp, params))
    out = fwd(x)
    out = jax.block_until_ready(out)
    assert out.shape == (B, out_dim, H, W)
    assert bool(jnp.all(jnp.isfinite(out)))
    print("KERNEL_OK")
</pallas_src>

<mosaic_0001>
module attributes {stable_mosaic.version = 11 : i64} {
  func.func @kernel(%arg0: i32, %arg1: memref<3x512xbf16, #tpu.memory_space<vmem>>, %arg2: memref<16x3xbf16, #tpu.memory_space<vmem>>, %arg3: memref<16x1xf32, #tpu.memory_space<vmem>>, %arg4: memref<16x512xbf16, #tpu.memory_space<vmem>>) attributes {dimension_semantics = [#tpu.dimension_semantics<parallel>], iteration_bounds = array<i64: 4>, scalar_prefetch = 0 : i64, scratch_operands = 0 : i64, tpu.core_type = #tpu.core_type<tc>, window_params = [{transform_indices = @transform_0, window_bounds = array<i64: 3, 512>}, {pipeline_mode = #tpu.pipeline_mode<synchronous>, transform_indices = @transform_1, window_bounds = array<i64: 16, 3>}, {pipeline_mode = #tpu.pipeline_mode<synchronous>, transform_indices = @transform_2, window_bounds = array<i64: 16, 1>}, {transform_indices = @transform_3, window_bounds = array<i64: 16, 512>}]} {
    %c0 = arith.constant 0 : index
    %c0_0 = arith.constant 0 : index
    %0 = vector.load %arg2[%c0, %c0_0] : memref<16x3xbf16, #tpu.memory_space<vmem>>, vector<16x3xbf16>
    %c0_1 = arith.constant 0 : index
    %c0_2 = arith.constant 0 : index
    %1 = vector.load %arg1[%c0_1, %c0_2] : memref<3x512xbf16, #tpu.memory_space<vmem>>, vector<3x512xbf16>
    %cst = arith.constant dense<0.000000e+00> : vector<16x512xf32>
    %2 = tpu.matmul %0, %1, %cst {dimension_numbers = #tpu.dot_dimension_numbers<[1], [0], [0], [1], [0, 0, 1, 1], [], []>} : vector<16x3xbf16>, vector<3x512xbf16>, vector<16x512xf32> -> vector<16x512xf32>
    %c0_3 = arith.constant 0 : index
    %c0_4 = arith.constant 0 : index
    %3 = vector.load %arg3[%c0_3, %c0_4] : memref<16x1xf32, #tpu.memory_space<vmem>>, vector<16x1xf32>
    %4 = vector.broadcast %3 : vector<16x1xf32> to vector<16x512xf32>
    %5 = arith.addf %2, %4 : vector<16x512xf32>
    %6 = arith.truncf %5 : vector<16x512xf32> to vector<16x512xbf16>
    %c0_5 = arith.constant 0 : index
    %c0_6 = arith.constant 0 : index
    %7 = vector.load %arg4[%c0_5, %c0_6] : memref<16x512xbf16, #tpu.memory_space<vmem>>, vector<16x512xbf16>
    tpu.vector_store %arg4[%c0_5, %c0_6], %6 {strides = array<i32>} : memref<16x512xbf16, #tpu.memory_space<vmem>>, vector<16x512xbf16>,
    return
  }
  func.func @transform_0(%arg0: i32) -> (i32, i32) {
    %c0_i32 = arith.constant 0 : i32
    %c0_i32_0 = arith.constant 0 : i32
    return %c0_i32, %arg0 : i32, i32
  }
  func.func @transform_1(%arg0: i32) -> (i32, i32) {
    %c0_i32 = arith.constant 0 : i32
    %c0_i32_0 = arith.constant 0 : i32
    %c0_i32_1 = arith.constant 0 : i32
    return %c0_i32, %c0_i32_0 : i32, i32
  }
  func.func @transform_2(%arg0: i32) -> (i32, i32) {
    %c0_i32 = arith.constant 0 : i32
    %c0_i32_0 = arith.constant 0 : i32
    %c0_i32_1 = arith.constant 0 : i32
    return %c0_i32, %c0_i32_0 : i32, i32
  }
  func.func @transform_3(%arg0: i32) -> (i32, i32) {
    %c0_i32 = arith.constant 0 : i32
    %c0_i32_0 = arith.constant 0 : i32
    return %c0_i32, %arg0 : i32, i32
  }
}

module attributes {stable_mosaic.version = 11 : i64} {
  func.func @_specmul_kernel(%arg0: i32, %arg1: memref<8x512xbf16, #tpu.memory_space<vmem>>, %arg2: memref<8x512xbf16, #tpu.memory_space<vmem>>, %arg3: memref<512x256xbf16, #tpu.memory_space<vmem>>, %arg4: memref<512x256xbf16, #tpu.memory_space<vmem>>, %arg5: memref<8x256xf32, #tpu.memory_space<vmem>>, %arg6: memref<8x256xf32, #tpu.memory_space<vmem>>) attributes {dimension_semantics = [#tpu.dimension_semantics<parallel>], iteration_bounds = array<i64: 2>, scalar_prefetch = 0 : i64, scratch_operands = 0 : i64, tpu.core_type = #tpu.core_type<tc>, window_params = [{pipeline_mode = #tpu.pipeline_mode<synchronous>, transform_indices = @transform_0, window_bounds = array<i64: 8, 512>}, {pipeline_mode = #tpu.pipeline_mode<synchronous>, transform_indices = @transform_1, window_bounds = array<i64: 8, 512>}, {transform_indices = @transform_2, window_bounds = array<i64: 512, 256>}, {transform_indices = @transform_3, window_bounds = array<i64: 512, 256>}, {transform_indices = @transform_4, window_bounds = array<i64: 8, 256>}, {transform_indices = @transform_5, window_bounds = array<i64: 8, 256>}]} {
    %c0 = arith.constant 0 : index
    %c0_0 = arith.constant 0 : index
    %0 = vector.load %arg1[%c0, %c0_0] : memref<8x512xbf16, #tpu.memory_space<vmem>>, vector<8x512xbf16>
    %c0_1 = arith.constant 0 : index
    %c0_2 = arith.constant 0 : index
    %1 = vector.load %arg2[%c0_1, %c0_2] : memref<8x512xbf16, #tpu.memory_space<vmem>>, vector<8x512xbf16>
    %c0_3 = arith.constant 0 : index
    %c0_4 = arith.constant 0 : index
    %2 = vector.load %arg3[%c0_3, %c0_4] : memref<512x256xbf16, #tpu.memory_space<vmem>>, vector<512x256xbf16>
    %c0_5 = arith.constant 0 : index
    %c0_6 = arith.constant 0 : index
    %3 = vector.load %arg4[%c0_5, %c0_6] : memref<512x256xbf16, #tpu.memory_space<vmem>>, vector<512x256xbf16>
    %cst = arith.constant dense<0.000000e+00> : vector<8x256xf32>
    %4 = tpu.matmul %0, %2, %cst {dimension_numbers = #tpu.dot_dimension_numbers<[1], [0], [0], [1], [0, 0, 1, 1], [], []>} : vector<8x512xbf16>, vector<512x256xbf16>, vector<8x256xf32> -> vector<8x256xf32>
    %cst_7 = arith.constant dense<0.000000e+00> : vector<8x256xf32>
    %5 = tpu.matmul %1, %3, %cst_7 {dimension_numbers = #tpu.dot_dimension_numbers<[1], [0], [0], [1], [0, 0, 1, 1], [], []>} : vector<8x512xbf16>, vector<512x256xbf16>, vector<8x256xf32> -> vector<8x256xf32>
    %cst_8 = arith.constant dense<0.000000e+00> : vector<8x256xf32>
    %6 = tpu.matmul %0, %3, %cst_8 {dimension_numbers = #tpu.dot_dimension_numbers<[1], [0], [0], [1], [0, 0, 1, 1], [], []>} : vector<8x512xbf16>, vector<512x256xbf16>, vector<8x256xf32> -> vector<8x256xf32>
    %cst_9 = arith.constant dense<0.000000e+00> : vector<8x256xf32>
    %7 = tpu.matmul %1, %2, %cst_9 {dimension_numbers = #tpu.dot_dimension_numbers<[1], [0], [0], [1], [0, 0, 1, 1], [], []>} : vector<8x512xbf16>, vector<512x256xbf16>, vector<8x256xf32> -> vector<8x256xf32>
    %8 = arith.subf %4, %5 : vector<8x256xf32>
    %c0_10 = arith.constant 0 : index
    %c0_11 = arith.constant 0 : index
    %9 = vector.load %arg5[%c0_10, %c0_11] : memref<8x256xf32, #tpu.memory_space<vmem>>, vector<8x256xf32>
    tpu.vector_store %arg5[%c0_10, %c0_11], %8 {strides = array<i32>} : memref<8x256xf32, #tpu.memory_space<vmem>>, vector<8x256xf32>,
    %10 = arith.addf %6, %7 : vector<8x256xf32>
    %c0_12 = arith.constant 0 : index
    %c0_13 = arith.constant 0 : index
    %11 = vector.load %arg6[%c0_12, %c0_13] : memref<8x256xf32, #tpu.memory_space<vmem>>, vector<8x256xf32>
    tpu.vector_store %arg6[%c0_12, %c0_13], %10 {strides = array<i32>} : memref<8x256xf32, #tpu.memory_space<vmem>>, vector<8x256xf32>,
    return
  }
  func.func @transform_0(%arg0: i32) -> (i32, i32) {
    %c0_i32 = arith.constant 0 : i32
    %c0_i32_0 = arith.constant 0 : i32
    %c0_i32_1 = arith.constant 0 : i32
    return %c0_i32, %c0_i32_0 : i32, i32
  }
  func.func @transform_1(%arg0: i32) -> (i32, i32) {
    %c0_i32 = arith.constant 0 : i32
    %c0_i32_0 = arith.constant 0 : i32
    %c0_i32_1 = arith.constant 0 : i32
    return %c0_i32, %c0_i32_0 : i32, i32
  }
  func.func @transform_2(%arg0: i32) -> (i32, i32) {
    %c0_i32 = arith.constant 0 : i32
    %c0_i32_0 = arith.constant 0 : i32
    return %c0_i32, %arg0 : i32, i32
  }
  func.func @transform_3(%arg0: i32) -> (i32, i32) {
    %c0_i32 = arith.constant 0 : i32
    %c0_i32_0 = arith.constant 0 : i32
    return %c0_i32, %arg0 : i32, i32
  }
  func.func @transform_4(%arg0: i32) -> (i32, i32) {
    %c0_i32 = arith.constant 0 : i32
    %c0_i32_0 = arith.constant 0 : i32
    return %c0_i32, %arg0 : i32, i32
  }
  func.func @transform_5(%arg0: i32) -> (i32, i32) {
    %c0_i32 = arith.constant 0 : i32
    %c0_i32_0 = arith.constant 0 : i32
    return %c0_i32, %arg0 : i32, i32
  }
}

module attributes {stable_mosaic.version = 11 : i64} {
  func.func @kernel(%arg0: i32, %arg1: memref<16x512xbf16, #tpu.memory_space<vmem>>, %arg2: memref<16x16xbf16, #tpu.memory_space<vmem>>, %arg3: memref<16x1xf32, #tpu.memory_space<vmem>>, %arg4: memref<16x512xf32, #tpu.memory_space<vmem>>, %arg5: memref<16x512xbf16, #tpu.memory_space<vmem>>) attributes {dimension_semantics = [#tpu.dimension_semantics<parallel>], iteration_bounds = array<i64: 4>, scalar_prefetch = 0 : i64, scratch_operands = 0 : i64, tpu.core_type = #tpu.core_type<tc>, window_params = [{transform_indices = @transform_0, window_bounds = array<i64: 16, 512>}, {pipeline_mode = #tpu.pipeline_mode<synchronous>, transform_indices = @transform_1, window_bounds = array<i64: 16, 16>}, {pipeline_mode = #tpu.pipeline_mode<synchronous>, transform_indices = @transform_2, window_bounds = array<i64: 16, 1>}, {transform_indices = @transform_3, window_bounds = array<i64: 16, 512>}, {transform_indices = @transform_4, window_bounds = array<i64: 16, 512>}]} {
    %c0 = arith.constant 0 : index
    %c0_0 = arith.constant 0 : index
    %0 = vector.load %arg2[%c0, %c0_0] : memref<16x16xbf16, #tpu.memory_space<vmem>>, vector<16x16xbf16>
    %c0_1 = arith.constant 0 : index
    %c0_2 = arith.constant 0 : index
    %1 = vector.load %arg1[%c0_1, %c0_2] : memref<16x512xbf16, #tpu.memory_space<vmem>>, vector<16x512xbf16>
    %cst = arith.constant dense<0.000000e+00> : vector<16x512xf32>
    %2 = tpu.matmul %0, %1, %cst {dimension_numbers = #tpu.dot_dimension_numbers<[1], [0], [0], [1], [0, 0, 1, 1], [], []>} : vector<16x16xbf16>, vector<16x512xbf16>, vector<16x512xf32> -> vector<16x512xf32>
    %c0_3 = arith.constant 0 : index
    %c0_4 = arith.constant 0 : index
    %3 = vector.load %arg3[%c0_3, %c0_4] : memref<16x1xf32, #tpu.memory_space<vmem>>, vector<16x1xf32>
    %4 = vector.broadcast %3 : vector<16x1xf32> to vector<16x512xf32>
    %5 = arith.addf %2, %4 : vector<16x512xf32>
    %c0_5 = arith.constant 0 : index
    %c0_6 = arith.constant 0 : index
    %6 = vector.load %arg4[%c0_5, %c0_6] : memref<16x512xf32, #tpu.memory_space<vmem>>, vector<16x512xf32>
    %7 = arith.addf %5, %6 : vector<16x512xf32>
    %8 = math.tanh %7 : vector<16x512xf32>
    %9 = arith.truncf %8 : vector<16x512xf32> to vector<16x512xbf16>
    %c0_7 = arith.constant 0 : index
    %c0_8 = arith.constant 0 : index
    %10 = vector.load %arg5[%c0_7, %c0_8] : memref<16x512xbf16, #tpu.memory_space<vmem>>, vector<16x512xbf16>
    tpu.vector_store %arg5[%c0_7, %c0_8], %9 {strides = array<i32>} : memref<16x512xbf16, #tpu.memory_space<vmem>>, vector<16x512xbf16>,
    return
  }
  func.func @transform_0(%arg0: i32) -> (i32, i32) {
    %c0_i32 = arith.constant 0 : i32
    %c0_i32_0 = arith.constant 0 : i32
    return %c0_i32, %arg0 : i32, i32
  }
  func.func @transform_1(%arg0: i32) -> (i32, i32) {
    %c0_i32 = arith.constant 0 : i32
    %c0_i32_0 = arith.constant 0 : i32
    %c0_i32_1 = arith.constant 0 : i32
    return %c0_i32, %c0_i32_0 : i32, i32
  }
  func.func @transform_2(%arg0: i32) -> (i32, i32) {
    %c0_i32 = arith.constant 0 : i32
    %c0_i32_0 = arith.constant 0 : i32
    %c0_i32_1 = arith.constant 0 : i32
    return %c0_i32, %c0_i32_0 : i32, i32
  }
  func.func @transform_3(%arg0: i32) -> (i32, i32) {
    %c0_i32 = arith.constant 0 : i32
    %c0_i32_0 = arith.constant 0 : i32
    return %c0_i32, %arg0 : i32, i32
  }
  func.func @transform_4(%arg0: i32) -> (i32, i32) {
    %c0_i32 = arith.constant 0 : i32
    %c0_i32_0 = arith.constant 0 : i32
    return %c0_i32, %arg0 : i32, i32
  }
}

module attributes {stable_mosaic.version = 11 : i64} {
  func.func @kernel(%arg0: i32, %arg1: memref<16x512xbf16, #tpu.memory_space<vmem>>, %arg2: memref<16x16xbf16, #tpu.memory_space<vmem>>, %arg3: memref<16x1xf32, #tpu.memory_space<vmem>>, %arg4: memref<16x512xf32, #tpu.memory_space<vmem>>, %arg5: memref<16x512xbf16, #tpu.memory_space<vmem>>) attributes {dimension_semantics = [#tpu.dimension_semantics<parallel>], iteration_bounds = array<i64: 4>, scalar_prefetch = 0 : i64, scratch_operands = 0 : i64, tpu.core_type = #tpu.core_type<tc>, window_params = [{transform_indices = @transform_0, window_bounds = array<i64: 16, 512>}, {pipeline_mode = #tpu.pipeline_mode<synchronous>, transform_indices = @transform_1, window_bounds = array<i64: 16, 16>}, {pipeline_mode = #tpu.pipeline_mode<synchronous>, transform_indices = @transform_2, window_bounds = array<i64: 16, 1>}, {transform_indices = @transform_3, window_bounds = array<i64: 16, 512>}, {transform_indices = @transform_4, window_bounds = array<i64: 16, 512>}]} {
    %c0 = arith.constant 0 : index
    %c0_0 = arith.constant 0 : index
    %0 = vector.load %arg2[%c0, %c0_0] : memref<16x16xbf16, #tpu.memory_space<vmem>>, vector<16x16xbf16>
    %c0_1 = arith.constant 0 : index
    %c0_2 = arith.constant 0 : index
    %1 = vector.load %arg1[%c0_1, %c0_2] : memref<16x512xbf16, #tpu.memory_space<vmem>>, vector<16x512xbf16>
    %cst = arith.constant dense<0.000000e+00> : vector<16x512xf32>
    %2 = tpu.matmul %0, %1, %cst {dimension_numbers = #tpu.dot_dimension_numbers<[1], [0], [0], [1], [0, 0, 1, 1], [], []>} : vector<16x16xbf16>, vector<16x512xbf16>, vector<16x512xf32> -> vector<16x512xf32>
    %c0_3 = arith.constant 0 : index
    %c0_4 = arith.constant 0 : index
    %3 = vector.load %arg3[%c0_3, %c0_4] : memref<16x1xf32, #tpu.memory_space<vmem>>, vector<16x1xf32>
    %4 = vector.broadcast %3 : vector<16x1xf32> to vector<16x512xf32>
    %5 = arith.addf %2, %4 : vector<16x512xf32>
    %c0_5 = arith.constant 0 : index
    %c0_6 = arith.constant 0 : index
    %6 = vector.load %arg4[%c0_5, %c0_6] : memref<16x512xf32, #tpu.memory_space<vmem>>, vector<16x512xf32>
    %7 = arith.addf %5, %6 : vector<16x512xf32>
    %8 = arith.truncf %7 : vector<16x512xf32> to vector<16x512xbf16>
    %c0_7 = arith.constant 0 : index
    %c0_8 = arith.constant 0 : index
    %9 = vector.load %arg5[%c0_7, %c0_8] : memref<16x512xbf16, #tpu.memory_space<vmem>>, vector<16x512xbf16>
    tpu.vector_store %arg5[%c0_7, %c0_8], %8 {strides = array<i32>} : memref<16x512xbf16, #tpu.memory_space<vmem>>, vector<16x512xbf16>,
    return
  }
  func.func @transform_0(%arg0: i32) -> (i32, i32) {
    %c0_i32 = arith.constant 0 : i32
    %c0_i32_0 = arith.constant 0 : i32
    return %c0_i32, %arg0 : i32, i32
  }
  func.func @transform_1(%arg0: i32) -> (i32, i32) {
    %c0_i32 = arith.constant 0 : i32
    %c0_i32_0 = arith.constant 0 : i32
    %c0_i32_1 = arith.constant 0 : i32
    return %c0_i32, %c0_i32_0 : i32, i32
  }
  func.func @transform_2(%arg0: i32) -> (i32, i32) {
    %c0_i32 = arith.constant 0 : i32
    %c0_i32_0 = arith.constant 0 : i32
    %c0_i32_1 = arith.constant 0 : i32
    return %c0_i32, %c0_i32_0 : i32, i32
  }
  func.func @transform_3(%arg0: i32) -> (i32, i32) {
    %c0_i32 = arith.constant 0 : i32
    %c0_i32_0 = arith.constant 0 : i32
    return %c0_i32, %arg0 : i32, i32
  }
  func.func @transform_4(%arg0: i32) -> (i32, i32) {
    %c0_i32 = arith.constant 0 : i32
    %c0_i32_0 = arith.constant 0 : i32
    return %c0_i32, %arg0 : i32, i32
  }
}

module attributes {stable_mosaic.version = 11 : i64} {
  func.func @_head_kernel(%arg0: i32, %arg1: memref<16x512xbf16, #tpu.memory_space<vmem>>, %arg2: memref<48x512xbf16, #tpu.memory_space<vmem>>, %arg3: memref<3x512xbf16, #tpu.memory_space<vmem>>, %arg4: memref<32x16xbf16, #tpu.memory_space<vmem>>, %arg5: memref<32x48xbf16, #tpu.memory_space<vmem>>, %arg6: memref<32x3xbf16, #tpu.memory_space<vmem>>, %arg7: memref<32x1xf32, #tpu.memory_space<vmem>>, %arg8: memref<1x32xbf16, #tpu.memory_space<vmem>>, %arg9: memref<1x1xf32, #tpu.memory_space<vmem>>, %arg10: memref<1x512xf32, #tpu.memory_space<vmem>>) attributes {dimension_semantics = [#tpu.dimension_semantics<parallel>], iteration_bounds = array<i64: 1>, scalar_prefetch = 0 : i64, scratch_operands = 0 : i64, tpu.core_type = #tpu.core_type<tc>, window_params = [{transform_indices = @transform_0, window_bounds = array<i64: 16, 512>}, {transform_indices = @transform_1, window_bounds = array<i64: 48, 512>}, {transform_indices = @transform_2, window_bounds = array<i64: 3, 512>}, {pipeline_mode = #tpu.pipeline_mode<synchronous>, transform_indices = @transform_3, window_bounds = array<i64: 32, 16>}, {pipeline_mode = #tpu.pipeline_mode<synchronous>, transform_indices = @transform_4, window_bounds = array<i64: 32, 48>}, {pipeline_mode = #tpu.pipeline_mode<synchronous>, transform_indices = @transform_5, window_bounds = array<i64: 32, 3>}, {pipeline_mode = #tpu.pipeline_mode<synchronous>, transform_indices = @transform_6, window_bounds = array<i64: 32, 1>}, {pipeline_mode = #tpu.pipeline_mode<synchronous>, transform_indices = @transform_7, window_bounds = array<i64: 1, 32>}, {pipeline_mode = #tpu.pipeline_mode<synchronous>, transform_indices = @transform_8, window_bounds = array<i64: 1, 1>}, {transform_indices = @transform_9, window_bounds = array<i64: 1, 512>}]} {
    %c0 = arith.constant 0 : index
    %c0_0 = arith.constant 0 : index
    %0 = vector.load %arg4[%c0, %c0_0] : memref<32x16xbf16, #tpu.memory_space<vmem>>, vector<32x16xbf16>
    %c0_1 = arith.constant 0 : index
    %c0_2 = arith.constant 0 : index
    %1 = vector.load %arg1[%c0_1, %c0_2] : memref<16x512xbf16, #tpu.memory_space<vmem>>, vector<16x512xbf16>
    %cst = arith.constant dense<0.000000e+00> : vector<32x512xf32>
    %2 = tpu.matmul %0, %1, %cst {dimension_numbers = #tpu.dot_dimension_numbers<[1], [0], [0], [1], [0, 0, 1, 1], [], []>} : vector<32x16xbf16>, vector<16x512xbf16>, vector<32x512xf32> -> vector<32x512xf32>
    %c0_3 = arith.constant 0 : index
    %c0_4 = arith.constant 0 : index
    %3 = vector.load %arg5[%c0_3, %c0_4] : memref<32x48xbf16, #tpu.memory_space<vmem>>, vector<32x48xbf16>
    %c0_5 = arith.constant 0 : index
    %c0_6 = arith.constant 0 : index
    %4 = vector.load %arg2[%c0_5, %c0_6] : memref<48x512xbf16, #tpu.memory_space<vmem>>, vector<48x512xbf16>
    %cst_7 = arith.constant dense<0.000000e+00> : vector<32x512xf32>
    %5 = tpu.matmul %3, %4, %cst_7 {dimension_numbers = #tpu.dot_dimension_numbers<[1], [0], [0], [1], [0, 0, 1, 1], [], []>} : vector<32x48xbf16>, vector<48x512xbf16>, vector<32x512xf32> -> vector<32x512xf32>
    %6 = arith.addf %2, %5 : vector<32x512xf32>
    %c0_8 = arith.constant 0 : index
    %c0_9 = arith.constant 0 : index
    %7 = vector.load %arg6[%c0_8, %c0_9] : memref<32x3xbf16, #tpu.memory_space<vmem>>, vector<32x3xbf16>
    %c0_10 = arith.constant 0 : index
    %c0_11 = arith.constant 0 : index
    %8 = vector.load %arg3[%c0_10, %c0_11] : memref<3x512xbf16, #tpu.memory_space<vmem>>, vector<3x512xbf16>
    %cst_12 = arith.constant dense<0.000000e+00> : vector<32x512xf32>
    %9 = tpu.matmul %7, %8, %cst_12 {dimension_numbers = #tpu.dot_dimension_numbers<[1], [0], [0], [1], [0, 0, 1, 1], [], []>} : vector<32x3xbf16>, vector<3x512xbf16>, vector<32x512xf32> -> vector<32x512xf32>
    %10 = arith.addf %6, %9 : vector<32x512xf32>
    %c0_13 = arith.constant 0 : index
    %c0_14 = arith.constant 0 : index
    %11 = vector.load %arg7[%c0_13, %c0_14] : memref<32x1xf32, #tpu.memory_space<vmem>>, vector<32x1xf32>
    %12 = vector.broadcast %11 : vector<32x1xf32> to vector<32x512xf32>
    %13 = arith.addf %10, %12 : vector<32x512xf32>
    %14 = math.tanh %13 : vector<32x512xf32>
    %c0_15 = arith.constant 0 : index
    %c0_16 = arith.constant 0 : index
    %15 = vector.load %arg8[%c0_15, %c0_16] : memref<1x32xbf16, #tpu.memory_space<vmem>>, vector<1x32xbf16>
    %16 = arith.truncf %14 : vector<32x512xf32> to vector<32x512xbf16>
    %cst_17 = arith.constant dense<0.000000e+00> : vector<1x512xf32>
    %17 = tpu.matmul %15, %16, %cst_17 {dimension_numbers = #tpu.dot_dimension_numbers<[1], [0], [0], [1], [0, 0, 1, 1], [], []>} : vector<1x32xbf16>, vector<32x512xbf16>, vector<1x512xf32> -> vector<1x512xf32>
    %c0_18 = arith.constant 0 : index
    %c0_19 = arith.constant 0 : index
    %18 = vector.load %arg9[%c0_18, %c0_19] : memref<1x1xf32, #tpu.memory_space<vmem>>, vector<1x1xf32>
    %19 = vector.broadcast %18 : vector<1x1xf32> to vector<1x512xf32>
    %20 = arith.addf %17, %19 : vector<1x512xf32>
    %c0_20 = arith.constant 0 : index
    %c0_21 = arith.constant 0 : index
    %21 = vector.load %arg10[%c0_20, %c0_21] : memref<1x512xf32, #tpu.memory_space<vmem>>, vector<1x512xf32>
    tpu.vector_store %arg10[%c0_20, %c0_21], %20 {strides = array<i32>} : memref<1x512xf32, #tpu.memory_space<vmem>>, vector<1x512xf32>,
    return
  }
  func.func @transform_0(%arg0: i32) -> (i32, i32) {
    %c0_i32 = arith.constant 0 : i32
    %c0_i32_0 = arith.constant 0 : i32
    return %c0_i32, %arg0 : i32, i32
  }
  func.func @transform_1(%arg0: i32) -> (i32, i32) {
    %c0_i32 = arith.constant 0 : i32
    %c0_i32_0 = arith.constant 0 : i32
    return %c0_i32, %arg0 : i32, i32
  }
  func.func @transform_2(%arg0: i32) -> (i32, i32) {
    %c0_i32 = arith.constant 0 : i32
    %c0_i32_0 = arith.constant 0 : i32
    return %c0_i32, %arg0 : i32, i32
  }
  func.func @transform_3(%arg0: i32) -> (i32, i32) {
    %c0_i32 = arith.constant 0 : i32
    %c0_i32_0 = arith.constant 0 : i32
    %c0_i32_1 = arith.constant 0 : i32
    return %c0_i32, %c0_i32_0 : i32, i32
  }
  func.func @transform_4(%arg0: i32) -> (i32, i32) {
    %c0_i32 = arith.constant 0 : i32
    %c0_i32_0 = arith.constant 0 : i32
    %c0_i32_1 = arith.constant 0 : i32
    return %c0_i32, %c0_i32_0 : i32, i32
  }
  func.func @transform_5(%arg0: i32) -> (i32, i32) {
    %c0_i32 = arith.constant 0 : i32
    %c0_i32_0 = arith.constant 0 : i32
    %c0_i32_1 = arith.constant 0 : i32
    return %c0_i32, %c0_i32_0 : i32, i32
  }
  func.func @transform_6(%arg0: i32) -> (i32, i32) {
    %c0_i32 = arith.constant 0 : i32
    %c0_i32_0 = arith.constant 0 : i32
    %c0_i32_1 = arith.constant 0 : i32
    return %c0_i32, %c0_i32_0 : i32, i32
  }
  func.func @transform_7(%arg0: i32) -> (i32, i32) {
    %c0_i32 = arith.constant 0 : i32
    %c0_i32_0 = arith.constant 0 : i32
    %c0_i32_1 = arith.constant 0 : i32
    return %c0_i32, %c0_i32_0 : i32, i32
  }
  func.func @transform_8(%arg0: i32) -> (i32, i32) {
    %c0_i32 = arith.constant 0 : i32
    %c0_i32_0 = arith.constant 0 : i32
    %c0_i32_1 = arith.constant 0 : i32
    return %c0_i32, %c0_i32_0 : i32, i32
  }
  func.func @transform_9(%arg0: i32) -> (i32, i32) {
    %c0_i32 = arith.constant 0 : i32
    %c0_i32_0 = arith.constant 0 : i32
    return %c0_i32, %arg0 : i32, i32
  }
}

</mosaic_0001>

<bundles_post_ra>
// kernel: _lambda_.10
= control target key start
LH: loop header
LB: loop body
LE: loop exit
PB: predicated region body
PF: predicated region fallthrough
CT: control target
= control target key end

     0   :  { %s526_s12 = smov 0   ;;  %s528_s13 = smov 0   ;;  %s585_s0 = inlined_call_operand.vmem [shape: bf16[3,2048], index: 0, kind: input, shape index: {}]   ;;  %s586_s1 = inlined_call_operand.vmem [shape: bf16[16,3], index: 1, kind: input, shape index: {}]   ;;  %s587_s2 = inlined_call_operand.vmem [shape: f32[16,1], index: 2, kind: input, shape index: {}]   ;;  %s588_s3 = inlined_call_operand.vmem [shape: bf16[16,2048], index: 3, kind: output, shape index: {}]  }
   0x1   :  { %s530_s14 = smov 0  }
   0x2 LB: > { %s539_s15 = sadd.s32 4294967295, %s501_s14   ;;  %s541_s16 = sadd.s32 1, %s501_s14   ;;  %s501_s14 = sphi %s530_s14, %s592_s14   ;;  %s497_s13 = sphi %s528_s13, %s591_s13   ;;  %s493_s12 = sphi %s526_s12, %s590_s12  }
   0x3   : > { %s85_s17 = ssub.s32 %s501_s14, %s541_s16  ;;  %s88_s18 = sadd.s32 1, %s497_s13 }
   0x4   : > { %p86_p0 = scmp.eq.s32.totalorder %s85_s17, 0  ;;  %p98_p1 = scmp.ne.s32.totalorder %s497_s13, %s493_s12 }
   0x5   : > { %p99_p2 = scmp.eq.s32.totalorder %s539_s15, 3  ;;  %p428_p3 = scmp.ge.s32.totalorder %s501_s14, 1 }
   0x6   : > { %s549_s19 = scalar_select %p86_p0, %s497_s13, %s88_s18  }
   0x7   : > { %p551_p4 = por %p99_p2, %p98_p1  ;;  %p138_p5 = scmp.lt.s32.totalorder %s501_s14, 5 }
   0x9   : > { %p139_p6 = pnand %p428_p3, %p138_p5 }
   0xa   : > { %s430_s21 = sshll.u32 (!%p139_p6), %s539_s15, 2  ;;  %v194_v0 = vlaneseq (!%p139_p6)  ;;  %v503_v1 = vmov (!%p139_p6), 1983009808   ;;  %vm211_vm0 = vcmask (!%p139_p6), 1040384   ;;  %v504_v4 = vmov (!%p139_p6), 0   ;;  %v172_v5 = vld [vmem:[%s587_s2] sm:$0xff] (!%p139_p6) }
   0xb   : > { %142 = sbr.rel (%p139_p6) target bundleno = 262 (0x106), region = 32  ;;  %p162_p7 = scmp.lt.s32.totalorder (!%p139_p6), %s430_s21, 15  ;;  %v192_v2 = vunpack.c.l.s4 (!%p139_p6), %v503_v1  ;;  %259 = vmatprep.mubr.bf16.mxu0 (!%p139_p6), %v504_v4  ;;  %302 = vmatprep.mubr.bf16.mxu1 (!%p139_p6), %v504_v4  ;;  %vm212_vm1 = vcmask (!%p139_p6), 1041408   ;;  %v505_v8 = vmov (!%p139_p6), 65535   ;;  %v173_v10 = vld [vmem:[%s587_s2 + $0x8] sm:$0xff] (!%p139_p6)  ;;  %v478_v22 = vld [vmem:[%s586_s1] sm:$0xff] (!%p139_p6)  }
   0xc   : > { %v195_v3 = vshrl.u32 (!%p139_p6), %v194_v0, 7  ;;  %476 = vset.pattern.permute.xlu0 (!%p139_p6), %v504_v4  ;;  %v213_v9 = vsel (!%p139_p6), %vm211_vm0, 4294967295, %v505_v8  ;;  %vm207_vm2 = vcmask (!%p139_p6), 23552   ;;  %s158_s5 = sand.u32 (!%p139_p6), 1, %s493_s12  }
   0xd   : > { %v193_v6 = vunpack.c.0.s8 (!%p139_p6), %v192_v2  ;;  %176 = vperm.xlu0 (!%p139_p6), %476, %v172_v5   ;;  %v214_v13 = vsel (!%p139_p6), %vm212_vm1, %v213_v9, 0  ;;  %s429_s6 = sshll.u32 (!%p139_p6), %s158_s5, 5 }
   0xe   : > { %s160_s7 = scalar_lea.vmem (!%p139_p6), [#allocation2], %s429_s6 }
   0xf   : > { %v196_v7 = vsub.s32 (!%p139_p6), %v193_v6, %v195_v3 }
  0x11   : > { %181 = vperm.xlu0 (!%p139_p6), %476, %v173_v10  }
  0x12   : > { %s594_s21 = smov (!%p162_p7, %s430_s21), 15  ;;  %s448_s8 = sshll.u32 (%p551_p4), %s539_s15, 4 }
  0x13   : > { %s431_s24 = sshll.u32 %s594_s21, 1  ;;  %s350_s11 = scalar_lea.vmem (%p551_p4), %s588_s3, %s448_s8 }
  0x14   : > { %s165_s29 = scalar_lea.vmem %s585_s0, %s431_s24 }
  0x15   : > { %v171_v11 = vld [vmem:[%s165_s29] sm:$0xff] }
  0x16   : > { %v197_v12 = vrot.slane %v171_v11, %v196_v7  ;;  %v190_v14 = vcombine.high %v171_v11, %v171_v11 }
  0x18   : > { %v205_v15 = vcombine.high %v197_v12, %v197_v12  ;;  %v204_v16 = vrot.slane %v190_v14, %v196_v7  ;;  %v216_v17 = vand.u32 %v214_v13, %v197_v12 }
  0x1a   : > { %v219_v18 = vand.u32 %v214_v13, %v205_v15  ;;  %v206_v19 = vcombine.high %v204_v16, %v204_v16  ;;  %v222_v20 = vand.u32 %v214_v13, %v204_v16 }
  0x1c   : > { %227 = vmatprep.subr.bf16.mxu0 %v219_v18  ;;  %v225_v21 = vand.u32 %v214_v13, %v206_v19 }
  0x1d   : > { %228 = vmatpush1.bf16.msra.mxu0 %v216_v17 }
  0x1e   : > { %270 = vmatprep.subr.bf16.mxu1 %v225_v21 }
  0x1f   : > { %271 = vmatpush1.bf16.msra.mxu1 %v222_v20 }
  0x20   : > { %433 = vmatmul.mubr.msk.bf16.vlgmr.msra.gmra.mrb[0].mxu0 %vm207_vm2, %v478_v22 }
  0x22   : > { %434 = vmatmul.mubr.msk.bf16.vlgmr.msra.gmra.mrb[0].mxu1 %vm207_vm2, %v478_v22 }
  0x8c   : > { %v177_v23 = vpop.permute.xlu0 %176 }
  0x90   : > { %v182_v25 = vpop.permute.xlu0 %181 }
  0xf3   : > { %v261_v24 = vpop.f32.mrb[0].mxu0 }
  0xf4   : > { %v262_v26 = vadd.f32 %v261_v24, %v177_v23  ;;  %v263_v27 = vpop.f32.mrb[1].mxu0 }
  0xf5   : > { %v264_v28 = vadd.f32 %v263_v27, %v177_v23  ;;  %v265_v29 = vpop.f32.mrb[2].mxu0  ;;  %v304_v30 = vpop.f32.mrb[0].mxu1 }
  0xf6   : > { %v266_v31 = vadd.f32 %v265_v29, %v182_v25  ;;  %v305_v32 = vadd.f32 %v304_v30, %v177_v23  ;;  %v267_v33 = vpop.f32.mrb[3].mxu0  ;;  %v306_v34 = vpop.f32.mrb[1].mxu1 }
  0xf7   : > { %v444_v35 = vpack.c.bf16 %v264_v28, %v262_v26  ;;  %v268_v36 = vadd.f32 %v267_v33, %v182_v25  ;;  %v307_v37 = vadd.f32 %v306_v34, %v177_v23  ;;  %v308_v38 = vpop.f32.mrb[2].mxu1  ;;  %347 = sbr.rel (!%p551_p4) target bundleno = 262 (0x106), region = 36 }
  0xf8   : > { %v309_v39 = vadd.f32 %v308_v38, %v182_v25  ;;  %v310_v40 = vpop.f32.mrb[3].mxu1 }
  0xf9   : > { %337 = vst [vmem:[%s160_s7] sm:$0xff] %v444_v35  ;;  %v446_v41 = vpack.c.bf16 %v268_v36, %v266_v31  ;;  %v445_v42 = vpack.c.bf16 %v307_v37, %v305_v32  ;;  %v311_v43 = vadd.f32 %v310_v40, %v182_v25 }
  0xfb   : > { %339 = vst [vmem:[%s160_s7 + $0x10] sm:$0xff] %v446_v41  ;;  %338 = vst [vmem:[%s160_s7 + $0x8] sm:$0xff] %v445_v42  ;;  %v447_v44 = vpack.c.bf16 %v311_v43, %v309_v39 }
  0xfd   : > { %340 = vst [vmem:[%s160_s7 + $0x18] sm:$0xff] %v447_v44 }
 0x100   : > { %v363_v45 = vld [vmem:[%s160_s7] sm:$0xff] }
 0x101   : > { %364 = vst [vmem:[%s350_s11] sm:$0xff] %v363_v45 }
 0x102   : > { %v365_v46 = vld [vmem:[%s160_s7 + $0x8] sm:$0xff]  ;;  %v367_v47 = vld [vmem:[%s160_s7 + $0x10] sm:$0xff] }
 0x103   : > { %366 = vst [vmem:[%s350_s11 + $0x8] sm:$0xff] %v365_v46  ;;  %368 = vst [vmem:[%s350_s11 + $0x40] sm:$0xff] %v367_v47 }
 0x104   : > { %v369_v48 = vld [vmem:[%s160_s7 + $0x18] sm:$0xff] }
 0x105   : > { %370 = vst [vmem:[%s350_s11 + $0x48] sm:$0xff] %v369_v48 }
 0x106 PF: > { %p10_p8 = scmp.ge.s32.totalorder %s541_s16, 6   ;;  %s590_s12 = smov %s497_s13 }
 0x107   : > { %s591_s13 = smov %s549_s19  ;;  %s592_s14 = smov %s541_s16 }
 0x108   :  { %12 = sbr.rel (!%p10_p8) target bundleno = 2 (0x2), region = 85 }

// kernel: _lambda_.11
= control target key start
LH: loop header
LB: loop body
LE: loop exit
PB: predicated region body
PF: predicated region fallthrough
CT: control target
= control target key end

     0   :  { %s2539_s18 = smov 0   ;;  %s2541_s19 = smov 0   ;;  %s3075_s0 = inlined_call_operand.vmem [shape: bf16[8,512], index: 0, kind: input, shape index: {}]   ;;  %s3076_s1 = inlined_call_operand.vmem [shape: bf16[8,512], index: 1, kind: input, shape index: {}]   ;;  %s3077_s2 = inlined_call_operand.vmem [shape: bf16[512,512], index: 2, kind: input, shape index: {}]   ;;  %s3078_s3 = inlined_call_operand.vmem [shape: bf16[512,512], index: 3, kind: input, shape index: {}]   ;;  %s3079_s4 = inlined_call_operand.vmem [shape: f32[8,512], index: 4, kind: output, shape index: {0}]   ;;  %s3080_s5 = inlined_call_operand.vmem [shape: f32[8,512], index: 5, kind: output, shape index: {1}]  }
   0x1   :  { %s2543_s20 = smov 0  }
   0x2 LB: > { %s2084_s21 = sadd.s32 4294967295, %s2507_s20   ;;  %s2556_s22 = sadd.s32 1, %s2507_s20   ;;  %s2507_s20 = sphi %s2543_s20, %s3084_s20   ;;  %s2503_s19 = sphi %s2541_s19, %s3083_s19   ;;  %s2499_s18 = sphi %s2539_s18, %s3082_s18  }
   0x3   : > { %s62_s23 = ssub.s32 %s2507_s20, %s2556_s22  ;;  %s65_s24 = sadd.s32 1, %s2503_s19 }
   0x4   : > { %p63_p0 = scmp.eq.s32.totalorder %s62_s23, 0  ;;  %p72_p1 = scmp.ne.s32.totalorder %s2503_s19, %s2499_s18 }
   0x5   : > { %p73_p2 = scmp.eq.s32.totalorder %s2507_s20, 0  ;;  %p2087_p4 = scmp.ge.s32.totalorder %s2507_s20, 2 }
   0x6   : > { %s2565_s25 = scalar_select %p63_p0, %s2503_s19, %s65_s24  }
   0x7   : > { %p2567_p3 = por %p73_p2, %p72_p1  ;;  %182 = sbr.rel (%p2087_p4) target bundleno = 86 (0x56), region = 24 }
   0xe   : > { %185 = sbr.rel (!%p2567_p3) target bundleno = 50 (0x32), region = 28  ;;  %s187_s27 = sand.u32 (%p2567_p3), 1, %s2503_s19  }
   0xf   : > { %s2239_s28 = sshll.u32 (%p2567_p3), %s2507_s20, 3  ;;  %s2088_s29 = sshll.u32 (%p2567_p3), %s187_s27, 9 }
  0x10   : > { %s2579_s7 = scalar_lea.vmem (%p2567_p3), %s3077_s2, %s2239_s28  ;;  %s2584_s8 = scalar_lea.vmem (%p2567_p3), [#allocation2], %s2088_s29 }
  0x11   : > { %v346_v0 = vld [vmem:[%s2579_s7] sm:$0xff] (%p2567_p3)  ;;  %v348_v1 = vld [vmem:[%s2579_s7 + $0x10] sm:$0xff] (%p2567_p3) }
  0x12   : > { %v350_v2 = vld [vmem:[%s2579_s7 + $0x20] sm:$0xff] (%p2567_p3)  ;;  %347 = vst [vmem:[%s2584_s8] sm:$0xff] (%p2567_p3), %v346_v0  ;;  %349 = vst [vmem:[%s2584_s8 + $0x8] sm:$0xff] (%p2567_p3), %v348_v1  ;;  %v352_v3 = vld [vmem:[%s2579_s7 + $0x30] sm:$0xff] (%p2567_p3) }
  0x13   : > { %351 = vst [vmem:[%s2584_s8 + $0x10] sm:$0xff] (%p2567_p3), %v350_v2  ;;  %v354_v4 = vld [vmem:[%s2579_s7 + $0x40] sm:$0xff] (%p2567_p3)  ;;  %v356_v5 = vld [vmem:[%s2579_s7 + $0x50] sm:$0xff] (%p2567_p3)  ;;  %353 = vst [vmem:[%s2584_s8 + $0x18] sm:$0xff] (%p2567_p3), %v352_v3 }
  0x14   : > { %355 = vst [vmem:[%s2584_s8 + $0x20] sm:$0xff] (%p2567_p3), %v354_v4  ;;  %357 = vst [vmem:[%s2584_s8 + $0x28] sm:$0xff] (%p2567_p3), %v356_v5  ;;  %v358_v6 = vld [vmem:[%s2579_s7 + $0x60] sm:$0xff] (%p2567_p3)  ;;  %v360_v7 = vld [vmem:[%s2579_s7 + $0x70] sm:$0xff] (%p2567_p3) }
  0x15   : > { %v362_v8 = vld [vmem:[%s2579_s7 + $0x80] sm:$0xff]  ;;  %359 = vst [vmem:[%s2584_s8 + $0x30] sm:$0xff] %v358_v6  ;;  %361 = vst [vmem:[%s2584_s8 + $0x38] sm:$0xff] %v360_v7  ;;  %v364_v9 = vld [vmem:[%s2579_s7 + $0x90] sm:$0xff] }
  0x16   : > { %363 = vst [vmem:[%s2584_s8 + $0x40] sm:$0xff] %v362_v8  ;;  %v366_v10 = vld [vmem:[%s2579_s7 + $0xa0] sm:$0xff]  ;;  %v368_v11 = vld [vmem:[%s2579_s7 + $0xb0] sm:$0xff]  ;;  %365 = vst [vmem:[%s2584_s8 + $0x48] sm:$0xff] %v364_v9 }
  0x17   : > { %367 = vst [vmem:[%s2584_s8 + $0x50] sm:$0xff] %v366_v10  ;;  %369 = vst [vmem:[%s2584_s8 + $0x58] sm:$0xff] %v368_v11  ;;  %v370_v12 = vld [vmem:[%s2579_s7 + $0xc0] sm:$0xff]  ;;  %v372_v13 = vld [vmem:[%s2579_s7 + $0xd0] sm:$0xff] }
  0x18   : > { %v374_v14 = vld [vmem:[%s2579_s7 + $0xe0] sm:$0xff]  ;;  %371 = vst [vmem:[%s2584_s8 + $0x60] sm:$0xff] %v370_v12  ;;  %373 = vst [vmem:[%s2584_s8 + $0x68] sm:$0xff] %v372_v13  ;;  %v376_v15 = vld [vmem:[%s2579_s7 + $0xf0] sm:$0xff] }
  0x19   : > { %375 = vst [vmem:[%s2584_s8 + $0x70] sm:$0xff] %v374_v14  ;;  %v378_v16 = vld [vmem:[%s2579_s7 + $0x100] sm:$0xff]  ;;  %v380_v17 = vld [vmem:[%s2579_s7 + $0x110] sm:$0xff]  ;;  %377 = vst [vmem:[%s2584_s8 + $0x78] sm:$0xff] %v376_v15 }
  0x1a   : > { %379 = vst [vmem:[%s2584_s8 + $0x80] sm:$0xff] %v378_v16  ;;  %381 = vst [vmem:[%s2584_s8 + $0x88] sm:$0xff] %v380_v17  ;;  %v382_v18 = vld [vmem:[%s2579_s7 + $0x120] sm:$0xff]  ;;  %v384_v19 = vld [vmem:[%s2579_s7 + $0x130] sm:$0xff] }
  0x1b   : > { %v386_v20 = vld [vmem:[%s2579_s7 + $0x140] sm:$0xff]  ;;  %383 = vst [vmem:[%s2584_s8 + $0x90] sm:$0xff] %v382_v18  ;;  %385 = vst [vmem:[%s2584_s8 + $0x98] sm:$0xff] %v384_v19  ;;  %v388_v21 = vld [vmem:[%s2579_s7 + $0x150] sm:$0xff] }
  0x1c   : > { %387 = vst [vmem:[%s2584_s8 + $0xa0] sm:$0xff] %v386_v20  ;;  %v390_v22 = vld [vmem:[%s2579_s7 + $0x160] sm:$0xff]  ;;  %v392_v23 = vld [vmem:[%s2579_s7 + $0x170] sm:$0xff]  ;;  %389 = vst [vmem:[%s2584_s8 + $0xa8] sm:$0xff] %v388_v21 }
  0x1d   : > { %391 = vst [vmem:[%s2584_s8 + $0xb0] sm:$0xff] %v390_v22  ;;  %393 = vst [vmem:[%s2584_s8 + $0xb8] sm:$0xff] %v392_v23  ;;  %v394_v24 = vld [vmem:[%s2579_s7 + $0x180] sm:$0xff]  ;;  %v396_v25 = vld [vmem:[%s2579_s7 + $0x190] sm:$0xff] }
  0x1e   : > { %v398_v26 = vld [vmem:[%s2579_s7 + $0x1a0] sm:$0xff]  ;;  %395 = vst [vmem:[%s2584_s8 + $0xc0] sm:$0xff] %v394_v24  ;;  %397 = vst [vmem:[%s2584_s8 + $0xc8] sm:$0xff] %v396_v25  ;;  %v400_v27 = vld [vmem:[%s2579_s7 + $0x1b0] sm:$0xff] }
  0x1f   : > { %399 = vst [vmem:[%s2584_s8 + $0xd0] sm:$0xff] %v398_v26  ;;  %v402_v28 = vld [vmem:[%s2579_s7 + $0x1c0] sm:$0xff]  ;;  %v404_v29 = vld [vmem:[%s2579_s7 + $0x1d0] sm:$0xff]  ;;  %401 = vst [vmem:[%s2584_s8 + $0xd8] sm:$0xff] %v400_v27 }
  0x20   : > { %403 = vst [vmem:[%s2584_s8 + $0xe0] sm:$0xff] %v402_v28  ;;  %405 = vst [vmem:[%s2584_s8 + $0xe8] sm:$0xff] %v404_v29  ;;  %v406_v30 = vld [vmem:[%s2579_s7 + $0x1e0] sm:$0xff]  ;;  %v408_v31 = vld [vmem:[%s2579_s7 + $0x1f0] sm:$0xff] }
  0x21   : > { %v410_v32 = vld [vmem:[%s2579_s7 + $0x200] sm:$0xff]  ;;  %407 = vst [vmem:[%s2584_s8 + $0xf0] sm:$0xff] %v406_v30  ;;  %409 = vst [vmem:[%s2584_s8 + $0xf8] sm:$0xff] %v408_v31  ;;  %v412_v33 = vld [vmem:[%s2579_s7 + $0x210] sm:$0xff] }
  0x22   : > { %411 = vst [vmem:[%s2584_s8 + $0x100] sm:$0xff] %v410_v32  ;;  %v414_v34 = vld [vmem:[%s2579_s7 + $0x220] sm:$0xff]  ;;  %v416_v35 = vld [vmem:[%s2579_s7 + $0x230] sm:$0xff]  ;;  %413 = vst [vmem:[%s2584_s8 + $0x108] sm:$0xff] %v412_v33 }
  0x23   : > { %415 = vst [vmem:[%s2584_s8 + $0x110] sm:$0xff] %v414_v34  ;;  %417 = vst [vmem:[%s2584_s8 + $0x118] sm:$0xff] %v416_v35  ;;  %v418_v36 = vld [vmem:[%s2579_s7 + $0x240] sm:$0xff]  ;;  %v420_v37 = vld [vmem:[%s2579_s7 + $0x250] sm:$0xff] }
  0x24   : > { %v422_v38 = vld [vmem:[%s2579_s7 + $0x260] sm:$0xff]  ;;  %419 = vst [vmem:[%s2584_s8 + $0x120] sm:$0xff] %v418_v36  ;;  %421 = vst [vmem:[%s2584_s8 + $0x128] sm:$0xff] %v420_v37  ;;  %v424_v39 = vld [vmem:[%s2579_s7 + $0x270] sm:$0xff] }
  0x25   : > { %423 = vst [vmem:[%s2584_s8 + $0x130] sm:$0xff] %v422_v38  ;;  %v426_v40 = vld [vmem:[%s2579_s7 + $0x280] sm:$0xff]  ;;  %v428_v41 = vld [vmem:[%s2579_s7 + $0x290] sm:$0xff]  ;;  %425 = vst [vmem:[%s2584_s8 + $0x138] sm:$0xff] %v424_v39 }
  0x26   : > { %427 = vst [vmem:[%s2584_s8 + $0x140] sm:$0xff] %v426_v40  ;;  %429 = vst [vmem:[%s2584_s8 + $0x148] sm:$0xff] %v428_v41  ;;  %v430_v42 = vld [vmem:[%s2579_s7 + $0x2a0] sm:$0xff]  ;;  %v432_v43 = vld [vmem:[%s2579_s7 + $0x2b0] sm:$0xff] }
  0x27   : > { %v434_v44 = vld [vmem:[%s2579_s7 + $0x2c0] sm:$0xff]  ;;  %431 = vst [vmem:[%s2584_s8 + $0x150] sm:$0xff] %v430_v42  ;;  %433 = vst [vmem:[%s2584_s8 + $0x158] sm:$0xff] %v432_v43  ;;  %v436_v45 = vld [vmem:[%s2579_s7 + $0x2d0] sm:$0xff] }
  0x28   : > { %435 = vst [vmem:[%s2584_s8 + $0x160] sm:$0xff] %v434_v44  ;;  %v438_v46 = vld [vmem:[%s2579_s7 + $0x2e0] sm:$0xff]  ;;  %v440_v47 = vld [vmem:[%s2579_s7 + $0x2f0] sm:$0xff]  ;;  %437 = vst [vmem:[%s2584_s8 + $0x168] sm:$0xff] %v436_v45 }
  0x29   : > { %439 = vst [vmem:[%s2584_s8 + $0x170] sm:$0xff] %v438_v46  ;;  %441 = vst [vmem:[%s2584_s8 + $0x178] sm:$0xff] %v440_v47  ;;  %v442_v48 = vld [vmem:[%s2579_s7 + $0x300] sm:$0xff]  ;;  %v444_v49 = vld [vmem:[%s2579_s7 + $0x310] sm:$0xff] }
  0x2a   : > { %v446_v50 = vld [vmem:[%s2579_s7 + $0x320] sm:$0xff]  ;;  %443 = vst [vmem:[%s2584_s8 + $0x180] sm:$0xff] %v442_v48  ;;  %445 = vst [vmem:[%s2584_s8 + $0x188] sm:$0xff] %v444_v49  ;;  %v448_v51 = vld [vmem:[%s2579_s7 + $0x330] sm:$0xff] }
  0x2b   : > { %447 = vst [vmem:[%s2584_s8 + $0x190] sm:$0xff] %v446_v50  ;;  %v450_v52 = vld [vmem:[%s2579_s7 + $0x340] sm:$0xff]  ;;  %v452_v53 = vld [vmem:[%s2579_s7 + $0x350] sm:$0xff]  ;;  %449 = vst [vmem:[%s2584_s8 + $0x198] sm:$0xff] %v448_v51 }
  0x2c   : > { %451 = vst [vmem:[%s2584_s8 + $0x1a0] sm:$0xff] %v450_v52  ;;  %453 = vst [vmem:[%s2584_s8 + $0x1a8] sm:$0xff] %v452_v53  ;;  %v454_v54 = vld [vmem:[%s2579_s7 + $0x360] sm:$0xff]  ;;  %v456_v55 = vld [vmem:[%s2579_s7 + $0x370] sm:$0xff] }
  0x2d   : > { %v458_v56 = vld [vmem:[%s2579_s7 + $0x380] sm:$0xff]  ;;  %455 = vst [vmem:[%s2584_s8 + $0x1b0] sm:$0xff] %v454_v54  ;;  %457 = vst [vmem:[%s2584_s8 + $0x1b8] sm:$0xff] %v456_v55  ;;  %v460_v57 = vld [vmem:[%s2579_s7 + $0x390] sm:$0xff] }
  0x2e   : > { %459 = vst [vmem:[%s2584_s8 + $0x1c0] sm:$0xff] %v458_v56  ;;  %v462_v58 = vld [vmem:[%s2579_s7 + $0x3a0] sm:$0xff]  ;;  %v464_v59 = vld [vmem:[%s2579_s7 + $0x3b0] sm:$0xff]  ;;  %461 = vst [vmem:[%s2584_s8 + $0x1c8] sm:$0xff] %v460_v57 }
  0x2f   : > { %463 = vst [vmem:[%s2584_s8 + $0x1d0] sm:$0xff] %v462_v58  ;;  %465 = vst [vmem:[%s2584_s8 + $0x1d8] sm:$0xff] %v464_v59  ;;  %v466_v60 = vld [vmem:[%s2579_s7 + $0x3c0] sm:$0xff]  ;;  %v468_v61 = vld [vmem:[%s2579_s7 + $0x3d0] sm:$0xff] }
  0x30   : > { %v470_v62 = vld [vmem:[%s2579_s7 + $0x3e0] sm:$0xff]  ;;  %467 = vst [vmem:[%s2584_s8 + $0x1e0] sm:$0xff] %v466_v60  ;;  %469 = vst [vmem:[%s2584_s8 + $0x1e8] sm:$0xff] %v468_v61  ;;  %v472_v63 = vld [vmem:[%s2579_s7 + $0x3f0] sm:$0xff] }
  0x31   : > { %471 = vst [vmem:[%s2584_s8 + $0x1f0] sm:$0xff] %v470_v62  ;;  %473 = vst [vmem:[%s2584_s8 + $0x1f8] sm:$0xff] %v472_v63 }
  0x32 PF: > { %479 = sbr.rel (!%p2567_p3) target bundleno = 86 (0x56), region = 66  ;;  %s481_s9 = sand.u32 (%p2567_p3), 1, %s2503_s19  }
  0x33   : > { %s2240_s10 = sshll.u32 (%p2567_p3), %s2507_s20, 3  ;;  %s2091_s11 = sshll.u32 (%p2567_p3), %s481_s9, 9 }
  0x34   : > { %s2718_s14 = scalar_lea.vmem (%p2567_p3), %s3078_s3, %s2240_s10  ;;  %s2723_s15 = scalar_lea.vmem (%p2567_p3), [#allocation3], %s2091_s11 }
  0x35   : > { %v640_v0 = vld [vmem:[%s2718_s14] sm:$0xff] (%p2567_p3)  ;;  %v642_v1 = vld [vmem:[%s2718_s14 + $0x10] sm:$0xff] (%p2567_p3) }
  0x36   : > { %v644_v2 = vld [vmem:[%s2718_s14 + $0x20] sm:$0xff] (%p2567_p3)  ;;  %641 = vst [vmem:[%s2723_s15] sm:$0xff] (%p2567_p3), %v640_v0  ;;  %643 = vst [vmem:[%s2723_s15 + $0x8] sm:$0xff] (%p2567_p3), %v642_v1  ;;  %v646_v3 = vld [vmem:[%s2718_s14 + $0x30] sm:$0xff] (%p2567_p3) }
  0x37   : > { %645 = vst [vmem:[%s2723_s15 + $0x10] sm:$0xff] (%p2567_p3), %v644_v2  ;;  %v648_v4 = vld [vmem:[%s2718_s14 + $0x40] sm:$0xff] (%p2567_p3)  ;;  %v650_v5 = vld [vmem:[%s2718_s14 + $0x50] sm:$0xff] (%p2567_p3)  ;;  %647 = vst [vmem:[%s2723_s15 + $0x18] sm:$0xff] (%p2567_p3), %v646_v3 }
  0x38   : > { %649 = vst [vmem:[%s2723_s15 + $0x20] sm:$0xff] (%p2567_p3), %v648_v4  ;;  %651 = vst [vmem:[%s2723_s15 + $0x28] sm:$0xff] (%p2567_p3), %v650_v5  ;;  %v652_v6 = vld [vmem:[%s2718_s14 + $0x60] sm:$0xff] (%p2567_p3)  ;;  %v654_v7 = vld [vmem:[%s2718_s14 + $0x70] sm:$0xff] (%p2567_p3) }
  0x39   : > { %v656_v8 = vld [vmem:[%s2718_s14 + $0x80] sm:$0xff]  ;;  %653 = vst [vmem:[%s2723_s15 + $0x30] sm:$0xff] %v652_v6  ;;  %655 = vst [vmem:[%s2723_s15 + $0x38] sm:$0xff] %v654_v7  ;;  %v658_v9 = vld [vmem:[%s2718_s14 + $0x90] sm:$0xff] }
  0x3a   : > { %657 = vst [vmem:[%s2723_s15 + $0x40] sm:$0xff] %v656_v8  ;;  %v660_v10 = vld [vmem:[%s2718_s14 + $0xa0] sm:$0xff]  ;;  %v662_v11 = vld [vmem:[%s2718_s14 + $0xb0] sm:$0xff]  ;;  %659 = vst [vmem:[%s2723_s15 + $0x48] sm:$0xff] %v658_v9 }
  0x3b   : > { %661 = vst [vmem:[%s2723_s15 + $0x50] sm:$0xff] %v660_v10  ;;  %663 = vst [vmem:[%s2723_s15 + $0x58] sm:$0xff] %v662_v11  ;;  %v664_v12 = vld [vmem:[%s2718_s14 + $0xc0] sm:$0xff]  ;;  %v666_v13 = vld [vmem:[%s2718_s14 + $0xd0] sm:$0xff] }
  0x3c   : > { %v668_v14 = vld [vmem:[%s2718_s14 + $0xe0] sm:$0xff]  ;;  %665 = vst [vmem:[%s2723_s15 + $0x60] sm:$0xff] %v664_v12  ;;  %667 = vst [vmem:[%s2723_s15 + $0x68] sm:$0xff] %v666_v13  ;;  %v670_v15 = vld [vmem:[%s2718_s14 + $0xf0] sm:$0xff] }
  0x3d   : > { %669 = vst [vmem:[%s2723_s15 + $0x70] sm:$0xff] %v668_v14  ;;  %v672_v16 = vld [vmem:[%s2718_s14 + $0x100] sm:$0xff]  ;;  %v674_v17 = vld [vmem:[%s2718_s14 + $0x110] sm:$0xff]  ;;  %671 = vst [vmem:[%s2723_s15 + $0x78] sm:$0xff] %v670_v15 }
  0x3e   : > { %673 = vst [vmem:[%s2723_s15 + $0x80] sm:$0xff] %v672_v16  ;;  %675 = vst [vmem:[%s2723_s15 + $0x88] sm:$0xff] %v674_v17  ;;  %v676_v18 = vld [vmem:[%s2718_s14 + $0x120] sm:$0xff]  ;;  %v678_v19 = vld [vmem:[%s2718_s14 + $0x130] sm:$0xff] }
  0x3f   : > { %v680_v20 = vld [vmem:[%s2718_s14 + $0x140] sm:$0xff]  ;;  %677 = vst [vmem:[%s2723_s15 + $0x90] sm:$0xff] %v676_v18  ;;  %679 = vst [vmem:[%s2723_s15 + $0x98] sm:$0xff] %v678_v19  ;;  %v682_v21 = vld [vmem:[%s2718_s14 + $0x150] sm:$0xff] }
  0x40   : > { %681 = vst [vmem:[%s2723_s15 + $0xa0] sm:$0xff] %v680_v20  ;;  %v684_v22 = vld [vmem:[%s2718_s14 + $0x160] sm:$0xff]  ;;  %v686_v23 = vld [vmem:[%s2718_s14 + $0x170] sm:$0xff]  ;;  %683 = vst [vmem:[%s2723_s15 + $0xa8] sm:$0xff] %v682_v21 }
  0x41   : > { %685 = vst [vmem:[%s2723_s15 + $0xb0] sm:$0xff] %v684_v22  ;;  %687 = vst [vmem:[%s2723_s15 + $0xb8] sm:$0xff] %v686_v23  ;;  %v688_v24 = vld [vmem:[%s2718_s14 + $0x180] sm:$0xff]  ;;  %v690_v25 = vld [vmem:[%s2718_s14 + $0x190] sm:$0xff] }
  0x42   : > { %v692_v26 = vld [vmem:[%s2718_s14 + $0x1a0] sm:$0xff]  ;;  %689 = vst [vmem:[%s2723_s15 + $0xc0] sm:$0xff] %v688_v24  ;;  %691 = vst [vmem:[%s2723_s15 + $0xc8] sm:$0xff] %v690_v25  ;;  %v694_v27 = vld [vmem:[%s2718_s14 + $0x1b0] sm:$0xff] }
  0x43   : > { %693 = vst [vmem:[%s2723_s15 + $0xd0] sm:$0xff] %v692_v26  ;;  %v696_v28 = vld [vmem:[%s2718_s14 + $0x1c0] sm:$0xff]  ;;  %v698_v29 = vld [vmem:[%s2718_s14 + $0x1d0] sm:$0xff]  ;;  %695 = vst [vmem:[%s2723_s15 + $0xd8] sm:$0xff] %v694_v27 }
  0x44   : > { %697 = vst [vmem:[%s2723_s15 + $0xe0] sm:$0xff] %v696_v28  ;;  %699 = vst [vmem:[%s2723_s15 + $0xe8] sm:$0xff] %v698_v29  ;;  %v700_v30 = vld [vmem:[%s2718_s14 + $0x1e0] sm:$0xff]  ;;  %v702_v31 = vld [vmem:[%s2718_s14 + $0x1f0] sm:$0xff] }
  0x45   : > { %v704_v32 = vld [vmem:[%s2718_s14 + $0x200] sm:$0xff]  ;;  %701 = vst [vmem:[%s2723_s15 + $0xf0] sm:$0xff] %v700_v30  ;;  %703 = vst [vmem:[%s2723_s15 + $0xf8] sm:$0xff] %v702_v31  ;;  %v706_v33 = vld [vmem:[%s2718_s14 + $0x210] sm:$0xff] }
  0x46   : > { %705 = vst [vmem:[%s2723_s15 + $0x100] sm:$0xff] %v704_v32  ;;  %v708_v34 = vld [vmem:[%s2718_s14 + $0x220] sm:$0xff]  ;;  %v710_v35 = vld [vmem:[%s2718_s14 + $0x230] sm:$0xff]  ;;  %707 = vst [vmem:[%s2723_s15 + $0x108] sm:$0xff] %v706_v33 }
  0x47   : > { %709 = vst [vmem:[%s2723_s15 + $0x110] sm:$0xff] %v708_v34  ;;  %711 = vst [vmem:[%s2723_s15 + $0x118] sm:$0xff] %v710_v35  ;;  %v712_v36 = vld [vmem:[%s2718_s14 + $0x240] sm:$0xff]  ;;  %v714_v37 = vld [vmem:[%s2718_s14 + $0x250] sm:$0xff] }
  0x48   : > { %v716_v38 = vld [vmem:[%s2718_s14 + $0x260] sm:$0xff]  ;;  %713 = vst [vmem:[%s2723_s15 + $0x120] sm:$0xff] %v712_v36  ;;  %715 = vst [vmem:[%s2723_s15 + $0x128] sm:$0xff] %v714_v37  ;;  %v718_v39 = vld [vmem:[%s2718_s14 + $0x270] sm:$0xff] }
  0x49   : > { %717 = vst [vmem:[%s2723_s15 + $0x130] sm:$0xff] %v716_v38  ;;  %v720_v40 = vld [vmem:[%s2718_s14 + $0x280] sm:$0xff]  ;;  %v722_v41 = vld [vmem:[%s2718_s14 + $0x290] sm:$0xff]  ;;  %719 = vst [vmem:[%s2723_s15 + $0x138] sm:$0xff] %v718_v39 }
  0x4a   : > { %721 = vst [vmem:[%s2723_s15 + $0x140] sm:$0xff] %v720_v40  ;;  %723 = vst [vmem:[%s2723_s15 + $0x148] sm:$0xff] %v722_v41  ;;  %v724_v42 = vld [vmem:[%s2718_s14 + $0x2a0] sm:$0xff]  ;;  %v726_v43 = vld [vmem:[%s2718_s14 + $0x2b0] sm:$0xff] }
  0x4b   : > { %v728_v44 = vld [vmem:[%s2718_s14 + $0x2c0] sm:$0xff]  ;;  %725 = vst [vmem:[%s2723_s15 + $0x150] sm:$0xff] %v724_v42  ;;  %727 = vst [vmem:[%s2723_s15 + $0x158] sm:$0xff] %v726_v43  ;;  %v730_v45 = vld [vmem:[%s2718_s14 + $0x2d0] sm:$0xff] }
  0x4c   : > { %729 = vst [vmem:[%s2723_s15 + $0x160] sm:$0xff] %v728_v44  ;;  %v732_v46 = vld [vmem:[%s2718_s14 + $0x2e0] sm:$0xff]  ;;  %v734_v47 = vld [vmem:[%s2718_s14 + $0x2f0] sm:$0xff]  ;;  %731 = vst [vmem:[%s2723_s15 + $0x168] sm:$0xff] %v730_v45 }
  0x4d   : > { %733 = vst [vmem:[%s2723_s15 + $0x170] sm:$0xff] %v732_v46  ;;  %735 = vst [vmem:[%s2723_s15 + $0x178] sm:$0xff] %v734_v47  ;;  %v736_v48 = vld [vmem:[%s2718_s14 + $0x300] sm:$0xff]  ;;  %v738_v49 = vld [vmem:[%s2718_s14 + $0x310] sm:$0xff] }
  0x4e   : > { %v740_v50 = vld [vmem:[%s2718_s14 + $0x320] sm:$0xff]  ;;  %737 = vst [vmem:[%s2723_s15 + $0x180] sm:$0xff] %v736_v48  ;;  %739 = vst [vmem:[%s2723_s15 + $0x188] sm:$0xff] %v738_v49  ;;  %v742_v51 = vld [vmem:[%s2718_s14 + $0x330] sm:$0xff] }
  0x4f   : > { %741 = vst [vmem:[%s2723_s15 + $0x190] sm:$0xff] %v740_v50  ;;  %v744_v52 = vld [vmem:[%s2718_s14 + $0x340] sm:$0xff]  ;;  %v746_v53 = vld [vmem:[%s2718_s14 + $0x350] sm:$0xff]  ;;  %743 = vst [vmem:[%s2723_s15 + $0x198] sm:$0xff] %v742_v51 }
  0x50   : > { %745 = vst [vmem:[%s2723_s15 + $0x1a0] sm:$0xff] %v744_v52  ;;  %747 = vst [vmem:[%s2723_s15 + $0x1a8] sm:$0xff] %v746_v53  ;;  %v748_v54 = vld [vmem:[%s2718_s14 + $0x360] sm:$0xff]  ;;  %v750_v55 = vld [vmem:[%s2718_s14 + $0x370] sm:$0xff] }
  0x51   : > { %v752_v56 = vld [vmem:[%s2718_s14 + $0x380] sm:$0xff]  ;;  %749 = vst [vmem:[%s2723_s15 + $0x1b0] sm:$0xff] %v748_v54  ;;  %751 = vst [vmem:[%s2723_s15 + $0x1b8] sm:$0xff] %v750_v55  ;;  %v754_v57 = vld [vmem:[%s2718_s14 + $0x390] sm:$0xff] }
  0x52   : > { %753 = vst [vmem:[%s2723_s15 + $0x1c0] sm:$0xff] %v752_v56  ;;  %v756_v58 = vld [vmem:[%s2718_s14 + $0x3a0] sm:$0xff]  ;;  %v758_v59 = vld [vmem:[%s2718_s14 + $0x3b0] sm:$0xff]  ;;  %755 = vst [vmem:[%s2723_s15 + $0x1c8] sm:$0xff] %v754_v57 }
  0x53   : > { %757 = vst [vmem:[%s2723_s15 + $0x1d0] sm:$0xff] %v756_v58  ;;  %759 = vst [vmem:[%s2723_s15 + $0x1d8] sm:$0xff] %v758_v59  ;;  %v760_v60 = vld [vmem:[%s2718_s14 + $0x3c0] sm:$0xff]  ;;  %v762_v61 = vld [vmem:[%s2718_s14 + $0x3d0] sm:$0xff] }
  0x54   : > { %v764_v62 = vld [vmem:[%s2718_s14 + $0x3e0] sm:$0xff]  ;;  %761 = vst [vmem:[%s2723_s15 + $0x1e0] sm:$0xff] %v760_v60  ;;  %763 = vst [vmem:[%s2723_s15 + $0x1e8] sm:$0xff] %v762_v61  ;;  %v766_v63 = vld [vmem:[%s2718_s14 + $0x3f0] sm:$0xff] }
  0x55   : > { %765 = vst [vmem:[%s2723_s15 + $0x1f0] sm:$0xff] %v764_v62  ;;  %767 = vst [vmem:[%s2723_s15 + $0x1f8] sm:$0xff] %v766_v63 }
  0x56 PF: > { %p2094_p5 = scmp.ge.s32.totalorder %s2507_s20, 1  ;;  %p772_p6 = scmp.lt.s32.totalorder %s2507_s20, 3 }
  0x58   : > { %p773_p7 = pnand %p2094_p5, %p772_p6 }
  0x59   : > { %s779_s16 = sand.u32 (!%p773_p7), 1, %s2499_s18   ;;  %v2856_v0 = vld [vmem:[%s3075_s0] sm:$0xff] (!%p773_p7)  ;;  %v2925_v39 = vld [vmem:[%s3075_s0 + $0x8] sm:$0xff] (!%p773_p7)  ;;  %s2097_s8 = sshll.u32 (!%p773_p7), %s2084_s21, 1 }
  0x5a   : > { %776 = sbr.rel (%p773_p7) target bundleno = 565 (0x235), region = 104  ;;  %v2861_v1 = vld [vmem:[%s3076_s1] sm:$0xff] (!%p773_p7)  ;;  %s2863_s27 = sshll.u32 (!%p773_p7), %s779_s16, 9  ;;  %v2867_v2 = vcombine.high (!%p773_p7), %v2856_v0, %v2856_v0  ;;  %v2916_v37 = vcombine.low (!%p773_p7), %v2856_v0, %v2856_v0  ;;  %v2930_v40 = vld [vmem:[%s3076_s1 + $0x8] sm:$0xff] (!%p773_p7)  ;;  %v2936_v43 = vcombine.high (!%p773_p7), %v2925_v39, %v2925_v39 }
  0x5b   : > { %v2871_v3 = vcombine.high (!%p773_p7), %v2861_v1, %v2861_v1  ;;  %s2874_s18 = scalar_lea.vmem (!%p773_p7), [#allocation2], %s2863_s27  ;;  %s2902_s28 = scalar_lea.vmem (!%p773_p7), [#allocation3], %s2863_s27  ;;  %v2920_v38 = vcombine.low (!%p773_p7), %v2861_v1, %v2861_v1  ;;  %v2940_v44 = vcombine.high (!%p773_p7), %v2930_v40, %v2930_v40 }
  0x5c   : > { %v2285_v4 = vld [vmem:[%s2874_s18 + $0x4] ss:$8 sps:$4 sm:$0xff] (!%p773_p7)   ;;  %1334 = vmatprep.mubr.bf16.mxu1 (!%p773_p7), %v2867_v2  ;;  %v2287_v5 = vld [vmem:[%s2874_s18] ss:$8 sps:$4 sm:$0xff] (!%p773_p7)   ;;  %v2288_v6 = vld [vmem:[%s2874_s18 + $0x14] ss:$8 sps:$4 sm:$0xff] (!%p773_p7)  }
  0x5d   : > { %1832 = vmatprep.mubr.bf16.mxu0 (!%p773_p7), %v2871_v3  ;;  %1302 = vmatprep.subr.bf16.mxu1 (!%p773_p7), %v2285_v4  ;;  %v2290_v7 = vld [vmem:[%s2874_s18 + $0x10] ss:$8 sps:$4 sm:$0xff] (!%p773_p7)   ;;  %v2291_v8 = vld [vmem:[%s2874_s18 + $0x24] ss:$8 sps:$4 sm:$0xff] (!%p773_p7)   ;;  %v2293_v9 = vld [vmem:[%s2874_s18 + $0x20] ss:$8 sps:$4 sm:$0xff] (!%p773_p7)  }
  0x5e   : > { %1800 = vmatprep.subr.bf16.mxu0 (!%p773_p7), %v2285_v4  ;;  %1303 = vmatpush1.bf16.msra.mxu1 (!%p773_p7), %v2287_v5  ;;  %v2294_v10 = vld [vmem:[%s2874_s18 + $0x34] ss:$8 sps:$4 sm:$0xff] (!%p773_p7)   ;;  %v2296_v11 = vld [vmem:[%s2874_s18 + $0x30] ss:$8 sps:$4 sm:$0xff] (!%p773_p7)   ;;  %v2297_v12 = vld [vmem:[%s2874_s18 + $0x44] ss:$8 sps:$4 sm:$0xff] (!%p773_p7)  }
  0x5f   : > { %1801 = vmatpush1.bf16.msra.mxu0 (!%p773_p7), %v2287_v5  ;;  %1304 = vmatprep.subr.bf16.mxu1 (!%p773_p7), %v2288_v6  ;;  %v2299_v13 = vld [vmem:[%s2874_s18 + $0x40] ss:$8 sps:$4 sm:$0xff] (!%p773_p7)   ;;  %v2300_v14 = vld [vmem:[%s2874_s18 + $0x54] ss:$8 sps:$4 sm:$0xff] (!%p773_p7)   ;;  %v2302_v15 = vld [vmem:[%s2874_s18 + $0x50] ss:$8 sps:$4 sm:$0xff] (!%p773_p7)  }
  0x60   : > { %1802 = vmatprep.subr.bf16.mxu0 (!%p773_p7), %v2288_v6  ;;  %v2303_v16 = vld [vmem:[%s2874_s18 + $0x64] ss:$8 sps:$4 sm:$0xff] (!%p773_p7)   ;;  %v2305_v17 = vld [vmem:[%s2874_s18 + $0x60] ss:$8 sps:$4 sm:$0xff] (!%p773_p7)   ;;  %v2306_v18 = vld [vmem:[%s2874_s18 + $0x74] ss:$8 sps:$4 sm:$0xff] (!%p773_p7)  }
  0x61   : > { %v2308_v19 = vld [vmem:[%s2874_s18 + $0x70] ss:$8 sps:$4 sm:$0xff]   ;;  %v2309_v20 = vld [vmem:[%s2874_s18 + $0x84] ss:$8 sps:$4 sm:$0xff]   ;;  %v2311_v21 = vld [vmem:[%s2874_s18 + $0x80] ss:$8 sps:$4 sm:$0xff]  }
  0x62   : > { %1305 = vmatpush1.bf16.msra.mxu1 %v2290_v7  ;;  %v2312_v22 = vld [vmem:[%s2874_s18 + $0x94] ss:$8 sps:$4 sm:$0xff]   ;;  %v2314_v23 = vld [vmem:[%s2874_s18 + $0x90] ss:$8 sps:$4 sm:$0xff]   ;;  %v2315_v24 = vld [vmem:[%s2874_s18 + $0xa4] ss:$8 sps:$4 sm:$0xff]  }
  0x63   : > { %1803 = vmatpush1.bf16.msra.mxu0 %v2290_v7  ;;  %1306 = vmatprep.subr.bf16.mxu1 %v2291_v8  ;;  %v2317_v25 = vld [vmem:[%s2874_s18 + $0xa0] ss:$8 sps:$4 sm:$0xff]   ;;  %v2318_v26 = vld [vmem:[%s2874_s18 + $0xb4] ss:$8 sps:$4 sm:$0xff]   ;;  %v2320_v27 = vld [vmem:[%s2874_s18 + $0xb0] ss:$8 sps:$4 sm:$0xff]  }
  0x64   : > { %1804 = vmatprep.subr.bf16.mxu0 %v2291_v8  ;;  %v2321_v28 = vld [vmem:[%s2874_s18 + $0xc4] ss:$8 sps:$4 sm:$0xff]   ;;  %v2323_v29 = vld [vmem:[%s2874_s18 + $0xc0] ss:$8 sps:$4 sm:$0xff]   ;;  %v2324_v30 = vld [vmem:[%s2874_s18 + $0xd4] ss:$8 sps:$4 sm:$0xff]  }
  0x65   : > { %v2326_v31 = vld [vmem:[%s2874_s18 + $0xd0] ss:$8 sps:$4 sm:$0xff]   ;;  %v2327_v32 = vld [vmem:[%s2874_s18 + $0xe4] ss:$8 sps:$4 sm:$0xff]   ;;  %v2329_v33 = vld [vmem:[%s2874_s18 + $0xe0] ss:$8 sps:$4 sm:$0xff]  }
  0x66   : > { %1307 = vmatpush1.bf16.msra.mxu1 %v2293_v9  ;;  %v2330_v34 = vld [vmem:[%s2874_s18 + $0xf4] ss:$8 sps:$4 sm:$0xff]   ;;  %v2332_v35 = vld [vmem:[%s2874_s18 + $0xf0] ss:$8 sps:$4 sm:$0xff]   ;;  %v2337_v36 = vld [vmem:[%s2874_s18 + $0x104] ss:$8 sps:$4 sm:$0xff]  }
  0x67   : > { %1805 = vmatpush1.bf16.msra.mxu0 %v2293_v9  ;;  %1308 = vmatprep.subr.bf16.mxu1 %v2294_v10  ;;  %v2335_v41 = vld [vmem:[%s2874_s18 + $0x100] ss:$8 sps:$4 sm:$0xff]   ;;  %v2342_v42 = vld [vmem:[%s2874_s18 + $0x114] ss:$8 sps:$4 sm:$0xff]   ;;  %v2340_v45 = vld [vmem:[%s2874_s18 + $0x110] ss:$8 sps:$4 sm:$0xff]  }
  0x68   : > { %1806 = vmatprep.subr.bf16.mxu0 %v2294_v10  ;;  %v2345_v46 = vld [vmem:[%s2874_s18 + $0x124] ss:$8 sps:$4 sm:$0xff]   ;;  %v2343_v47 = vld [vmem:[%s2874_s18 + $0x120] ss:$8 sps:$4 sm:$0xff]   ;;  %v2348_v48 = vld [vmem:[%s2874_s18 + $0x134] ss:$8 sps:$4 sm:$0xff]  }
  0x69   : > { %v2346_v49 = vld [vmem:[%s2874_s18 + $0x130] ss:$8 sps:$4 sm:$0xff]   ;;  %v2351_v50 = vld [vmem:[%s2874_s18 + $0x144] ss:$8 sps:$4 sm:$0xff]   ;;  %v2349_v51 = vld [vmem:[%s2874_s18 + $0x140] ss:$8 sps:$4 sm:$0xff]  }
  0x6a   : > { %1309 = vmatpush1.bf16.msra.mxu1 %v2296_v11  ;;  %v2354_v52 = vld [vmem:[%s2874_s18 + $0x154] ss:$8 sps:$4 sm:$0xff]   ;;  %v2352_v53 = vld [vmem:[%s2874_s18 + $0x150] ss:$8 sps:$4 sm:$0xff]   ;;  %v2357_v54 = vld [vmem:[%s2874_s18 + $0x164] ss:$8 sps:$4 sm:$0xff]  }
  0x6b   : > { %1807 = vmatpush1.bf16.msra.mxu0 %v2296_v11  ;;  %1310 = vmatprep.subr.bf16.mxu1 %v2297_v12  ;;  %v2355_v55 = vld [vmem:[%s2874_s18 + $0x160] ss:$8 sps:$4 sm:$0xff]   ;;  %v2360_v56 = vld [vmem:[%s2874_s18 + $0x174] ss:$8 sps:$4 sm:$0xff]   ;;  %v2358_v57 = vld [vmem:[%s2874_s18 + $0x170] ss:$8 sps:$4 sm:$0xff]  }
  0x6c   : > { %1808 = vmatprep.subr.bf16.mxu0 %v2297_v12  ;;  %v2363_v58 = vld [vmem:[%s2874_s18 + $0x184] ss:$8 sps:$4 sm:$0xff]   ;;  %v2361_v59 = vld [vmem:[%s2874_s18 + $0x180] ss:$8 sps:$4 sm:$0xff]   ;;  %v2366_v60 = vld [vmem:[%s2874_s18 + $0x194] ss:$8 sps:$4 sm:$0xff]  }
  0x6d   : > { %v2364_v61 = vld [vmem:[%s2874_s18 + $0x190] ss:$8 sps:$4 sm:$0xff]   ;;  %v2369_v62 = vld [vmem:[%s2874_s18 + $0x1a4] ss:$8 sps:$4 sm:$0xff]   ;;  %v2367_v63 = vld [vmem:[%s2874_s18 + $0x1a0] ss:$8 sps:$4 sm:$0xff]  }
  0x6e   : > { %1311 = vmatpush1.bf16.msra.mxu1 %v2299_v13  ;;  %v2372_v0 = vld [vmem:[%s2874_s18 + $0x1b4] ss:$8 sps:$4 sm:$0xff]   ;;  %v2370_v1 = vld [vmem:[%s2874_s18 + $0x1b0] ss:$8 sps:$4 sm:$0xff]   ;;  %v2375_v4 = vld [vmem:[%s2874_s18 + $0x1c4] ss:$8 sps:$4 sm:$0xff]  }
  0x6f   : > { %1809 = vmatpush1.bf16.msra.mxu0 %v2299_v13  ;;  %1312 = vmatprep.subr.bf16.mxu1 %v2300_v14  ;;  %v2373_v5 = vld [vmem:[%s2874_s18 + $0x1c0] ss:$8 sps:$4 sm:$0xff]   ;;  %v2378_v6 = vld [vmem:[%s2874_s18 + $0x1d4] ss:$8 sps:$4 sm:$0xff]   ;;  %v2376_v7 = vld [vmem:[%s2874_s18 + $0x1d0] ss:$8 sps:$4 sm:$0xff]   ;;  %v2978_v13 = vcombine.low %v2925_v39, %v2925_v39 }
  0x70   : > { %1810 = vmatprep.subr.bf16.mxu0 %v2300_v14  ;;  %v2381_v8 = vld [vmem:[%s2874_s18 + $0x1e4] ss:$8 sps:$4 sm:$0xff]   ;;  %v2379_v9 = vld [vmem:[%s2874_s18 + $0x1e0] ss:$8 sps:$4 sm:$0xff]   ;;  %v2384_v10 = vld [vmem:[%s2874_s18 + $0x1f4] ss:$8 sps:$4 sm:$0xff]   ;;  %v2982_v14 = vcombine.low %v2930_v40, %v2930_v40 }
  0x71   : > { %v2382_v11 = vld [vmem:[%s2874_s18 + $0x1f0] ss:$8 sps:$4 sm:$0xff]   ;;  %v2389_v12 = vld [vmem:[%s2902_s28 + $0x4] ss:$8 sps:$4 sm:$0xff]   ;;  %v2425_v39 = vld [vmem:[%s2902_s28 + $0xc0] ss:$8 sps:$4 sm:$0xff]  }
  0x72   : > { %1313 = vmatpush1.bf16.msra.mxu1 %v2302_v15  ;;  %v2430_v40 = vld [vmem:[%s2902_s28 + $0xd4] ss:$8 sps:$4 sm:$0xff]   ;;  %p825_p8 = scmp.lt.s32.totalorder %s2097_s8, 3 }
  0x73   : > { %1811 = vmatpush1.bf16.msra.mxu0 %v2302_v15  ;;  %1314 = vmatprep.subr.bf16.mxu1 %v2303_v16  ;;  %v2387_v15 = vld [vmem:[%s2902_s28] ss:$8 sps:$4 sm:$0xff]  }
  0x74   : > { %1812 = vmatprep.subr.bf16.mxu0 %v2303_v16  ;;  %v2394_v16 = vld [vmem:[%s2902_s28 + $0x14] ss:$8 sps:$4 sm:$0xff]   ;;  %s3086_s8 = smov (!%p825_p8, %s2097_s8), 3 }
  0x75   : > { %s2098_s9 = sshll.u32 %s3086_s8, 3 }
  0x76   : > { %1315 = vmatpush1.bf16.msra.mxu1 %v2305_v17  ;;  %s834_s12 = scalar_lea.vmem %s3080_s5, %s2098_s9  ;;  %s828_s15 = scalar_lea.vmem %s3079_s4, %s2098_s9 }
  0x77   : > { %1813 = vmatpush1.bf16.msra.mxu0 %v2305_v17  ;;  %1316 = vmatprep.subr.bf16.mxu1 %v2306_v18  ;;  %v2392_v17 = vld [vmem:[%s2902_s28 + $0x10] ss:$8 sps:$4 sm:$0xff]  }
  0x78   : > { %1814 = vmatprep.subr.bf16.mxu0 %v2306_v18  ;;  %v2397_v18 = vld [vmem:[%s2902_s28 + $0x24] ss:$8 sps:$4 sm:$0xff]  }
  0x7a   : > { %1317 = vmatpush1.bf16.msra.mxu1 %v2308_v19 }
  0x7b   : > { %1815 = vmatpush1.bf16.msra.mxu0 %v2308_v19  ;;  %1318 = vmatprep.subr.bf16.mxu1 %v2309_v20  ;;  %v2395_v19 = vld [vmem:[%s2902_s28 + $0x20] ss:$8 sps:$4 sm:$0xff]  }
  0x7c   : > { %1816 = vmatprep.subr.bf16.mxu0 %v2309_v20  ;;  %v2400_v20 = vld [vmem:[%s2902_s28 + $0x34] ss:$8 sps:$4 sm:$0xff]  }
  0x7e   : > { %1319 = vmatpush1.bf16.msra.mxu1 %v2311_v21 }
  0x7f   : > { %1817 = vmatpush1.bf16.msra.mxu0 %v2311_v21  ;;  %1320 = vmatprep.subr.bf16.mxu1 %v2312_v22  ;;  %v2398_v21 = vld [vmem:[%s2902_s28 + $0x30] ss:$8 sps:$4 sm:$0xff]  }
  0x80   : > { %1818 = vmatprep.subr.bf16.mxu0 %v2312_v22  ;;  %v2403_v22 = vld [vmem:[%s2902_s28 + $0x44] ss:$8 sps:$4 sm:$0xff]  }
  0x82   : > { %1321 = vmatpush1.bf16.msra.mxu1 %v2314_v23 }
  0x83   : > { %1819 = vmatpush1.bf16.msra.mxu0 %v2314_v23  ;;  %1322 = vmatprep.subr.bf16.mxu1 %v2315_v24  ;;  %v2404_v23 = vld [vmem:[%s2902_s28 + $0x50] ss:$8 sps:$4 sm:$0xff]  }
  0x84   : > { %1820 = vmatprep.subr.bf16.mxu0 %v2315_v24  ;;  %v2409_v24 = vld [vmem:[%s2902_s28 + $0x64] ss:$8 sps:$4 sm:$0xff]  }
  0x86   : > { %1323 = vmatpush1.bf16.msra.mxu1 %v2317_v25 }
  0x87   : > { %1821 = vmatpush1.bf16.msra.mxu0 %v2317_v25  ;;  %1324 = vmatprep.subr.bf16.mxu1 %v2318_v26  ;;  %v2407_v25 = vld [vmem:[%s2902_s28 + $0x60] ss:$8 sps:$4 sm:$0xff]  }
  0x88   : > { %1822 = vmatprep.subr.bf16.mxu0 %v2318_v26  ;;  %v2412_v26 = vld [vmem:[%s2902_s28 + $0x74] ss:$8 sps:$4 sm:$0xff]  }
  0x8a   : > { %1325 = vmatpush1.bf16.msra.mxu1 %v2320_v27 }
  0x8b   : > { %1823 = vmatpush1.bf16.msra.mxu0 %v2320_v27  ;;  %1326 = vmatprep.subr.bf16.mxu1 %v2321_v28  ;;  %v2410_v27 = vld [vmem:[%s2902_s28 + $0x70] ss:$8 sps:$4 sm:$0xff]  }
  0x8c   : > { %1824 = vmatprep.subr.bf16.mxu0 %v2321_v28  ;;  %v2415_v28 = vld [vmem:[%s2902_s28 + $0x84] ss:$8 sps:$4 sm:$0xff]  }
  0x8e   : > { %1327 = vmatpush1.bf16.msra.mxu1 %v2323_v29 }
  0x8f   : > { %1825 = vmatpush1.bf16.msra.mxu0 %v2323_v29  ;;  %1328 = vmatprep.subr.bf16.mxu1 %v2324_v30  ;;  %v2413_v29 = vld [vmem:[%s2902_s28 + $0x80] ss:$8 sps:$4 sm:$0xff]  }
  0x90   : > { %1826 = vmatprep.subr.bf16.mxu0 %v2324_v30  ;;  %v2418_v30 = vld [vmem:[%s2902_s28 + $0x94] ss:$8 sps:$4 sm:$0xff]  }
  0x92   : > { %1329 = vmatpush1.bf16.msra.mxu1 %v2326_v31 }
  0x93   : > { %1827 = vmatpush1.bf16.msra.mxu0 %v2326_v31  ;;  %1330 = vmatprep.subr.bf16.mxu1 %v2327_v32  ;;  %v2416_v31 = vld [vmem:[%s2902_s28 + $0x90] ss:$8 sps:$4 sm:$0xff]  }
  0x94   : > { %1828 = vmatprep.subr.bf16.mxu0 %v2327_v32  ;;  %v2421_v32 = vld [vmem:[%s2902_s28 + $0xa4] ss:$8 sps:$4 sm:$0xff]  }
  0x96   : > { %1331 = vmatpush1.bf16.msra.mxu1 %v2329_v33 }
  0x97   : > { %1829 = vmatpush1.bf16.msra.mxu0 %v2329_v33  ;;  %1332 = vmatprep.subr.bf16.mxu1 %v2330_v34  ;;  %v2419_v33 = vld [vmem:[%s2902_s28 + $0xa0] ss:$8 sps:$4 sm:$0xff]  }
  0x98   : > { %1830 = vmatprep.subr.bf16.mxu0 %v2330_v34  ;;  %v2424_v34 = vld [vmem:[%s2902_s28 + $0xb4] ss:$8 sps:$4 sm:$0xff]  }
  0x9a   : > { %1333 = vmatpush1.bf16.msra.mxu1 %v2332_v35 }
  0x9b   : > { %1831 = vmatpush1.bf16.msra.mxu0 %v2332_v35  ;;  %1343 = vmatprep.subr.bf16.mxu1 %v2337_v36  ;;  %v2422_v35 = vld [vmem:[%s2902_s28 + $0xb0] ss:$8 sps:$4 sm:$0xff]  }
  0x9c   : > { %1841 = vmatprep.subr.bf16.mxu0 %v2337_v36  ;;  %v2427_v36 = vld [vmem:[%s2902_s28 + $0xc4] ss:$8 sps:$4 sm:$0xff]  }
  0x9d   : > { %1335 = vmatmul.mubr.bf16.vlgmr.msra.gmra.mrb[0].mxu1 %v2916_v37 }
  0x9e   : > { %1833 = vmatmul.mubr.bf16.vlgmr.msra.gmra.mrb[0].mxu0 %v2920_v38  ;;  %1344 = vmatpush1.bf16.msra.mxu1 %v2335_v41 }
  0x9f   : > { %1842 = vmatpush1.bf16.msra.mxu0 %v2335_v41  ;;  %1345 = vmatprep.subr.bf16.mxu1 %v2342_v42  ;;  %v2428_v41 = vld [vmem:[%s2902_s28 + $0xd0] ss:$8 sps:$4 sm:$0xff]  }
  0xa0   : > { %1843 = vmatprep.subr.bf16.mxu0 %v2342_v42  ;;  %1375 = vmatprep.mubr.bf16.mxu1 %v2936_v43  ;;  %v2433_v42 = vld [vmem:[%s2902_s28 + $0xe4] ss:$8 sps:$4 sm:$0xff]  }
  0xa1   : > { %1873 = vmatprep.mubr.bf16.mxu0 %v2940_v44 }
  0xa2   : > { %1346 = vmatpush1.bf16.msra.mxu1 %v2340_v45 }
  0xa3   : > { %1844 = vmatpush1.bf16.msra.mxu0 %v2340_v45  ;;  %1347 = vmatprep.subr.bf16.mxu1 %v2345_v46  ;;  %v2431_v45 = vld [vmem:[%s2902_s28 + $0xe0] ss:$8 sps:$4 sm:$0xff]  }
  0xa4   : > { %1845 = vmatprep.subr.bf16.mxu0 %v2345_v46  ;;  %v2436_v46 = vld [vmem:[%s2902_s28 + $0xf4] ss:$8 sps:$4 sm:$0xff]  }
  0xa6   : > { %1348 = vmatpush1.bf16.msra.mxu1 %v2343_v47 }
  0xa7   : > { %1846 = vmatpush1.bf16.msra.mxu0 %v2343_v47  ;;  %1349 = vmatprep.subr.bf16.mxu1 %v2348_v48  ;;  %v2434_v47 = vld [vmem:[%s2902_s28 + $0xf0] ss:$8 sps:$4 sm:$0xff]  }
  0xa8   : > { %1847 = vmatprep.subr.bf16.mxu0 %v2348_v48  ;;  %v2439_v48 = vld [vmem:[%s2902_s28 + $0x104] ss:$8 sps:$4 sm:$0xff]  }
  0xaa   : > { %1350 = vmatpush1.bf16.msra.mxu1 %v2346_v49 }
  0xab   : > { %1848 = vmatpush1.bf16.msra.mxu0 %v2346_v49  ;;  %1351 = vmatprep.subr.bf16.mxu1 %v2351_v50  ;;  %v2437_v49 = vld [vmem:[%s2902_s28 + $0x100] ss:$8 sps:$4 sm:$0xff]  }
  0xac   : > { %1849 = vmatprep.subr.bf16.mxu0 %v2351_v50  ;;  %v2442_v50 = vld [vmem:[%s2902_s28 + $0x114] ss:$8 sps:$4 sm:$0xff]  }
  0xae   : > { %1352 = vmatpush1.bf16.msra.mxu1 %v2349_v51 }
  0xaf   : > { %1850 = vmatpush1.bf16.msra.mxu0 %v2349_v51  ;;  %1353 = vmatprep.subr.bf16.mxu1 %v2354_v52  ;;  %v2440_v51 = vld [vmem:[%s2902_s28 + $0x110] ss:$8 sps:$4 sm:$0xff]  }
  0xb0   : > { %1851 = vmatprep.subr.bf16.mxu0 %v2354_v52  ;;  %v2445_v52 = vld [vmem:[%s2902_s28 + $0x124] ss:$8 sps:$4 sm:$0xff]  }
  0xb2   : > { %1354 = vmatpush1.bf16.msra.mxu1 %v2352_v53 }
  0xb3   : > { %1852 = vmatpush1.bf16.msra.mxu0 %v2352_v53  ;;  %1355 = vmatprep.subr.bf16.mxu1 %v2357_v54  ;;  %v2443_v53 = vld [vmem:[%s2902_s28 + $0x120] ss:$8 sps:$4 sm:$0xff]  }
  0xb4   : > { %1853 = vmatprep.subr.bf16.mxu0 %v2357_v54  ;;  %v2451_v54 = vld [vmem:[%s2902_s28 + $0x144] ss:$8 sps:$4 sm:$0xff]  }
  0xb6   : > { %1356 = vmatpush1.bf16.msra.mxu1 %v2355_v55 }
  0xb7   : > { %1854 = vmatpush1.bf16.msra.mxu0 %v2355_v55  ;;  %1357 = vmatprep.subr.bf16.mxu1 %v2360_v56  ;;  %v2452_v55 = vld [vmem:[%s2902_s28 + $0x150] ss:$8 sps:$4 sm:$0xff]  }
  0xb8   : > { %1855 = vmatprep.subr.bf16.mxu0 %v2360_v56  ;;  %v2457_v56 = vld [vmem:[%s2902_s28 + $0x164] ss:$8 sps:$4 sm:$0xff]  }
  0xba   : > { %1358 = vmatpush1.bf16.msra.mxu1 %v2358_v57 }
  0xbb   : > { %1856 = vmatpush1.bf16.msra.mxu0 %v2358_v57  ;;  %1359 = vmatprep.subr.bf16.mxu1 %v2363_v58  ;;  %v2455_v57 = vld [vmem:[%s2902_s28 + $0x160] ss:$8 sps:$4 sm:$0xff]  }
  0xbc   : > { %1857 = vmatprep.subr.bf16.mxu0 %v2363_v58  ;;  %v2460_v58 = vld [vmem:[%s2902_s28 + $0x174] ss:$8 sps:$4 sm:$0xff]  }
  0xbe   : > { %1360 = vmatpush1.bf16.msra.mxu1 %v2361_v59 }
  0xbf   : > { %1858 = vmatpush1.bf16.msra.mxu0 %v2361_v59  ;;  %1361 = vmatprep.subr.bf16.mxu1 %v2366_v60  ;;  %v2458_v59 = vld [vmem:[%s2902_s28 + $0x170] ss:$8 sps:$4 sm:$0xff]  }
  0xc0   : > { %1859 = vmatprep.subr.bf16.mxu0 %v2366_v60  ;;  %v2463_v60 = vld [vmem:[%s2902_s28 + $0x184] ss:$8 sps:$4 sm:$0xff]  }
  0xc2   : > { %1362 = vmatpush1.bf16.msra.mxu1 %v2364_v61 }
  0xc3   : > { %1860 = vmatpush1.bf16.msra.mxu0 %v2364_v61  ;;  %1363 = vmatprep.subr.bf16.mxu1 %v2369_v62  ;;  %v2461_v61 = vld [vmem:[%s2902_s28 + $0x180] ss:$8 sps:$4 sm:$0xff]  }
  0xc4   : > { %1861 = vmatprep.subr.bf16.mxu0 %v2369_v62  ;;  %v2466_v62 = vld [vmem:[%s2902_s28 + $0x194] ss:$8 sps:$4 sm:$0xff]  }
  0xc6   : > { %1364 = vmatpush1.bf16.msra.mxu1 %v2367_v63 }
  0xc7   : > { %1862 = vmatpush1.bf16.msra.mxu0 %v2367_v63  ;;  %1365 = vmatprep.subr.bf16.mxu1 %v2372_v0  ;;  %v2464_v63 = vld [vmem:[%s2902_s28 + $0x190] ss:$8 sps:$4 sm:$0xff]  }
  0xc8   : > { %1863 = vmatprep.subr.bf16.mxu0 %v2372_v0  ;;  %v2469_v0 = vld [vmem:[%s2902_s28 + $0x1a4] ss:$8 sps:$4 sm:$0xff]  }
  0xca   : > { %1366 = vmatpush1.bf16.msra.mxu1 %v2370_v1 }
  0xcb   : > { %1864 = vmatpush1.bf16.msra.mxu0 %v2370_v1  ;;  %1367 = vmatprep.subr.bf16.mxu1 %v2375_v4  ;;  %v2467_v1 = vld [vmem:[%s2902_s28 + $0x1a0] ss:$8 sps:$4 sm:$0xff]  }
  0xcc   : > { %1865 = vmatprep.subr.bf16.mxu0 %v2375_v4  ;;  %v2472_v4 = vld [vmem:[%s2902_s28 + $0x1b4] ss:$8 sps:$4 sm:$0xff]  }
  0xce   : > { %1368 = vmatpush1.bf16.msra.mxu1 %v2373_v5 }
  0xcf   : > { %1866 = vmatpush1.bf16.msra.mxu0 %v2373_v5  ;;  %1369 = vmatprep.subr.bf16.mxu1 %v2378_v6  ;;  %v2470_v5 = vld [vmem:[%s2902_s28 + $0x1b0] ss:$8 sps:$4 sm:$0xff]  }
  0xd0   : > { %1867 = vmatprep.subr.bf16.mxu0 %v2378_v6  ;;  %v2475_v6 = vld [vmem:[%s2902_s28 + $0x1c4] ss:$8 sps:$4 sm:$0xff]  }
  0xd2   : > { %1370 = vmatpush1.bf16.msra.mxu1 %v2376_v7 }
  0xd3   : > { %1868 = vmatpush1.bf16.msra.mxu0 %v2376_v7  ;;  %1371 = vmatprep.subr.bf16.mxu1 %v2381_v8  ;;  %v2473_v7 = vld [vmem:[%s2902_s28 + $0x1c0] ss:$8 sps:$4 sm:$0xff]  }
  0xd4   : > { %1869 = vmatprep.subr.bf16.mxu0 %v2381_v8  ;;  %v2478_v8 = vld [vmem:[%s2902_s28 + $0x1d4] ss:$8 sps:$4 sm:$0xff]  }
  0xd6   : > { %1372 = vmatpush1.bf16.msra.mxu1 %v2379_v9 }
  0xd7   : > { %1870 = vmatpush1.bf16.msra.mxu0 %v2379_v9  ;;  %1373 = vmatprep.subr.bf16.mxu1 %v2384_v10  ;;  %v2476_v9 = vld [vmem:[%s2902_s28 + $0x1d0] ss:$8 sps:$4 sm:$0xff]  }
  0xd8   : > { %1871 = vmatprep.subr.bf16.mxu0 %v2384_v10  ;;  %v2481_v10 = vld [vmem:[%s2902_s28 + $0x1e4] ss:$8 sps:$4 sm:$0xff]  }
  0xda   : > { %1374 = vmatpush1.bf16.msra.mxu1 %v2382_v11 }
  0xdb   : > { %1872 = vmatpush1.bf16.msra.mxu0 %v2382_v11  ;;  %1718 = vmatprep.subr.bf16.mxu1 %v2389_v12  ;;  %v2479_v11 = vld [vmem:[%s2902_s28 + $0x1e0] ss:$8 sps:$4 sm:$0xff]  }
  0xdc   : > { %1886 = vmatprep.subr.bf16.mxu0 %v2389_v12  ;;  %v2484_v12 = vld [vmem:[%s2902_s28 + $0x1f4] ss:$8 sps:$4 sm:$0xff]  }
  0xdd   : > { %1376 = vmatmul.mubr.bf16.vlgmr.msra.gmra.mrb[0].mxu1 %v2978_v13 }
  0xde   : > { %1874 = vmatmul.mubr.bf16.vlgmr.msra.gmra.mrb[0].mxu0 %v2982_v14  ;;  %1719 = vmatpush1.bf16.msra.mxu1 %v2387_v15 }
  0xdf   : > { %1887 = vmatpush1.bf16.msra.mxu0 %v2387_v15  ;;  %1720 = vmatprep.subr.bf16.mxu1 %v2394_v16  ;;  %v2482_v15 = vld [vmem:[%s2902_s28 + $0x1f0] ss:$8 sps:$4 sm:$0xff]  }
  0xe0   : > { %1888 = vmatprep.subr.bf16.mxu0 %v2394_v16  ;;  %1750 = vmatprep.mubr.bf16.mxu1 %v2871_v3  ;;  %v2406_v3 = vld [vmem:[%s2902_s28 + $0x54] ss:$8 sps:$4 sm:$0xff]  }
  0xe1   : > { %1918 = vmatprep.mubr.bf16.mxu0 %v2867_v2  ;;  %v2401_v2 = vld [vmem:[%s2902_s28 + $0x40] ss:$8 sps:$4 sm:$0xff]  }
  0xe2   : > { %1721 = vmatpush1.bf16.msra.mxu1 %v2392_v17 }
  0xe3   : > { %1889 = vmatpush1.bf16.msra.mxu0 %v2392_v17  ;;  %1722 = vmatprep.subr.bf16.mxu1 %v2397_v18 }
  0xe4   : > { %1890 = vmatprep.subr.bf16.mxu0 %v2397_v18 }
  0xe6   : > { %1723 = vmatpush1.bf16.msra.mxu1 %v2395_v19 }
  0xe7   : > { %1891 = vmatpush1.bf16.msra.mxu0 %v2395_v19  ;;  %1724 = vmatprep.subr.bf16.mxu1 %v2400_v20 }
  0xe8   : > { %1892 = vmatprep.subr.bf16.mxu0 %v2400_v20 }
  0xea   : > { %1725 = vmatpush1.bf16.msra.mxu1 %v2398_v21 }
  0xeb   : > { %1893 = vmatpush1.bf16.msra.mxu0 %v2398_v21  ;;  %1726 = vmatprep.subr.bf16.mxu1 %v2403_v22 }
  0xec   : > { %1894 = vmatprep.subr.bf16.mxu0 %v2403_v22 }
  0xee   : > { %1727 = vmatpush1.bf16.msra.mxu1 %v2401_v2 }
  0xef   : > { %1895 = vmatpush1.bf16.msra.mxu0 %v2401_v2  ;;  %1728 = vmatprep.subr.bf16.mxu1 %v2406_v3 }
  0xf0   : > { %1896 = vmatprep.subr.bf16.mxu0 %v2406_v3 }
  0xf2   : > { %1729 = vmatpush1.bf16.msra.mxu1 %v2404_v23 }
  0xf3   : > { %1897 = vmatpush1.bf16.msra.mxu0 %v2404_v23  ;;  %1730 = vmatprep.subr.bf16.mxu1 %v2409_v24 }
  0xf4   : > { %1898 = vmatprep.subr.bf16.mxu0 %v2409_v24 }
  0xf6   : > { %1731 = vmatpush1.bf16.msra.mxu1 %v2407_v25 }
  0xf7   : > { %1899 = vmatpush1.bf16.msra.mxu0 %v2407_v25  ;;  %1732 = vmatprep.subr.bf16.mxu1 %v2412_v26 }
  0xf8   : > { %1900 = vmatprep.subr.bf16.mxu0 %v2412_v26 }
  0xfa   : > { %1733 = vmatpush1.bf16.msra.mxu1 %v2410_v27 }
  0xfb   : > { %1901 = vmatpush1.bf16.msra.mxu0 %v2410_v27  ;;  %1734 = vmatprep.subr.bf16.mxu1 %v2415_v28 }
  0xfc   : > { %1902 = vmatprep.subr.bf16.mxu0 %v2415_v28 }
  0xfe   : > { %1735 = vmatpush1.bf16.msra.mxu1 %v2413_v29 }
  0xff   : > { %1903 = vmatpush1.bf16.msra.mxu0 %v2413_v29  ;;  %1736 = vmatprep.subr.bf16.mxu1 %v2418_v30 }
 0x100   : > { %1904 = vmatprep.subr.bf16.mxu0 %v2418_v30 }
 0x102   : > { %1737 = vmatpush1.bf16.msra.mxu1 %v2416_v31 }
 0x103   : > { %1905 = vmatpush1.bf16.msra.mxu0 %v2416_v31  ;;  %1738 = vmatprep.subr.bf16.mxu1 %v2421_v32 }
 0x104   : > { %1906 = vmatprep.subr.bf16.mxu0 %v2421_v32 }
 0x106   : > { %1739 = vmatpush1.bf16.msra.mxu1 %v2419_v33 }
 0x107   : > { %1907 = vmatpush1.bf16.msra.mxu0 %v2419_v33  ;;  %1740 = vmatprep.subr.bf16.mxu1 %v2424_v34 }
 0x108   : > { %1908 = vmatprep.subr.bf16.mxu0 %v2424_v34 }
 0x10a   : > { %1741 = vmatpush1.bf16.msra.mxu1 %v2422_v35 }
 0x10b   : > { %1909 = vmatpush1.bf16.msra.mxu0 %v2422_v35  ;;  %1742 = vmatprep.subr.bf16.mxu1 %v2427_v36 }
 0x10c   : > { %1910 = vmatprep.subr.bf16.mxu0 %v2427_v36 }
 0x10e   : > { %1743 = vmatpush1.bf16.msra.mxu1 %v2425_v39 }
 0x10f   : > { %1911 = vmatpush1.bf16.msra.mxu0 %v2425_v39  ;;  %1744 = vmatprep.subr.bf16.mxu1 %v2430_v40 }
 0x110   : > { %1912 = vmatprep.subr.bf16.mxu0 %v2430_v40 }
 0x112   : > { %1745 = vmatpush1.bf16.msra.mxu1 %v2428_v41 }
 0x113   : > { %1913 = vmatpush1.bf16.msra.mxu0 %v2428_v41  ;;  %1746 = vmatprep.subr.bf16.mxu1 %v2433_v42 }
 0x114   : > { %1914 = vmatprep.subr.bf16.mxu0 %v2433_v42 }
 0x116   : > { %1747 = vmatpush1.bf16.msra.mxu1 %v2431_v45 }
 0x117   : > { %1915 = vmatpush1.bf16.msra.mxu0 %v2431_v45  ;;  %1748 = vmatprep.subr.bf16.mxu1 %v2436_v46 }
 0x118   : > { %1916 = vmatprep.subr.bf16.mxu0 %v2436_v46 }
 0x11a   : > { %1749 = vmatpush1.bf16.msra.mxu1 %v2434_v47 }
 0x11b   : > { %1917 = vmatpush1.bf16.msra.mxu0 %v2434_v47  ;;  %1759 = vmatprep.subr.bf16.mxu1 %v2439_v48 }
 0x11c   : > { %1927 = vmatprep.subr.bf16.mxu0 %v2439_v48 }
 0x11d   : > { %1751 = vmatmul.mubr.bf16.vlgmr.msra.gmra.mrb[4].mxu1 %v2920_v38  ;;  %v2446_v38 = vld [vmem:[%s2902_s28 + $0x130] ss:$8 sps:$4 sm:$0xff]  }
 0x11e   : > { %1919 = vmatmul.mubr.bf16.vlgmr.msra.gmra.mrb[0].mxu0 %v2916_v37  ;;  %1760 = vmatpush1.bf16.msra.mxu1 %v2437_v49  ;;  %v2448_v37 = vld [vmem:[%s2902_s28 + $0x134] ss:$8 sps:$4 sm:$0xff]  }
 0x11f   : > { %1928 = vmatpush1.bf16.msra.mxu0 %v2437_v49  ;;  %1761 = vmatprep.subr.bf16.mxu1 %v2442_v50 }
 0x120   : > { %1929 = vmatprep.subr.bf16.mxu0 %v2442_v50  ;;  %1791 = vmatprep.mubr.bf16.mxu1 %v2940_v44  ;;  %v2454_v44 = vld [vmem:[%s2902_s28 + $0x154] ss:$8 sps:$4 sm:$0xff]  }
 0x121   : > { %1959 = vmatprep.mubr.bf16.mxu0 %v2936_v43  ;;  %v2449_v43 = vld [vmem:[%s2902_s28 + $0x140] ss:$8 sps:$4 sm:$0xff]  }
 0x122   : > { %1762 = vmatpush1.bf16.msra.mxu1 %v2440_v51 }
 0x123   : > { %1930 = vmatpush1.bf16.msra.mxu0 %v2440_v51  ;;  %1763 = vmatprep.subr.bf16.mxu1 %v2445_v52 }
 0x124   : > { %1931 = vmatprep.subr.bf16.mxu0 %v2445_v52 }
 0x126   : > { %1764 = vmatpush1.bf16.msra.mxu1 %v2443_v53 }
 0x127   : > { %1932 = vmatpush1.bf16.msra.mxu0 %v2443_v53  ;;  %1765 = vmatprep.subr.bf16.mxu1 %v2448_v37 }
 0x128   : > { %1933 = vmatprep.subr.bf16.mxu0 %v2448_v37 }
 0x12a   : > { %1766 = vmatpush1.bf16.msra.mxu1 %v2446_v38 }
 0x12b   : > { %1934 = vmatpush1.bf16.msra.mxu0 %v2446_v38  ;;  %1767 = vmatprep.subr.bf16.mxu1 %v2451_v54 }
 0x12c   : > { %1935 = vmatprep.subr.bf16.mxu0 %v2451_v54 }
 0x12e   : > { %1768 = vmatpush1.bf16.msra.mxu1 %v2449_v43 }
 0x12f   : > { %1936 = vmatpush1.bf16.msra.mxu0 %v2449_v43  ;;  %1769 = vmatprep.subr.bf16.mxu1 %v2454_v44 }
 0x130   : > { %1937 = vmatprep.subr.bf16.mxu0 %v2454_v44 }
 0x132   : > { %1770 = vmatpush1.bf16.msra.mxu1 %v2452_v55 }
 0x133   : > { %1938 = vmatpush1.bf16.msra.mxu0 %v2452_v55  ;;  %1771 = vmatprep.subr.bf16.mxu1 %v2457_v56 }
 0x134   : > { %1939 = vmatprep.subr.bf16.mxu0 %v2457_v56 }
 0x136   : > { %1772 = vmatpush1.bf16.msra.mxu1 %v2455_v57 }
 0x137   : > { %1940 = vmatpush1.bf16.msra.mxu0 %v2455_v57  ;;  %1773 = vmatprep.subr.bf16.mxu1 %v2460_v58 }
 0x138   : > { %1941 = vmatprep.subr.bf16.mxu0 %v2460_v58 }
 0x13a   : > { %1774 = vmatpush1.bf16.msra.mxu1 %v2458_v59 }
 0x13b   : > { %1942 = vmatpush1.bf16.msra.mxu0 %v2458_v59  ;;  %1775 = vmatprep.subr.bf16.mxu1 %v2463_v60 }
 0x13c   : > { %1943 = vmatprep.subr.bf16.mxu0 %v2463_v60 }
 0x13e   : > { %1776 = vmatpush1.bf16.msra.mxu1 %v2461_v61 }
 0x13f   : > { %1944 = vmatpush1.bf16.msra.mxu0 %v2461_v61  ;;  %1777 = vmatprep.subr.bf16.mxu1 %v2466_v62 }
 0x140   : > { %1945 = vmatprep.subr.bf16.mxu0 %v2466_v62 }
 0x142   : > { %1778 = vmatpush1.bf16.msra.mxu1 %v2464_v63 }
 0x143   : > { %1946 = vmatpush1.bf16.msra.mxu0 %v2464_v63  ;;  %1779 = vmatprep.subr.bf16.mxu1 %v2469_v0 }
 0x144   : > { %1947 = vmatprep.subr.bf16.mxu0 %v2469_v0 }
 0x146   : > { %1780 = vmatpush1.bf16.msra.mxu1 %v2467_v1 }
 0x147   : > { %1948 = vmatpush1.bf16.msra.mxu0 %v2467_v1  ;;  %1781 = vmatprep.subr.bf16.mxu1 %v2472_v4 }
 0x148   : > { %1949 = vmatprep.subr.bf16.mxu0 %v2472_v4 }
 0x14a   : > { %1782 = vmatpush1.bf16.msra.mxu1 %v2470_v5 }
 0x14b   : > { %1950 = vmatpush1.bf16.msra.mxu0 %v2470_v5  ;;  %1783 = vmatprep.subr.bf16.mxu1 %v2475_v6 }
 0x14c   : > { %1951 = vmatprep.subr.bf16.mxu0 %v2475_v6 }
 0x14e   : > { %1784 = vmatpush1.bf16.msra.mxu1 %v2473_v7 }
 0x14f   : > { %1952 = vmatpush1.bf16.msra.mxu0 %v2473_v7  ;;  %1785 = vmatprep.subr.bf16.mxu1 %v2478_v8 }
 0x150   : > { %1953 = vmatprep.subr.bf16.mxu0 %v2478_v8 }
 0x152   : > { %1786 = vmatpush1.bf16.msra.mxu1 %v2476_v9 }
 0x153   : > { %1954 = vmatpush1.bf16.msra.mxu0 %v2476_v9  ;;  %1787 = vmatprep.subr.bf16.mxu1 %v2481_v10 }
 0x154   : > { %1955 = vmatprep.subr.bf16.mxu0 %v2481_v10 }
 0x156   : > { %1788 = vmatpush1.bf16.msra.mxu1 %v2479_v11 }
 0x157   : > { %1956 = vmatpush1.bf16.msra.mxu0 %v2479_v11  ;;  %1789 = vmatprep.subr.bf16.mxu1 %v2484_v12 }
 0x158   : > { %1957 = vmatprep.subr.bf16.mxu0 %v2484_v12 }
 0x15a   : > { %1790 = vmatpush1.bf16.msra.mxu1 %v2482_v15 }
 0x15b   : > { %1958 = vmatpush1.bf16.msra.mxu0 %v2482_v15 }
 0x15d   : > { %1792 = vmatmul.mubr.bf16.vlgmr.msra.gmra.mrb[4].mxu1 %v2982_v14 }
 0x15e   : > { %1960 = vmatmul.mubr.bf16.vlgmr.msra.gmra.mrb[0].mxu0 %v2978_v13 }
 0x1b0   : > { %v1377_v16 = vpop.f32.mrb[0].mxu1 }
 0x1b1   : > { %v1379_v17 = vpop.f32.mrb[1].mxu1 }
 0x1b2   : > { %v1381_v18 = vpop.f32.mrb[2].mxu1 }
 0x1b3   : > { %v1382_v19 = vpop.f32.mrb[3].mxu1 }
 0x230   : > { %v1793_v14 = vpop.f32.mrb[4].mxu1 }
 0x231   : > { %v1961_v20 = vpop.f32.mrb[0].mxu0  ;;  %v1882_v13 = vsub.f32 %v1377_v16, %v1793_v14  ;;  %v1795_v21 = vpop.f32.mrb[5].mxu1 }
 0x232   : > { %1968 = vst [vmem:[%s834_s12] sm:$0xff] %v1961_v20  ;;  %v1963_v22 = vpop.f32.mrb[1].mxu0  ;;  %v1883_v2 = vsub.f32 %v1379_v17, %v1795_v21  ;;  %v1797_v3 = vpop.f32.mrb[6].mxu1 }
 0x233   : > { %1969 = vst [vmem:[%s834_s12 + $0x8] sm:$0xff] %v1963_v22  ;;  %v1965_v23 = vpop.f32.mrb[2].mxu0  ;;  %1884 = vst [vmem:[%s828_s15] sm:$0xff] %v1882_v13  ;;  %v1798_v24 = vpop.f32.mrb[7].mxu1 }
 0x234   : > { %v1966_v25 = vpop.f32.mrb[3].mxu0  ;;  %1885 = vst [vmem:[%s828_s15 + $0x8] sm:$0xff] %v1883_v2 }
 0x235 PF: > { %p13_p9 = scmp.ge.s32.totalorder %s2556_s22, 4   ;;  %s3082_s18 = smov %s2503_s19 }
 0x236   : > { %s3083_s19 = smov %s2565_s25  ;;  %s3084_s20 = smov %s2556_s22 }
 0x237   :  { %15 = sbr.rel (!%p13_p9) target bundleno = 2 (0x2), region = 167 }

// kernel: reverse.8
= control target key start
LH: loop header
LB: loop body
LE: loop exit
PB: predicated region body
PF: predicated region fallthrough
CT: control target
= control target key end

     0   :  { %s1352_s0 = inlined_call_operand.vmem [shape: f32[16,8,16,7], index: 0, kind: input, shape index: {}]   ;;  %s1353_s1 = inlined_call_operand.vmem [shape: f32[16,8,16,7], index: 1, kind: output, shape index: {}]  }
   0x1   :  { %v448_v0 = vld [vmem:[%s1352_s0 + $0x60] sm:$0xff]  ;;  %v449_v1 = vld [vmem:[%s1352_s0 + $0xd0] sm:$0xff]  ;;  %v558_v56 = vld [vmem:[%s1352_s0 + $0x68] sm:$0xff] }
   0x2   :  { %v451_v2 = vld [vmem:[%s1352_s0 + $0x140] sm:$0xff]  ;;  %4 = vst [vmem:[%s1353_s1] sm:$0xff] %v448_v0  ;;  %450 = vst [vmem:[%s1353_s1 + $0x70] sm:$0xff] %v449_v1  ;;  %v453_v3 = vld [vmem:[%s1352_s0 + $0x1b0] sm:$0xff] }
   0x3   :  { %452 = vst [vmem:[%s1353_s1 + $0xe0] sm:$0xff] %v451_v2  ;;  %v455_v4 = vld [vmem:[%s1352_s0 + $0x220] sm:$0xff]  ;;  %v457_v5 = vld [vmem:[%s1352_s0 + $0x290] sm:$0xff]  ;;  %454 = vst [vmem:[%s1353_s1 + $0x150] sm:$0xff] %v453_v3 }
   0x4   :  { %456 = vst [vmem:[%s1353_s1 + $0x1c0] sm:$0xff] %v455_v4  ;;  %458 = vst [vmem:[%s1353_s1 + $0x230] sm:$0xff] %v457_v5  ;;  %v459_v6 = vld [vmem:[%s1352_s0 + $0x300] sm:$0xff]  ;;  %v461_v7 = vld [vmem:[%s1352_s0 + $0x370] sm:$0xff] }
   0x5   :  { %v463_v8 = vld [vmem:[%s1352_s0 + $0x50] sm:$0xff]  ;;  %460 = vst [vmem:[%s1353_s1 + $0x2a0] sm:$0xff] %v459_v6  ;;  %462 = vst [vmem:[%s1353_s1 + $0x310] sm:$0xff] %v461_v7  ;;  %v465_v9 = vld [vmem:[%s1352_s0 + $0xc0] sm:$0xff] }
   0x6   :  { %464 = vst [vmem:[%s1353_s1 + $0x10] sm:$0xff] %v463_v8  ;;  %v467_v10 = vld [vmem:[%s1352_s0 + $0x130] sm:$0xff]  ;;  %v469_v11 = vld [vmem:[%s1352_s0 + $0x1a0] sm:$0xff]  ;;  %466 = vst [vmem:[%s1353_s1 + $0x80] sm:$0xff] %v465_v9 }
   0x7   :  { %468 = vst [vmem:[%s1353_s1 + $0xf0] sm:$0xff] %v467_v10  ;;  %470 = vst [vmem:[%s1353_s1 + $0x160] sm:$0xff] %v469_v11  ;;  %v471_v12 = vld [vmem:[%s1352_s0 + $0x210] sm:$0xff]  ;;  %v473_v13 = vld [vmem:[%s1352_s0 + $0x280] sm:$0xff] }
   0x8   :  { %v475_v14 = vld [vmem:[%s1352_s0 + $0x2f0] sm:$0xff]  ;;  %472 = vst [vmem:[%s1353_s1 + $0x1d0] sm:$0xff] %v471_v12  ;;  %474 = vst [vmem:[%s1353_s1 + $0x240] sm:$0xff] %v473_v13  ;;  %v477_v15 = vld [vmem:[%s1352_s0 + $0x360] sm:$0xff] }
   0x9   :  { %476 = vst [vmem:[%s1353_s1 + $0x2b0] sm:$0xff] %v475_v14  ;;  %v479_v16 = vld [vmem:[%s1352_s0 + $0x40] sm:$0xff]  ;;  %v481_v17 = vld [vmem:[%s1352_s0 + $0xb0] sm:$0xff]  ;;  %478 = vst [vmem:[%s1353_s1 + $0x320] sm:$0xff] %v477_v15 }
   0xa   :  { %480 = vst [vmem:[%s1353_s1 + $0x20] sm:$0xff] %v479_v16  ;;  %482 = vst [vmem:[%s1353_s1 + $0x90] sm:$0xff] %v481_v17  ;;  %v483_v18 = vld [vmem:[%s1352_s0 + $0x120] sm:$0xff]  ;;  %v485_v19 = vld [vmem:[%s1352_s0 + $0x190] sm:$0xff] }
   0xb   :  { %v487_v20 = vld [vmem:[%s1352_s0 + $0x200] sm:$0xff]  ;;  %484 = vst [vmem:[%s1353_s1 + $0x100] sm:$0xff] %v483_v18  ;;  %486 = vst [vmem:[%s1353_s1 + $0x170] sm:$0xff] %v485_v19  ;;  %v489_v21 = vld [vmem:[%s1352_s0 + $0x270] sm:$0xff] }
   0xc   :  { %488 = vst [vmem:[%s1353_s1 + $0x1e0] sm:$0xff] %v487_v20  ;;  %v491_v22 = vld [vmem:[%s1352_s0 + $0x2e0] sm:$0xff]  ;;  %v493_v23 = vld [vmem:[%s1352_s0 + $0x350] sm:$0xff]  ;;  %490 = vst [vmem:[%s1353_s1 + $0x250] sm:$0xff] %v489_v21 }
   0xd   :  { %492 = vst [vmem:[%s1353_s1 + $0x2c0] sm:$0xff] %v491_v22  ;;  %494 = vst [vmem:[%s1353_s1 + $0x330] sm:$0xff] %v493_v23  ;;  %v495_v24 = vld [vmem:[%s1352_s0 + $0x30] sm:$0xff]  ;;  %v497_v25 = vld [vmem:[%s1352_s0 + $0xa0] sm:$0xff] }
   0xe   :  { %v499_v26 = vld [vmem:[%s1352_s0 + $0x110] sm:$0xff]  ;;  %496 = vst [vmem:[%s1353_s1 + $0x30] sm:$0xff] %v495_v24  ;;  %498 = vst [vmem:[%s1353_s1 + $0xa0] sm:$0xff] %v497_v25  ;;  %v501_v27 = vld [vmem:[%s1352_s0 + $0x180] sm:$0xff] }
   0xf   :  { %500 = vst [vmem:[%s1353_s1 + $0x110] sm:$0xff] %v499_v26  ;;  %v503_v28 = vld [vmem:[%s1352_s0 + $0x1f0] sm:$0xff]  ;;  %v505_v29 = vld [vmem:[%s1352_s0 + $0x260] sm:$0xff]  ;;  %502 = vst [vmem:[%s1353_s1 + $0x180] sm:$0xff] %v501_v27 }
  0x10   :  { %504 = vst [vmem:[%s1353_s1 + $0x1f0] sm:$0xff] %v503_v28  ;;  %506 = vst [vmem:[%s1353_s1 + $0x260] sm:$0xff] %v505_v29  ;;  %v507_v30 = vld [vmem:[%s1352_s0 + $0x2d0] sm:$0xff]  ;;  %v509_v31 = vld [vmem:[%s1352_s0 + $0x340] sm:$0xff] }
  0x11   :  { %v511_v32 = vld [vmem:[%s1352_s0 + $0x20] sm:$0xff]  ;;  %508 = vst [vmem:[%s1353_s1 + $0x2d0] sm:$0xff] %v507_v30  ;;  %510 = vst [vmem:[%s1353_s1 + $0x340] sm:$0xff] %v509_v31  ;;  %v513_v33 = vld [vmem:[%s1352_s0 + $0x90] sm:$0xff] }
  0x12   :  { %512 = vst [vmem:[%s1353_s1 + $0x40] sm:$0xff] %v511_v32  ;;  %v515_v34 = vld [vmem:[%s1352_s0 + $0x100] sm:$0xff]  ;;  %v517_v35 = vld [vmem:[%s1352_s0 + $0x170] sm:$0xff]  ;;  %514 = vst [vmem:[%s1353_s1 + $0xb0] sm:$0xff] %v513_v33 }
  0x13   :  { %516 = vst [vmem:[%s1353_s1 + $0x120] sm:$0xff] %v515_v34  ;;  %518 = vst [vmem:[%s1353_s1 + $0x190] sm:$0xff] %v517_v35  ;;  %v519_v36 = vld [vmem:[%s1352_s0 + $0x1e0] sm:$0xff]  ;;  %v521_v37 = vld [vmem:[%s1352_s0 + $0x250] sm:$0xff] }
  0x14   :  { %v523_v38 = vld [vmem:[%s1352_s0 + $0x2c0] sm:$0xff]  ;;  %520 = vst [vmem:[%s1353_s1 + $0x200] sm:$0xff] %v519_v36  ;;  %522 = vst [vmem:[%s1353_s1 + $0x270] sm:$0xff] %v521_v37  ;;  %v525_v39 = vld [vmem:[%s1352_s0 + $0x330] sm:$0xff] }
  0x15   :  { %524 = vst [vmem:[%s1353_s1 + $0x2e0] sm:$0xff] %v523_v38  ;;  %v527_v40 = vld [vmem:[%s1352_s0 + $0x10] sm:$0xff]  ;;  %v529_v41 = vld [vmem:[%s1352_s0 + $0x80] sm:$0xff]  ;;  %526 = vst [vmem:[%s1353_s1 + $0x350] sm:$0xff] %v525_v39 }
  0x16   :  { %528 = vst [vmem:[%s1353_s1 + $0x50] sm:$0xff] %v527_v40  ;;  %530 = vst [vmem:[%s1353_s1 + $0xc0] sm:$0xff] %v529_v41  ;;  %v531_v42 = vld [vmem:[%s1352_s0 + $0xf0] sm:$0xff]  ;;  %v533_v43 = vld [vmem:[%s1352_s0 + $0x160] sm:$0xff] }
  0x17   :  { %v535_v44 = vld [vmem:[%s1352_s0 + $0x1d0] sm:$0xff]  ;;  %532 = vst [vmem:[%s1353_s1 + $0x130] sm:$0xff] %v531_v42  ;;  %534 = vst [vmem:[%s1353_s1 + $0x1a0] sm:$0xff] %v533_v43  ;;  %v537_v45 = vld [vmem:[%s1352_s0 + $0x240] sm:$0xff] }
  0x18   :  { %536 = vst [vmem:[%s1353_s1 + $0x210] sm:$0xff] %v535_v44  ;;  %v539_v46 = vld [vmem:[%s1352_s0 + $0x2b0] sm:$0xff]  ;;  %v541_v47 = vld [vmem:[%s1352_s0 + $0x320] sm:$0xff]  ;;  %538 = vst [vmem:[%s1353_s1 + $0x280] sm:$0xff] %v537_v45 }
  0x19   :  { %540 = vst [vmem:[%s1353_s1 + $0x2f0] sm:$0xff] %v539_v46  ;;  %542 = vst [vmem:[%s1353_s1 + $0x360] sm:$0xff] %v541_v47  ;;  %v193_v48 = vld [vmem:[%s1352_s0] sm:$0xff]  ;;  %v544_v49 = vld [vmem:[%s1352_s0 + $0x70] sm:$0xff] }
  0x1a   :  { %v546_v50 = vld [vmem:[%s1352_s0 + $0xe0] sm:$0xff]  ;;  %543 = vst [vmem:[%s1353_s1 + $0x60] sm:$0xff] %v193_v48  ;;  %545 = vst [vmem:[%s1353_s1 + $0xd0] sm:$0xff] %v544_v49  ;;  %v548_v51 = vld [vmem:[%s1352_s0 + $0x150] sm:$0xff] }
  0x1b   :  { %547 = vst [vmem:[%s1353_s1 + $0x140] sm:$0xff] %v546_v50  ;;  %v550_v52 = vld [vmem:[%s1352_s0 + $0x1c0] sm:$0xff]  ;;  %v552_v53 = vld [vmem:[%s1352_s0 + $0x230] sm:$0xff]  ;;  %549 = vst [vmem:[%s1353_s1 + $0x1b0] sm:$0xff] %v548_v51 }
  0x1c   :  { %551 = vst [vmem:[%s1353_s1 + $0x220] sm:$0xff] %v550_v52  ;;  %553 = vst [vmem:[%s1353_s1 + $0x290] sm:$0xff] %v552_v53  ;;  %v554_v54 = vld [vmem:[%s1352_s0 + $0x2a0] sm:$0xff]  ;;  %v556_v55 = vld [vmem:[%s1352_s0 + $0x310] sm:$0xff] }
  0x1d   :  { %555 = vst [vmem:[%s1353_s1 + $0x300] sm:$0xff] %v554_v54  ;;  %557 = vst [vmem:[%s1353_s1 + $0x370] sm:$0xff] %v556_v55  ;;  %v560_v57 = vld [vmem:[%s1352_s0 + $0xd8] sm:$0xff]  ;;  %v562_v58 = vld [vmem:[%s1352_s0 + $0x148] sm:$0xff] }
  0x1e   :  { %559 = vst [vmem:[%s1353_s1 + $0x8] sm:$0xff] %v558_v56  ;;  %v564_v59 = vld [vmem:[%s1352_s0 + $0x1b8] sm:$0xff]  ;;  %561 = vst [vmem:[%s1353_s1 + $0x78] sm:$0xff] %v560_v57  ;;  %v566_v60 = vld [vmem:[%s1352_s0 + $0x228] sm:$0xff] }
  0x1f   :  { %563 = vst [vmem:[%s1353_s1 + $0xe8] sm:$0xff] %v562_v58  ;;  %565 = vst [vmem:[%s1353_s1 + $0x158] sm:$0xff] %v564_v59  ;;  %v568_v61 = vld [vmem:[%s1352_s0 + $0x298] sm:$0xff]  ;;  %v570_v62 = vld [vmem:[%s1352_s0 + $0x308] sm:$0xff] }
  0x20   :  { %567 = vst [vmem:[%s1353_s1 + $0x1c8] sm:$0xff] %v566_v60  ;;  %569 = vst [vmem:[%s1353_s1 + $0x238] sm:$0xff] %v568_v61  ;;  %v572_v63 = vld [vmem:[%s1352_s0 + $0x378] sm:$0xff]  ;;  %v576_v1 = vld [vmem:[%s1352_s0 + $0xc8] sm:$0xff] }
  0x21   :  { %571 = vst [vmem:[%s1353_s1 + $0x2a8] sm:$0xff] %v570_v62  ;;  %v574_v0 = vld [vmem:[%s1352_s0 + $0x58] sm:$0xff]  ;;  %573 = vst [vmem:[%s1353_s1 + $0x318] sm:$0xff] %v572_v63  ;;  %v580_v3 = vld [vmem:[%s1352_s0 + $0x1a8] sm:$0xff] }
  0x22   :  { %575 = vst [vmem:[%s1353_s1 + $0x18] sm:$0xff] %v574_v0  ;;  %577 = vst [vmem:[%s1353_s1 + $0x88] sm:$0xff] %v576_v1  ;;  %v578_v2 = vld [vmem:[%s1352_s0 + $0x138] sm:$0xff]  ;;  %v584_v5 = vld [vmem:[%s1352_s0 + $0x288] sm:$0xff] }
  0x23   :  { %v582_v4 = vld [vmem:[%s1352_s0 + $0x218] sm:$0xff]  ;;  %579 = vst [vmem:[%s1353_s1 + $0xf8] sm:$0xff] %v578_v2  ;;  %581 = vst [vmem:[%s1353_s1 + $0x168] sm:$0xff] %v580_v3  ;;  %v588_v7 = vld [vmem:[%s1352_s0 + $0x368] sm:$0xff] }
  0x24   :  { %583 = vst [vmem:[%s1353_s1 + $0x1d8] sm:$0xff] %v582_v4  ;;  %v586_v6 = vld [vmem:[%s1352_s0 + $0x2f8] sm:$0xff]  ;;  %585 = vst [vmem:[%s1353_s1 + $0x248] sm:$0xff] %v584_v5  ;;  %v590_v8 = vld [vmem:[%s1352_s0 + $0x48] sm:$0xff] }
  0x25   :  { %587 = vst [vmem:[%s1353_s1 + $0x2b8] sm:$0xff] %v586_v6  ;;  %589 = vst [vmem:[%s1353_s1 + $0x328] sm:$0xff] %v588_v7  ;;  %v592_v9 = vld [vmem:[%s1352_s0 + $0xb8] sm:$0xff]  ;;  %v594_v10 = vld [vmem:[%s1352_s0 + $0x128] sm:$0xff] }
  0x26   :  { %591 = vst [vmem:[%s1353_s1 + $0x28] sm:$0xff] %v590_v8  ;;  %593 = vst [vmem:[%s1353_s1 + $0x98] sm:$0xff] %v592_v9  ;;  %v596_v11 = vld [vmem:[%s1352_s0 + $0x198] sm:$0xff]  ;;  %v598_v12 = vld [vmem:[%s1352_s0 + $0x208] sm:$0xff] }
  0x27   :  { %595 = vst [vmem:[%s1353_s1 + $0x108] sm:$0xff] %v594_v10  ;;  %v600_v13 = vld [vmem:[%s1352_s0 + $0x278] sm:$0xff]  ;;  %597 = vst [vmem:[%s1353_s1 + $0x178] sm:$0xff] %v596_v11  ;;  %v602_v14 = vld [vmem:[%s1352_s0 + $0x2e8] sm:$0xff] }
  0x28   :  { %599 = vst [vmem:[%s1353_s1 + $0x1e8] sm:$0xff] %v598_v12  ;;  %601 = vst [vmem:[%s1353_s1 + $0x258] sm:$0xff] %v600_v13  ;;  %v604_v15 = vld [vmem:[%s1352_s0 + $0x358] sm:$0xff]  ;;  %v608_v17 = vld [vmem:[%s1352_s0 + $0xa8] sm:$0xff] }
  0x29   :  { %v606_v16 = vld [vmem:[%s1352_s0 + $0x38] sm:$0xff]  ;;  %603 = vst [vmem:[%s1353_s1 + $0x2c8] sm:$0xff] %v602_v14  ;;  %605 = vst [vmem:[%s1353_s1 + $0x338] sm:$0xff] %v604_v15  ;;  %v612_v19 = vld [vmem:[%s1352_s0 + $0x188] sm:$0xff] }
  0x2a   :  { %607 = vst [vmem:[%s1353_s1 + $0x38] sm:$0xff] %v606_v16  ;;  %v610_v18 = vld [vmem:[%s1352_s0 + $0x118] sm:$0xff]  ;;  %609 = vst [vmem:[%s1353_s1 + $0xa8] sm:$0xff] %v608_v17  ;;  %v616_v21 = vld [vmem:[%s1352_s0 + $0x268] sm:$0xff] }
  0x2b   :  { %611 = vst [vmem:[%s1353_s1 + $0x118] sm:$0xff] %v610_v18  ;;  %613 = vst [vmem:[%s1353_s1 + $0x188] sm:$0xff] %v612_v19  ;;  %v614_v20 = vld [vmem:[%s1352_s0 + $0x1f8] sm:$0xff]  ;;  %v620_v23 = vld [vmem:[%s1352_s0 + $0x348] sm:$0xff] }
  0x2c   :  { %v618_v22 = vld [vmem:[%s1352_s0 + $0x2d8] sm:$0xff]  ;;  %615 = vst [vmem:[%s1353_s1 + $0x1f8] sm:$0xff] %v614_v20  ;;  %617 = vst [vmem:[%s1353_s1 + $0x268] sm:$0xff] %v616_v21  ;;  %v622_v24 = vld [vmem:[%s1352_s0 + $0x28] sm:$0xff] }
  0x2d   :  { %619 = vst [vmem:[%s1353_s1 + $0x2d8] sm:$0xff] %v618_v22  ;;  %v624_v25 = vld [vmem:[%s1352_s0 + $0x98] sm:$0xff]  ;;  %621 = vst [vmem:[%s1353_s1 + $0x348] sm:$0xff] %v620_v23  ;;  %v626_v26 = vld [vmem:[%s1352_s0 + $0x108] sm:$0xff] }
  0x2e   :  { %623 = vst [vmem:[%s1353_s1 + $0x48] sm:$0xff] %v622_v24  ;;  %625 = vst [vmem:[%s1353_s1 + $0xb8] sm:$0xff] %v624_v25  ;;  %v628_v27 = vld [vmem:[%s1352_s0 + $0x178] sm:$0xff]  ;;  %v630_v28 = vld [vmem:[%s1352_s0 + $0x1e8] sm:$0xff] }
  0x2f   :  { %627 = vst [vmem:[%s1353_s1 + $0x128] sm:$0xff] %v626_v26  ;;  %629 = vst [vmem:[%s1353_s1 + $0x198] sm:$0xff] %v628_v27  ;;  %v632_v29 = vld [vmem:[%s1352_s0 + $0x258] sm:$0xff]  ;;  %v634_v30 = vld [vmem:[%s1352_s0 + $0x2c8] sm:$0xff] }
  0x30   :  { %631 = vst [vmem:[%s1353_s1 + $0x208] sm:$0xff] %v630_v28  ;;  %v636_v31 = vld [vmem:[%s1352_s0 + $0x338] sm:$0xff]  ;;  %633 = vst [vmem:[%s1353_s1 + $0x278] sm:$0xff] %v632_v29  ;;  %v640_v33 = vld [vmem:[%s1352_s0 + $0x88] sm:$0xff] }
  0x31   :  { %635 = vst [vmem:[%s1353_s1 + $0x2e8] sm:$0xff] %v634_v30  ;;  %637 = vst [vmem:[%s1353_s1 + $0x358] sm:$0xff] %v636_v31  ;;  %v638_v32 = vld [vmem:[%s1352_s0 + $0x18] sm:$0xff]  ;;  %v644_v35 = vld [vmem:[%s1352_s0 + $0x168] sm:$0xff] }
  0x32   :  { %v642_v34 = vld [vmem:[%s1352_s0 + $0xf8] sm:$0xff]  ;;  %639 = vst [vmem:[%s1353_s1 + $0x58] sm:$0xff] %v638_v32  ;;  %641 = vst [vmem:[%s1353_s1 + $0xc8] sm:$0xff] %v640_v33  ;;  %v648_v37 = vld [vmem:[%s1352_s0 + $0x248] sm:$0xff] }
  0x33   :  { %643 = vst [vmem:[%s1353_s1 + $0x138] sm:$0xff] %v642_v34  ;;  %v646_v36 = vld [vmem:[%s1352_s0 + $0x1d8] sm:$0xff]  ;;  %645 = vst [vmem:[%s1353_s1 + $0x1a8] sm:$0xff] %v644_v35  ;;  %v652_v39 = vld [vmem:[%s1352_s0 + $0x328] sm:$0xff] }
  0x34   :  { %647 = vst [vmem:[%s1353_s1 + $0x218] sm:$0xff] %v646_v36  ;;  %649 = vst [vmem:[%s1353_s1 + $0x288] sm:$0xff] %v648_v37  ;;  %v650_v38 = vld [vmem:[%s1352_s0 + $0x2b8] sm:$0xff]  ;;  %v654_v40 = vld [vmem:[%s1352_s0 + $0x8] sm:$0xff] }
  0x35   :  { %651 = vst [vmem:[%s1353_s1 + $0x2f8] sm:$0xff] %v650_v38  ;;  %653 = vst [vmem:[%s1353_s1 + $0x368] sm:$0xff] %v652_v39  ;;  %v656_v41 = vld [vmem:[%s1352_s0 + $0x78] sm:$0xff]  ;;  %v658_v42 = vld [vmem:[%s1352_s0 + $0xe8] sm:$0xff] }
  0x36   :  { %655 = vst [vmem:[%s1353_s1 + $0x68] sm:$0xff] %v654_v40  ;;  %v660_v43 = vld [vmem:[%s1352_s0 + $0x158] sm:$0xff]  ;;  %657 = vst [vmem:[%s1353_s1 + $0xd8] sm:$0xff] %v656_v41  ;;  %v662_v44 = vld [vmem:[%s1352_s0 + $0x1c8] sm:$0xff] }
  0x37   :  { %659 = vst [vmem:[%s1353_s1 + $0x148] sm:$0xff] %v658_v42  ;;  %661 = vst [vmem:[%s1353_s1 + $0x1b8] sm:$0xff] %v660_v43  ;;  %v664_v45 = vld [vmem:[%s1352_s0 + $0x238] sm:$0xff]  ;;  %v666_v46 = vld [vmem:[%s1352_s0 + $0x2a8] sm:$0xff] }
  0x38   :  { %663 = vst [vmem:[%s1353_s1 + $0x228] sm:$0xff] %v662_v44  ;;  %665 = vst [vmem:[%s1353_s1 + $0x298] sm:$0xff] %v664_v45  ;;  %v668_v47 = vld [vmem:[%s1352_s0 + $0x318] sm:$0xff] }
  0x39   :  { %667 = vst [vmem:[%s1353_s1 + $0x308] sm:$0xff] %v666_v46  ;;  %669 = vst [vmem:[%s1353_s1 + $0x378] sm:$0xff] %v668_v47 }

// kernel: _lambda_.12
= control target key start
LH: loop header
LB: loop body
LE: loop exit
PB: predicated region body
PF: predicated region fallthrough
CT: control target
= control target key end

     0   :  { %s704_s15 = smov 0   ;;  %s706_s16 = smov 0   ;;  %s790_s0 = inlined_call_operand.vmem [shape: bf16[16,2048], index: 0, kind: input, shape index: {}]   ;;  %s791_s1 = inlined_call_operand.vmem [shape: bf16[16,16], index: 1, kind: input, shape index: {}]   ;;  %s792_s2 = inlined_call_operand.vmem [shape: f32[16,1], index: 2, kind: input, shape index: {}]   ;;  %s793_s3 = inlined_call_operand.vmem [shape: f32[16,2048], index: 3, kind: input, shape index: {}]   ;;  %s794_s4 = inlined_call_operand.vmem [shape: bf16[16,2048], index: 4, kind: output, shape index: {}]  }
   0x1   :  { %s708_s17 = smov 0  }
   0x2 LB: > { %s568_s18 = sadd.s32 4294967295, %s676_s17   ;;  %s721_s19 = sadd.s32 1, %s676_s17   ;;  %s676_s17 = sphi %s708_s17, %s799_s17   ;;  %s672_s16 = sphi %s706_s16, %s798_s16   ;;  %s668_s15 = sphi %s704_s15, %s797_s15  }
   0x3   : > { %s18_s20 = ssub.s32 %s676_s17, %s721_s19  ;;  %s21_s21 = sadd.s32 1, %s672_s16 }
   0x4   : > { %p19_p0 = scmp.eq.s32.totalorder %s18_s20, 0  ;;  %p28_p1 = scmp.ne.s32.totalorder %s672_s16, %s668_s15 }
   0x5   : > { %p29_p2 = scmp.eq.s32.totalorder %s676_s17, 0  ;;  %p126_p3 = scmp.eq.s32.totalorder %s568_s18, 3 }
   0x6   : > { %s732_s22 = scalar_select %p19_p0, %s672_s16, %s21_s21  }
   0x7   : > { %p734_p4 = por %p29_p2, %p28_p1  ;;  %p738_p5 = por %p126_p3, %p28_p1 }
   0x8   : > { %p571_p6 = scmp.ge.s32.totalorder %s676_s17, 4 }
   0xa   : > { %154 = sbr.rel (%p571_p6) target bundleno = 32 (0x20), region = 24 }
  0x11   : > { %157 = sbr.rel (!%p734_p4) target bundleno = 24 (0x18), region = 28  ;;  %s159_s25 = sand.u32 (%p734_p4), 1, %s672_s16  }
  0x12   : > { %s598_s26 = sshll.u32 (%p734_p4), %s676_s17, 4  ;;  %s572_s27 = sshll.u32 (%p734_p4), %s159_s25, 5 }
  0x13   : > { %s164_s30 = scalar_lea.vmem (%p734_p4), %s790_s0, %s598_s26  ;;  %s161_s5 = scalar_lea.vmem (%p734_p4), [#allocation2], %s572_s27 }
  0x14   : > { %v177_v0 = vld [vmem:[%s164_s30] sm:$0xff] (%p734_p4)  ;;  %v179_v1 = vld [vmem:[%s164_s30 + $0x8] sm:$0xff] (%p734_p4) }
  0x15   : > { %v181_v2 = vld [vmem:[%s164_s30 + $0x40] sm:$0xff] (%p734_p4)  ;;  %178 = vst [vmem:[%s161_s5] sm:$0xff] (%p734_p4), %v177_v0  ;;  %180 = vst [vmem:[%s161_s5 + $0x8] sm:$0xff] (%p734_p4), %v179_v1  ;;  %v183_v3 = vld [vmem:[%s164_s30 + $0x48] sm:$0xff] (%p734_p4) }
  0x16   : > { %182 = vst [vmem:[%s161_s5 + $0x10] sm:$0xff] (%p734_p4), %v181_v2  ;;  %184 = vst [vmem:[%s161_s5 + $0x18] sm:$0xff] (%p734_p4), %v183_v3 }
  0x18 PF: > { %190 = sbr.rel (!%p734_p4) target bundleno = 32 (0x20), region = 51  ;;  %s192_s6 = sand.u32 (%p734_p4), 1, %s672_s16  }
  0x19   : > { %s599_s7 = sshll.u32 (%p734_p4), %s676_s17, 5  ;;  %s575_s8 = sshll.u32 (%p734_p4), %s192_s6, 6 }
  0x1a   : > { %s197_s11 = scalar_lea.vmem (%p734_p4), %s793_s3, %s599_s7  ;;  %s194_s12 = scalar_lea.vmem (%p734_p4), [#allocation3], %s575_s8 }
  0x1b   : > { %v210_v4 = vld [vmem:[%s197_s11] sm:$0xff] (%p734_p4)  ;;  %v212_v5 = vld [vmem:[%s197_s11 + $0x8] sm:$0xff] (%p734_p4)  ;;  %v214_v6 = vld [vmem:[%s197_s11 + $0x10] sm:$0xff] (%p734_p4) }
  0x1c   : > { %211 = vst [vmem:[%s194_s12] sm:$0xff] (%p734_p4), %v210_v4  ;;  %213 = vst [vmem:[%s194_s12 + $0x8] sm:$0xff] (%p734_p4), %v212_v5  ;;  %v216_v7 = vld [vmem:[%s197_s11 + $0x18] sm:$0xff] (%p734_p4)  ;;  %v218_v8 = vld [vmem:[%s197_s11 + $0x80] sm:$0xff] (%p734_p4) }
  0x1d   : > { %215 = vst [vmem:[%s194_s12 + $0x10] sm:$0xff] (%p734_p4), %v214_v6  ;;  %v220_v9 = vld [vmem:[%s197_s11 + $0x88] sm:$0xff] (%p734_p4)  ;;  %217 = vst [vmem:[%s194_s12 + $0x18] sm:$0xff] (%p734_p4), %v216_v7  ;;  %v222_v10 = vld [vmem:[%s197_s11 + $0x90] sm:$0xff] (%p734_p4) }
  0x1e   : > { %219 = vst [vmem:[%s194_s12 + $0x20] sm:$0xff] (%p734_p4), %v218_v8  ;;  %221 = vst [vmem:[%s194_s12 + $0x28] sm:$0xff] (%p734_p4), %v220_v9  ;;  %v224_v11 = vld [vmem:[%s197_s11 + $0x98] sm:$0xff] (%p734_p4) }
  0x1f   : > { %223 = vst [vmem:[%s194_s12 + $0x30] sm:$0xff] %v222_v10  ;;  %225 = vst [vmem:[%s194_s12 + $0x38] sm:$0xff] %v224_v11 }
  0x20 PF: > { %p578_p7 = scmp.ge.s32.totalorder %s676_s17, 1  ;;  %p230_p8 = scmp.lt.s32.totalorder %s676_s17, 5 }
  0x22   : > { %p231_p9 = pnand %p578_p7, %p230_p8 }
  0x23   : > { %s237_s13 = sand.u32 (!%p231_p9), 1, %s668_s15   ;;  %v678_v12 = vmov (!%p231_p9), 0   ;;  %v282_v13 = vld [vmem:[%s792_s2] sm:$0xff] (!%p231_p9)  ;;  %v283_v18 = vld [vmem:[%s792_s2 + $0x8] sm:$0xff] (!%p231_p9)  ;;  %vm319_vm0 = vcmask (!%p231_p9), 130048  }
  0x24   : > { %234 = sbr.rel (%p231_p9) target bundleno = 288 (0x120), region = 74  ;;  %s760_s14 = sshll.u32 (!%p231_p9), %s237_s13, 5  ;;  %355 = vmatprep.mubr.bf16.mxu0 (!%p231_p9), %v678_v12  ;;  %398 = vmatprep.mubr.bf16.mxu1 (!%p231_p9), %v678_v12  ;;  %v637_v19 = vld [vmem:[%s791_s1] sm:$0xff] (!%p231_p9)  }
  0x25   : > { %630 = vset.pattern.permute.xlu0 (!%p231_p9), %v678_v12  ;;  %s239_s23 = scalar_lea.vmem (!%p231_p9), [#allocation2], %s760_s14  ;;  %s580_s28 = sshll.u32 (!%p231_p9), %s237_s13, 6 }
  0x26   : > { %v631_v14 = vld [vmem:[%s239_s23 + $0x4] ss:$16 sps:$4 sm:$0xff] (!%p231_p9)   ;;  %286 = vperm.xlu0 (!%p231_p9), %630, %v282_v13   ;;  %v633_v15 = vld [vmem:[%s239_s23 + $0xc] ss:$16 sps:$4 sm:$0xff] (!%p231_p9)   ;;  %v635_v16 = vld [vmem:[%s239_s23] ss:$16 sps:$4 sm:$0xff] (!%p231_p9)  }
  0x27   : > { %323 = vmatprep.subr.bf16.mxu0 (!%p231_p9), %v631_v14  ;;  %v636_v17 = vld [vmem:[%s239_s23 + $0x8] ss:$16 sps:$4 sm:$0xff] (!%p231_p9)   ;;  %366 = vmatprep.subr.bf16.mxu1 (!%p231_p9), %v633_v15  ;;  %s246_s29 = scalar_lea.vmem (!%p231_p9), [#allocation3], %s580_s28  ;;  %s271_s30 = scalar_lea.vmem (!%p231_p9), [#allocation4], %s760_s14 }
  0x28   : > { %324 = vmatpush1.bf16.msra.mxu0 (!%p231_p9), %v635_v16  ;;  %367 = vmatpush1.bf16.msra.mxu1 (!%p231_p9), %v636_v17  ;;  %v409_v23 = vld [vmem:[%s246_s29] sm:$0xff] (!%p231_p9)  ;;  %v411_v25 = vld [vmem:[%s246_s29 + $0x10] sm:$0xff] (!%p231_p9)  ;;  %v410_v29 = vld [vmem:[%s246_s29 + $0x8] sm:$0xff] (!%p231_p9) }
  0x29   : > { %v412_v31 = vld [vmem:[%s246_s29 + $0x18] sm:$0xff] (!%p231_p9)  ;;  %v413_v35 = vld [vmem:[%s246_s29 + $0x20] sm:$0xff] (!%p231_p9)  ;;  %v415_v37 = vld [vmem:[%s246_s29 + $0x30] sm:$0xff] (!%p231_p9) }
  0x2a   : > { %291 = vperm.xlu0 (!%p231_p9), %630, %v283_v18   ;;  %v414_v43 = vld [vmem:[%s246_s29 + $0x28] sm:$0xff] (!%p231_p9)  ;;  %v416_v45 = vld [vmem:[%s246_s29 + $0x38] sm:$0xff] (!%p231_p9) }
  0x2b   : > { %587 = vmatmul.mubr.msk.bf16.vlgmr.msra.gmra.mrb[0].mxu0 %vm319_vm0, %v637_v19  ;;  %588 = vmatmul.mubr.msk.bf16.vlgmr.msra.gmra.mrb[0].mxu1 %vm319_vm0, %v637_v19  ;;  %s604_s5 = sshll.u32 (%p738_p5), %s568_s18, 4 }
  0x2c   : > { %s470_s8 = scalar_lea.vmem (%p738_p5), %s794_s4, %s604_s5 }
  0xa5   : > { %v287_v20 = vpop.permute.xlu0 %286 }
  0xa9   : > { %v292_v21 = vpop.permute.xlu0 %291 }
  0xfe   : > { %v357_v22 = vpop.f32.mrb[0].mxu0  ;;  %v400_v24 = vpop.f32.mrb[0].mxu1 }
  0xff   : > { %v358_v26 = vadd.f32 %v357_v22, %v287_v20  ;;  %v401_v27 = vadd.f32 %v400_v24, %v287_v20  ;;  %v359_v28 = vpop.f32.mrb[1].mxu0  ;;  %v402_v30 = vpop.f32.mrb[1].mxu1 }
 0x100   : > { %v360_v32 = vadd.f32 %v359_v28, %v287_v20  ;;  %v403_v33 = vadd.f32 %v402_v30, %v287_v20  ;;  %v361_v34 = vpop.f32.mrb[2].mxu0  ;;  %v404_v36 = vpop.f32.mrb[2].mxu1 }
 0x101   : > { %v417_v38 = vadd.f32 %v409_v23, %v358_v26  ;;  %v419_v39 = vadd.f32 %v411_v25, %v401_v27  ;;  %v362_v40 = vadd.f32 %v361_v34, %v292_v21  ;;  %v405_v41 = vadd.f32 %v404_v36, %v292_v21  ;;  %v363_v42 = vpop.f32.mrb[3].mxu0  ;;  %v406_v44 = vpop.f32.mrb[3].mxu1 }
 0x102   : > { %v418_v46 = vadd.f32 %v410_v29, %v360_v32  ;;  %v420_v47 = vadd.f32 %v412_v31, %v403_v33  ;;  %v364_v48 = vadd.f32 %v363_v42, %v292_v21  ;;  %v407_v49 = vadd.f32 %v406_v44, %v292_v21 }
 0x103   : > { %638 = vtanh.f32 %v417_v38  ;;  %v421_v50 = vadd.f32 %v413_v35, %v362_v40  ;;  %v423_v51 = vadd.f32 %v415_v37, %v405_v41 }
 0x104   : > { %640 = vtanh.f32 %v419_v39  ;;  %v422_v52 = vadd.f32 %v414_v43, %v364_v48  ;;  %v424_v53 = vadd.f32 %v416_v45, %v407_v49 }
 0x105   : > { %642 = vtanh.f32 %v418_v46 }
 0x106   : > { %644 = vtanh.f32 %v420_v47 }
 0x107   : > { %646 = vtanh.f32 %v421_v50 }
 0x108   : > { %648 = vtanh.f32 %v423_v51 }
 0x109   : > { %650 = vtanh.f32 %v422_v52 }
 0x10a   : > { %652 = vtanh.f32 %v424_v53 }
 0x10d   : > { %v639_v54 = vpop.eup %638 }
 0x10e   : > { %v641_v55 = vpop.eup %640 }
 0x10f   : > { %v643_v56 = vpop.eup %642 }
 0x110   : > { %v645_v57 = vpop.eup %644  ;;  %v600_v58 = vpack.c.bf16 %v643_v56, %v639_v54 }
 0x111   : > { %v647_v59 = vpop.eup %646  ;;  %v601_v60 = vpack.c.bf16 %v645_v57, %v641_v55  ;;  %467 = sbr.rel (!%p738_p5) target bundleno = 288 (0x120), region = 86 }
 0x112   : > { %v649_v61 = vpop.eup %648  ;;  %457 = vst [vmem:[%s271_s30] sm:$0xff] %v600_v58 }
 0x113   : > { %v651_v62 = vpop.eup %650  ;;  %458 = vst [vmem:[%s271_s30 + $0x8] sm:$0xff] %v601_v60 }
 0x114   : > { %v653_v63 = vpop.eup %652  ;;  %v602_v0 = vpack.c.bf16 %v651_v62, %v647_v59 }
 0x115   : > { %v603_v1 = vpack.c.bf16 %v653_v63, %v649_v61 }
 0x116   : > { %459 = vst [vmem:[%s271_s30 + $0x10] sm:$0xff] %v602_v0 }
 0x117   : > { %460 = vst [vmem:[%s271_s30 + $0x18] sm:$0xff] %v603_v1 }
 0x119   : > { %v483_v2 = vld [vmem:[%s271_s30] sm:$0xff] }
 0x11a   : > { %v485_v3 = vld [vmem:[%s271_s30 + $0x8] sm:$0xff]  ;;  %484 = vst [vmem:[%s470_s8] sm:$0xff] %v483_v2 }
 0x11b   : > { %486 = vst [vmem:[%s470_s8 + $0x8] sm:$0xff] %v485_v3 }
 0x11d   : > { %v487_v4 = vld [vmem:[%s271_s30 + $0x10] sm:$0xff] }
 0x11e   : > { %v489_v5 = vld [vmem:[%s271_s30 + $0x18] sm:$0xff]  ;;  %488 = vst [vmem:[%s470_s8 + $0x40] sm:$0xff] %v487_v4 }
 0x11f   : > { %490 = vst [vmem:[%s470_s8 + $0x48] sm:$0xff] %v489_v5 }
 0x120 PF: > { %p11_p10 = scmp.ge.s32.totalorder %s721_s19, 6   ;;  %s797_s15 = smov %s672_s16 }
 0x121   : > { %s798_s16 = smov %s732_s22  ;;  %s799_s17 = smov %s721_s19 }
 0x122   :  { %13 = sbr.rel (!%p11_p10) target bundleno = 2 (0x2), region = 148 }

// kernel: _lambda_.18
= control target key start
LH: loop header
LB: loop body
LE: loop exit
PB: predicated region body
PF: predicated region fallthrough
CT: control target
= control target key end

     0   :  { %s680_s15 = smov 0   ;;  %s682_s16 = smov 0   ;;  %s766_s0 = inlined_call_operand.vmem [shape: bf16[16,2048], index: 0, kind: input, shape index: {}]   ;;  %s767_s1 = inlined_call_operand.vmem [shape: bf16[16,16], index: 1, kind: input, shape index: {}]   ;;  %s768_s2 = inlined_call_operand.vmem [shape: f32[16,1], index: 2, kind: input, shape index: {}]   ;;  %s769_s3 = inlined_call_operand.vmem [shape: f32[16,2048], index: 3, kind: input, shape index: {}]   ;;  %s770_s4 = inlined_call_operand.vmem [shape: bf16[16,2048], index: 4, kind: output, shape index: {}]  }
   0x1   :  { %s684_s17 = smov 0  }
   0x2 LB: > { %s560_s18 = sadd.s32 4294967295, %s652_s17   ;;  %s697_s19 = sadd.s32 1, %s652_s17   ;;  %s652_s17 = sphi %s684_s17, %s775_s17   ;;  %s648_s16 = sphi %s682_s16, %s774_s16   ;;  %s644_s15 = sphi %s680_s15, %s773_s15  }
   0x3   : > { %s18_s20 = ssub.s32 %s652_s17, %s697_s19  ;;  %s21_s21 = sadd.s32 1, %s648_s16 }
   0x4   : > { %p19_p0 = scmp.eq.s32.totalorder %s18_s20, 0  ;;  %p28_p1 = scmp.ne.s32.totalorder %s648_s16, %s644_s15 }
   0x5   : > { %p29_p2 = scmp.eq.s32.totalorder %s652_s17, 0  ;;  %p126_p3 = scmp.eq.s32.totalorder %s560_s18, 3 }
   0x6   : > { %s708_s22 = scalar_select %p19_p0, %s648_s16, %s21_s21  }
   0x7   : > { %p710_p4 = por %p29_p2, %p28_p1  ;;  %p714_p5 = por %p126_p3, %p28_p1 }
   0x8   : > { %p563_p6 = scmp.ge.s32.totalorder %s652_s17, 4 }
   0xa   : > { %154 = sbr.rel (%p563_p6) target bundleno = 32 (0x20), region = 24 }
  0x11   : > { %157 = sbr.rel (!%p710_p4) target bundleno = 24 (0x18), region = 28  ;;  %s159_s25 = sand.u32 (%p710_p4), 1, %s648_s16  }
  0x12   : > { %s590_s26 = sshll.u32 (%p710_p4), %s652_s17, 4  ;;  %s564_s27 = sshll.u32 (%p710_p4), %s159_s25, 5 }
  0x13   : > { %s164_s30 = scalar_lea.vmem (%p710_p4), %s766_s0, %s590_s26  ;;  %s161_s5 = scalar_lea.vmem (%p710_p4), [#allocation2], %s564_s27 }
  0x14   : > { %v177_v0 = vld [vmem:[%s164_s30] sm:$0xff] (%p710_p4)  ;;  %v179_v1 = vld [vmem:[%s164_s30 + $0x8] sm:$0xff] (%p710_p4) }
  0x15   : > { %v181_v2 = vld [vmem:[%s164_s30 + $0x40] sm:$0xff] (%p710_p4)  ;;  %178 = vst [vmem:[%s161_s5] sm:$0xff] (%p710_p4), %v177_v0  ;;  %180 = vst [vmem:[%s161_s5 + $0x8] sm:$0xff] (%p710_p4), %v179_v1  ;;  %v183_v3 = vld [vmem:[%s164_s30 + $0x48] sm:$0xff] (%p710_p4) }
  0x16   : > { %182 = vst [vmem:[%s161_s5 + $0x10] sm:$0xff] (%p710_p4), %v181_v2  ;;  %184 = vst [vmem:[%s161_s5 + $0x18] sm:$0xff] (%p710_p4), %v183_v3 }
  0x18 PF: > { %190 = sbr.rel (!%p710_p4) target bundleno = 32 (0x20), region = 51  ;;  %s192_s6 = sand.u32 (%p710_p4), 1, %s648_s16  }
  0x19   : > { %s591_s7 = sshll.u32 (%p710_p4), %s652_s17, 5  ;;  %s567_s8 = sshll.u32 (%p710_p4), %s192_s6, 6 }
  0x1a   : > { %s197_s11 = scalar_lea.vmem (%p710_p4), %s769_s3, %s591_s7  ;;  %s194_s12 = scalar_lea.vmem (%p710_p4), [#allocation3], %s567_s8 }
  0x1b   : > { %v210_v4 = vld [vmem:[%s197_s11] sm:$0xff] (%p710_p4)  ;;  %v212_v5 = vld [vmem:[%s197_s11 + $0x8] sm:$0xff] (%p710_p4)  ;;  %v214_v6 = vld [vmem:[%s197_s11 + $0x10] sm:$0xff] (%p710_p4) }
  0x1c   : > { %211 = vst [vmem:[%s194_s12] sm:$0xff] (%p710_p4), %v210_v4  ;;  %213 = vst [vmem:[%s194_s12 + $0x8] sm:$0xff] (%p710_p4), %v212_v5  ;;  %v216_v7 = vld [vmem:[%s197_s11 + $0x18] sm:$0xff] (%p710_p4)  ;;  %v218_v8 = vld [vmem:[%s197_s11 + $0x80] sm:$0xff] (%p710_p4) }
  0x1d   : > { %215 = vst [vmem:[%s194_s12 + $0x10] sm:$0xff] (%p710_p4), %v214_v6  ;;  %v220_v9 = vld [vmem:[%s197_s11 + $0x88] sm:$0xff] (%p710_p4)  ;;  %217 = vst [vmem:[%s194_s12 + $0x18] sm:$0xff] (%p710_p4), %v216_v7  ;;  %v222_v10 = vld [vmem:[%s197_s11 + $0x90] sm:$0xff] (%p710_p4) }
  0x1e   : > { %219 = vst [vmem:[%s194_s12 + $0x20] sm:$0xff] (%p710_p4), %v218_v8  ;;  %221 = vst [vmem:[%s194_s12 + $0x28] sm:$0xff] (%p710_p4), %v220_v9  ;;  %v224_v11 = vld [vmem:[%s197_s11 + $0x98] sm:$0xff] (%p710_p4) }
  0x1f   : > { %223 = vst [vmem:[%s194_s12 + $0x30] sm:$0xff] %v222_v10  ;;  %225 = vst [vmem:[%s194_s12 + $0x38] sm:$0xff] %v224_v11 }
  0x20 PF: > { %p570_p7 = scmp.ge.s32.totalorder %s652_s17, 1  ;;  %p230_p8 = scmp.lt.s32.totalorder %s652_s17, 5 }
  0x22   : > { %p231_p9 = pnand %p570_p7, %p230_p8 }
  0x23   : > { %s237_s13 = sand.u32 (!%p231_p9), 1, %s644_s15   ;;  %v654_v12 = vmov (!%p231_p9), 0   ;;  %v282_v13 = vld [vmem:[%s768_s2] sm:$0xff] (!%p231_p9)  ;;  %v283_v18 = vld [vmem:[%s768_s2 + $0x8] sm:$0xff] (!%p231_p9)  ;;  %vm319_vm0 = vcmask (!%p231_p9), 130048  }
  0x24   : > { %234 = sbr.rel (%p231_p9) target bundleno = 273 (0x111), region = 74  ;;  %s736_s14 = sshll.u32 (!%p231_p9), %s237_s13, 5  ;;  %355 = vmatprep.mubr.bf16.mxu0 (!%p231_p9), %v654_v12  ;;  %398 = vmatprep.mubr.bf16.mxu1 (!%p231_p9), %v654_v12  ;;  %v629_v19 = vld [vmem:[%s767_s1] sm:$0xff] (!%p231_p9)  }
  0x25   : > { %622 = vset.pattern.permute.xlu0 (!%p231_p9), %v654_v12  ;;  %s239_s23 = scalar_lea.vmem (!%p231_p9), [#allocation2], %s736_s14  ;;  %s572_s28 = sshll.u32 (!%p231_p9), %s237_s13, 6 }
  0x26   : > { %v623_v14 = vld [vmem:[%s239_s23 + $0x4] ss:$16 sps:$4 sm:$0xff] (!%p231_p9)   ;;  %286 = vperm.xlu0 (!%p231_p9), %622, %v282_v13   ;;  %v625_v15 = vld [vmem:[%s239_s23 + $0xc] ss:$16 sps:$4 sm:$0xff] (!%p231_p9)   ;;  %v627_v16 = vld [vmem:[%s239_s23] ss:$16 sps:$4 sm:$0xff] (!%p231_p9)  }
  0x27   : > { %323 = vmatprep.subr.bf16.mxu0 (!%p231_p9), %v623_v14  ;;  %v628_v17 = vld [vmem:[%s239_s23 + $0x8] ss:$16 sps:$4 sm:$0xff] (!%p231_p9)   ;;  %366 = vmatprep.subr.bf16.mxu1 (!%p231_p9), %v625_v15  ;;  %s246_s29 = scalar_lea.vmem (!%p231_p9), [#allocation3], %s572_s28  ;;  %s271_s30 = scalar_lea.vmem (!%p231_p9), [#allocation4], %s736_s14 }
  0x28   : > { %324 = vmatpush1.bf16.msra.mxu0 (!%p231_p9), %v627_v16  ;;  %367 = vmatpush1.bf16.msra.mxu1 (!%p231_p9), %v628_v17  ;;  %v409_v23 = vld [vmem:[%s246_s29] sm:$0xff] (!%p231_p9)  ;;  %v411_v25 = vld [vmem:[%s246_s29 + $0x10] sm:$0xff] (!%p231_p9)  ;;  %v410_v29 = vld [vmem:[%s246_s29 + $0x8] sm:$0xff] (!%p231_p9) }
  0x29   : > { %v412_v31 = vld [vmem:[%s246_s29 + $0x18] sm:$0xff] (!%p231_p9)  ;;  %v413_v35 = vld [vmem:[%s246_s29 + $0x20] sm:$0xff] (!%p231_p9)  ;;  %v415_v37 = vld [vmem:[%s246_s29 + $0x30] sm:$0xff] (!%p231_p9) }
  0x2a   : > { %291 = vperm.xlu0 (!%p231_p9), %622, %v283_v18   ;;  %v414_v43 = vld [vmem:[%s246_s29 + $0x28] sm:$0xff] (!%p231_p9)  ;;  %v416_v45 = vld [vmem:[%s246_s29 + $0x38] sm:$0xff] (!%p231_p9) }
  0x2b   : > { %579 = vmatmul.mubr.msk.bf16.vlgmr.msra.gmra.mrb[0].mxu0 %vm319_vm0, %v629_v19  ;;  %580 = vmatmul.mubr.msk.bf16.vlgmr.msra.gmra.mrb[0].mxu1 %vm319_vm0, %v629_v19  ;;  %s596_s5 = sshll.u32 (%p714_p5), %s560_s18, 4 }
  0x2c   : > { %s462_s8 = scalar_lea.vmem (%p714_p5), %s770_s4, %s596_s5 }
  0xa5   : > { %v287_v20 = vpop.permute.xlu0 %286 }
  0xa9   : > { %v292_v21 = vpop.permute.xlu0 %291 }
  0xfe   : > { %v357_v22 = vpop.f32.mrb[0].mxu0  ;;  %v400_v24 = vpop.f32.mrb[0].mxu1 }
  0xff   : > { %v358_v26 = vadd.f32 %v357_v22, %v287_v20  ;;  %v401_v27 = vadd.f32 %v400_v24, %v287_v20  ;;  %v359_v28 = vpop.f32.mrb[1].mxu0  ;;  %v402_v30 = vpop.f32.mrb[1].mxu1 }
 0x100   : > { %v360_v32 = vadd.f32 %v359_v28, %v287_v20  ;;  %v403_v33 = vadd.f32 %v402_v30, %v287_v20  ;;  %v361_v34 = vpop.f32.mrb[2].mxu0  ;;  %v404_v36 = vpop.f32.mrb[2].mxu1 }
 0x101   : > { %v417_v38 = vadd.f32 %v409_v23, %v358_v26  ;;  %v419_v39 = vadd.f32 %v411_v25, %v401_v27  ;;  %v362_v40 = vadd.f32 %v361_v34, %v292_v21  ;;  %v405_v41 = vadd.f32 %v404_v36, %v292_v21  ;;  %v363_v42 = vpop.f32.mrb[3].mxu0  ;;  %v406_v44 = vpop.f32.mrb[3].mxu1 }
 0x102   : > { %v418_v46 = vadd.f32 %v410_v29, %v360_v32  ;;  %v420_v47 = vadd.f32 %v412_v31, %v403_v33  ;;  %v364_v48 = vadd.f32 %v363_v42, %v292_v21  ;;  %v407_v49 = vadd.f32 %v406_v44, %v292_v21  ;;  %459 = sbr.rel (!%p714_p5) target bundleno = 273 (0x111), region = 86 }
 0x103   : > { %v421_v50 = vadd.f32 %v413_v35, %v362_v40  ;;  %v423_v51 = vadd.f32 %v415_v37, %v405_v41 }
 0x104   : > { %v592_v52 = vpack.c.bf16 %v418_v46, %v417_v38  ;;  %v593_v53 = vpack.c.bf16 %v420_v47, %v419_v39  ;;  %v422_v54 = vadd.f32 %v414_v43, %v364_v48  ;;  %v424_v55 = vadd.f32 %v416_v45, %v407_v49 }
 0x106   : > { %449 = vst [vmem:[%s271_s30] sm:$0xff] %v592_v52  ;;  %450 = vst [vmem:[%s271_s30 + $0x8] sm:$0xff] %v593_v53  ;;  %v594_v56 = vpack.c.bf16 %v422_v54, %v421_v50  ;;  %v595_v57 = vpack.c.bf16 %v424_v55, %v423_v51 }
 0x108   : > { %451 = vst [vmem:[%s271_s30 + $0x10] sm:$0xff] %v594_v56  ;;  %452 = vst [vmem:[%s271_s30 + $0x18] sm:$0xff] %v595_v57 }
 0x10d   : > { %v475_v58 = vld [vmem:[%s271_s30] sm:$0xff]  ;;  %v477_v59 = vld [vmem:[%s271_s30 + $0x8] sm:$0xff] }
 0x10e   : > { %476 = vst [vmem:[%s462_s8] sm:$0xff] %v475_v58  ;;  %478 = vst [vmem:[%s462_s8 + $0x8] sm:$0xff] %v477_v59 }
 0x10f   : > { %v479_v60 = vld [vmem:[%s271_s30 + $0x10] sm:$0xff]  ;;  %v481_v61 = vld [vmem:[%s271_s30 + $0x18] sm:$0xff] }
 0x110   : > { %480 = vst [vmem:[%s462_s8 + $0x40] sm:$0xff] %v479_v60  ;;  %482 = vst [vmem:[%s462_s8 + $0x48] sm:$0xff] %v481_v61 }
 0x111 PF: > { %p11_p10 = scmp.ge.s32.totalorder %s697_s19, 6   ;;  %s773_s15 = smov %s648_s16 }
 0x112   : > { %s774_s16 = smov %s708_s22  ;;  %s775_s17 = smov %s697_s19 }
 0x113   :  { %13 = sbr.rel (!%p11_p10) target bundleno = 2 (0x2), region = 148 }

// kernel: _lambda_.19
= control target key start
LH: loop header
LB: loop body
LE: loop exit
PB: predicated region body
PF: predicated region fallthrough
CT: control target
= control target key end

     0   :  { %v899_v1 = vmov 0   ;;  %v900_v6 = vmov 1983009808   ;;  %v405_v8 = vlaneseq  ;;  %vm425_vm0 = vcmask 1040384   ;;  %s1071_s1 = inlined_call_operand.vmem [shape: bf16[48,512], index: 1, kind: input, shape index: {}]   ;;  %s1072_s8 = inlined_call_operand.<no memory space> [shape: f32[1,1], index: 8, kind: input, shape index: {}]   ;;  %s1073_s4 = inlined_call_operand.vmem [shape: bf16[32,48], index: 4, kind: input, shape index: {}]   ;;  %s1074_s0 = inlined_call_operand.vmem [shape: bf16[16,512], index: 0, kind: input, shape index: {}]   ;;  %s1075_s2 = inlined_call_operand.vmem [shape: bf16[3,512], index: 2, kind: input, shape index: {}]   ;;  %s1076_s3 = inlined_call_operand.vmem [shape: bf16[32,16], index: 3, kind: input, shape index: {}]   ;;  %s1077_s5 = inlined_call_operand.vmem [shape: bf16[32,3], index: 5, kind: input, shape index: {}]   ;;  %s1078_s6 = inlined_call_operand.vmem [shape: f32[32,1], index: 6, kind: input, shape index: {}]   ;;  %s1079_s7 = inlined_call_operand.vmem [shape: bf16[1,32], index: 7, kind: input, shape index: {}]   ;;  %s1080_s9 = inlined_call_operand.vmem [shape: f32[1,512], index: 9, kind: output, shape index: {}]  }
   0x1   :  { %v836_v0 = vld [vmem:[%s1071_s1 + $0x4] ss:$16 sps:$4 sm:$0xff]   ;;  %168 = vmatprep.mubr.bf16.mxu0 %v899_v1  ;;  %221 = vmatprep.mubr.bf16.mxu1 %v899_v1  ;;  %v838_v2 = vld [vmem:[%s1071_s1 + $0xc] ss:$16 sps:$4 sm:$0xff]   ;;  %v14_v3 = vstv %s1072_s8  ;;  %v840_v4 = vld [vmem:[%s1071_s1] ss:$16 sps:$4 sm:$0xff]   ;;  %v403_v7 = vunpack.c.l.s4 %v900_v6 }
   0x2   :  { %834 = vset.pattern.permute.xlu0 %v899_v1  ;;  %835 = vset.pattern.permute.xlu1 %v899_v1  ;;  %v841_v5 = vld [vmem:[%s1071_s1 + $0x8] ss:$16 sps:$4 sm:$0xff]   ;;  %15 = vst [vmem:[#allocation2] sm:$0x1] %v14_v3  ;;  %v842_v9 = vld [vmem:[%s1071_s1 + $0x24] ss:$16 sps:$4 sm:$0xff]  }
   0x3   :  { %136 = vmatprep.subr.bf16.mxu0 %v836_v0  ;;  %189 = vmatprep.subr.bf16.mxu1 %v838_v2  ;;  %v844_v10 = vld [vmem:[%s1071_s1 + $0x2c] ss:$16 sps:$4 sm:$0xff]   ;;  %v846_v11 = vld [vmem:[%s1071_s1 + $0x20] ss:$16 sps:$4 sm:$0xff]   ;;  %v847_v12 = vld [vmem:[%s1071_s1 + $0x28] ss:$16 sps:$4 sm:$0xff]   ;;  %v404_v14 = vunpack.c.0.s8 %v403_v7 }
   0x4   :  { %137 = vmatpush1.bf16.msra.mxu0 %v840_v4  ;;  %190 = vmatpush1.bf16.msra.mxu1 %v841_v5  ;;  %v848_v13 = vld [vmem:[%s1071_s1 + $0x44] ss:$16 sps:$4 sm:$0xff]   ;;  %v988_v15 = vshrl.u32 %v405_v8, 7  ;;  %v850_v16 = vld [vmem:[%s1071_s1 + $0x4c] ss:$16 sps:$4 sm:$0xff]   ;;  %vm129_vm1 = vcmask 392192  }
   0x5   :  { %138 = vmatprep.subr.bf16.mxu0 %v842_v9  ;;  %191 = vmatprep.subr.bf16.mxu1 %v844_v10  ;;  %v852_v17 = vld [vmem:[%s1071_s1 + $0x40] ss:$16 sps:$4 sm:$0xff]   ;;  %v853_v18 = vld [vmem:[%s1071_s1 + $0x48] ss:$16 sps:$4 sm:$0xff]   ;;  %v857_v20 = vld [vmem:[%s1074_s0 + $0x4] ss:$16 sps:$4 sm:$0xff]  }
   0x6   :  { %v854_v19 = vld [vmem:[%s1073_s4] sm:$0xff]   ;;  %v407_v21 = vsub.s32 %v404_v14, %v988_v15  ;;  %vm426_vm2 = vcmask 1041408   ;;  %v901_v22 = vmov 65535   ;;  %v860_v25 = vld [vmem:[%s1074_s0 + $0xc] ss:$16 sps:$4 sm:$0xff]   ;;  %v565_v36 = vld [vmem:[%s1078_s6 + $0x10] sm:$0xff] }
   0x7   :  { %v427_v23 = vsel %vm425_vm0, 4294967295, %v901_v22  ;;  %v855_v24 = vld [vmem:[%s1074_s0] ss:$16 sps:$4 sm:$0xff]   ;;  %v858_v26 = vld [vmem:[%s1074_s0 + $0x8] ss:$16 sps:$4 sm:$0xff]   ;;  %579 = vperm.xlu1 %835, %v565_v36   ;;  %vm272_vm3 = vcmask 130048  }
   0x8   :  { %139 = vmatpush1.bf16.msra.mxu0 %v846_v11  ;;  %192 = vmatpush1.bf16.msra.mxu1 %v847_v12  ;;  %v389_v27 = vld [vmem:[%s1075_s2] sm:$0xff]  ;;  %v428_v30 = vsel %vm426_vm2, %v427_v23, 0  ;;  %v861_v37 = vld [vmem:[%s1073_s4 + $0x8] sm:$0xff]   ;;  %v566_v40 = vld [vmem:[%s1078_s6 + $0x18] sm:$0xff]  ;;  %vm418_vm4 = vcmask 23552   ;;  %vm638_vm5 = vcmask 261120  }
   0x9   :  { %140 = vmatprep.subr.bf16.mxu0 %v848_v13  ;;  %193 = vmatprep.subr.bf16.mxu1 %v850_v16  ;;  %v408_v28 = vrot.slane %v389_v27, %v407_v21  ;;  %v401_v29 = vcombine.high %v389_v27, %v389_v27  ;;  %v563_v33 = vld [vmem:[%s1078_s6] sm:$0xff]  ;;  %v564_v38 = vld [vmem:[%s1078_s6 + $0x8] sm:$0xff]  ;;  %vm755_vm6 = vcmp.lt.s32.totalorder %v405_v8, 512 }
   0xa   :  { %569 = vperm.xlu0 %834, %v563_v33   ;;  %v628_v41 = vld [vmem:[#allocation2] sm:$0x1]  ;;  %v864_v45 = vld [vmem:[%s1076_s3 + $0x8] sm:$0xff]  }
   0xb   :  { %v416_v31 = vcombine.high %v408_v28, %v408_v28  ;;  %v415_v32 = vrot.slane %v401_v29, %v407_v21  ;;  %584 = vperm.xlu1 %835, %v566_v40   ;;  %v862_v42 = vld [vmem:[%s1076_s3] sm:$0xff]   ;;  %v430_v43 = vand.u32 %v428_v30, %v408_v28  ;;  %v866_v47 = vld [vmem:[%s1077_s5 + $0x8] sm:$0xff]  }
   0xc   :  { %141 = vmatpush1.bf16.msra.mxu0 %v852_v17  ;;  %194 = vmatpush1.bf16.msra.mxu1 %v853_v18  ;;  %v865_v46 = vld [vmem:[%s1077_s5] sm:$0xff]  }
   0xd   :  { %279 = vmatprep.subr.bf16.mxu0 %v857_v20  ;;  %332 = vmatprep.subr.bf16.mxu1 %v860_v25  ;;  %v433_v34 = vand.u32 %v428_v30, %v416_v31  ;;  %v417_v35 = vcombine.high %v415_v32, %v415_v32  ;;  %v436_v44 = vand.u32 %v428_v30, %v415_v32 }
   0xe   :  { %574 = vperm.xlu0 %834, %v564_v38  }
   0xf   :  { %776 = vmatmul.mubr.msk.bf16.vlgmr.msra.gmra.mrb[0].mxu0 %vm129_vm1, %v854_v19  ;;  %778 = vmatmul.mubr.msk.bf16.vlgmr.msra.gmra.mrb[0].mxu1 %vm129_vm1, %v854_v19  ;;  %v439_v39 = vand.u32 %v428_v30, %v417_v35 }
  0x10   :  { %280 = vmatpush1.bf16.msra.mxu0 %v855_v24  ;;  %333 = vmatpush1.bf16.msra.mxu1 %v858_v26 }
  0x11   :  { %178 = vmatprep.mubr.bf16.mxu0 %v899_v1  ;;  %231 = vmatprep.mubr.bf16.mxu1 %v899_v1 }
  0x12   :  { %441 = vmatprep.subr.bf16.mxu0 %v433_v34  ;;  %494 = vmatprep.subr.bf16.mxu1 %v439_v39 }
  0x13   :  { %631 = vperm.xlu0 %834, %v628_v41  }
  0x17   :  { %777 = vmatmul.mubr.msk.bf16.gmra.mrb[4].mxu0 %vm129_vm1, %v861_v37  ;;  %779 = vmatmul.mubr.msk.bf16.gmra.mrb[4].mxu1 %vm129_vm1, %v861_v37 }
  0x18   :  { %311 = vmatprep.mubr.bf16.mxu0 %v899_v1  ;;  %364 = vmatprep.mubr.bf16.mxu1 %v899_v1 }
  0x1f   :  { %786 = vmatmul.mubr.msk.bf16.vlgmr.msra.gmra.mrb[0].mxu0 %vm272_vm3, %v862_v42  ;;  %788 = vmatmul.mubr.msk.bf16.vlgmr.msra.gmra.mrb[0].mxu1 %vm272_vm3, %v862_v42 }
  0x20   :  { %442 = vmatpush1.bf16.msra.mxu0 %v430_v43  ;;  %495 = vmatpush1.bf16.msra.mxu1 %v436_v44 }
  0x21   :  { %321 = vmatprep.mubr.bf16.mxu0 %v899_v1  ;;  %374 = vmatprep.mubr.bf16.mxu1 %v899_v1 }
  0x27   :  { %787 = vmatmul.mubr.msk.bf16.gmra.mrb[4].mxu0 %vm272_vm3, %v864_v45  ;;  %789 = vmatmul.mubr.msk.bf16.gmra.mrb[4].mxu1 %vm272_vm3, %v864_v45 }
  0x28   :  { %473 = vmatprep.mubr.bf16.mxu0 %v899_v1  ;;  %526 = vmatprep.mubr.bf16.mxu1 %v899_v1 }
  0x2f   :  { %792 = vmatmul.mubr.msk.bf16.vlgmr.msra.gmra.mrb[0].mxu0 %vm418_vm4, %v865_v46  ;;  %794 = vmatmul.mubr.msk.bf16.vlgmr.msra.gmra.mrb[0].mxu1 %vm418_vm4, %v865_v46  ;;  %v619_v46 = vld [vmem:[%s1079_s7] sm:$0x1] }
  0x30   :  { %483 = vmatprep.mubr.bf16.mxu0 %v899_v1  ;;  %536 = vmatprep.mubr.bf16.mxu1 %v899_v1 }
  0x37   :  { %793 = vmatmul.mubr.msk.bf16.gmra.mrb[4].mxu0 %vm418_vm4, %v866_v47  ;;  %795 = vmatmul.mubr.msk.bf16.gmra.mrb[4].mxu1 %vm418_vm4, %v866_v47  ;;  %v902_v47 = vmov 1966171168  }
  0x38   :  { %674 = vmatprep.mubr.bf16.mxu0 %v899_v1  ;;  %715 = vmatprep.mubr.bf16.mxu1 %v899_v1 }
  0x86   :  { %v580_v50 = vpop.permute.xlu1 %579 }
  0x89   :  { %v570_v48 = vpop.permute.xlu0 %569 }
  0x8a   :  { %v585_v3 = vpop.permute.xlu1 %584 }
  0x8d   :  { %v575_v49 = vpop.permute.xlu0 %574 }
 0x102   :  { %v475_v51 = vpop.f32.mrb[0].mxu0  ;;  %v528_v52 = vpop.f32.mrb[0].mxu1 }
 0x103   :  { %v587_v53 = vadd.f32 %v570_v48, %v475_v51  ;;  %v589_v54 = vadd.f32 %v570_v48, %v528_v52  ;;  %v477_v55 = vpop.f32.mrb[1].mxu0  ;;  %v530_v56 = vpop.f32.mrb[1].mxu1 }
 0x104   :  { %v588_v57 = vadd.f32 %v570_v48, %v477_v55  ;;  %v590_v58 = vadd.f32 %v570_v48, %v530_v56  ;;  %v479_v59 = vpop.f32.mrb[2].mxu0  ;;  %v532_v60 = vpop.f32.mrb[2].mxu1  ;;  %v731_v48 = vunpack.c.l.s4 %v902_v47 }
 0x105   :  { %867 = vtanh.f32 %v587_v53  ;;  %v591_v61 = vadd.f32 %v575_v49, %v479_v59  ;;  %v481_v62 = vpop.f32.mrb[3].mxu0  ;;  %v534_v63 = vpop.f32.mrb[3].mxu1  ;;  %v593_v0 = vadd.f32 %v575_v49, %v532_v60 }
 0x106   :  { %869 = vtanh.f32 %v589_v54  ;;  %v592_v1 = vadd.f32 %v575_v49, %v481_v62  ;;  %v594_v2 = vadd.f32 %v575_v49, %v534_v63  ;;  %v636_v49 = vsub.s32 0, %v988_v15 }
 0x107   :  { %871 = vtanh.f32 %v588_v57  ;;  %v732_v51 = vunpack.c.0.s8 %v731_v48 }
 0x108   :  { %873 = vtanh.f32 %v590_v58 }
 0x109   :  { %875 = vtanh.f32 %v591_v61  ;;  %v735_v59 = vsub.s32 %v732_v51, %v988_v15 }
 0x10a   :  { %877 = vtanh.f32 %v593_v0  ;;  %v485_v4 = vpop.f32.mrb[4].mxu0  ;;  %v538_v5 = vpop.f32.mrb[4].mxu1 }
 0x10b   :  { %879 = vtanh.f32 %v592_v1  ;;  %v595_v6 = vadd.f32 %v580_v50, %v485_v4  ;;  %v597_v7 = vadd.f32 %v580_v50, %v538_v5  ;;  %v487_v9 = vpop.f32.mrb[5].mxu0  ;;  %v540_v10 = vpop.f32.mrb[5].mxu1 }
 0x10c   :  { %881 = vtanh.f32 %v594_v2  ;;  %v596_v11 = vadd.f32 %v580_v50, %v487_v9  ;;  %v598_v12 = vadd.f32 %v580_v50, %v540_v10  ;;  %v489_v13 = vpop.f32.mrb[6].mxu0  ;;  %v542_v14 = vpop.f32.mrb[6].mxu1 }
 0x10d   :  { %883 = vtanh.f32 %v595_v6  ;;  %v599_v16 = vadd.f32 %v585_v3, %v489_v13  ;;  %v491_v17 = vpop.f32.mrb[7].mxu0  ;;  %v544_v18 = vpop.f32.mrb[7].mxu1  ;;  %v601_v19 = vadd.f32 %v585_v3, %v542_v14 }
 0x10e   :  { %885 = vtanh.f32 %v597_v7  ;;  %v600_v21 = vadd.f32 %v585_v3, %v491_v17  ;;  %v602_v23 = vadd.f32 %v585_v3, %v544_v18  ;;  %v632_v50 = vpop.permute.xlu0 %631 }
 0x10f   :  { %v868_v20 = vpop.eup %867  ;;  %887 = vtanh.f32 %v596_v11  ;;  %v637_v52 = vrot.slane %v632_v50, %v636_v49 }
 0x110   :  { %v870_v22 = vpop.eup %869  ;;  %889 = vtanh.f32 %v598_v12 }
 0x111   :  { %v872_v24 = vpop.eup %871  ;;  %891 = vtanh.f32 %v599_v16 }
 0x112   :  { %v874_v25 = vpop.eup %873  ;;  %893 = vtanh.f32 %v601_v19 }
 0x113   :  { %v876_v26 = vpop.eup %875  ;;  %895 = vtanh.f32 %v600_v21 }
 0x114   :  { %v878_v27 = vpop.eup %877  ;;  %897 = vtanh.f32 %v602_v23  ;;  %v620_v28 = vpack.c.bf16 %v876_v26, %v868_v20 }
 0x115   :  { %v880_v29 = vpop.eup %879  ;;  %v622_v30 = vpack.c.bf16 %v878_v27, %v870_v22 }
 0x116   :  { %v882_v31 = vpop.eup %881  ;;  %v621_v32 = vpack.c.bf16 %v880_v29, %v872_v24 }
 0x117   :  { %v884_v33 = vpop.eup %883  ;;  %v623_v34 = vpack.c.bf16 %v882_v31, %v874_v25 }
 0x118   :  { %v886_v35 = vpop.eup %885  ;;  %642 = vmatprep.subr.bf16.mxu0 %v621_v32 }
 0x119   :  { %v888_v36 = vpop.eup %887  ;;  %683 = vmatprep.subr.bf16.mxu1 %v623_v34  ;;  %643 = vmatpush1.bf16.msra.mxu0 %v620_v28 }
 0x11a   :  { %v890_v37 = vpop.eup %889  ;;  %684 = vmatpush1.bf16.msra.mxu1 %v622_v30 }
 0x11b   :  { %v892_v38 = vpop.eup %891 }
 0x11c   :  { %v894_v39 = vpop.eup %893  ;;  %v624_v40 = vpack.c.bf16 %v892_v38, %v884_v33 }
 0x11d   :  { %v896_v41 = vpop.eup %895  ;;  %v626_v42 = vpack.c.bf16 %v894_v39, %v886_v35 }
 0x11e   :  { %v898_v43 = vpop.eup %897  ;;  %v625_v44 = vpack.c.bf16 %v896_v41, %v888_v36 }
 0x11f   :  { %v627_v45 = vpack.c.bf16 %v898_v43, %v890_v37 }
 0x120   :  { %644 = vmatprep.subr.bf16.mxu0 %v625_v44 }
 0x121   :  { %685 = vmatprep.subr.bf16.mxu1 %v627_v45  ;;  %645 = vmatpush1.bf16.msra.mxu0 %v624_v40 }
 0x122   :  { %686 = vmatpush1.bf16.msra.mxu1 %v626_v42 }
 0x124   :  { %796 = vmatmul.mubr.msk.bf16.vlgmr.msra.gmra.mrb[8].mxu0 %vm638_vm5, %v619_v46 }
 0x125   :  { %797 = vmatmul.mubr.msk.bf16.vlgmr.msra.gmra.mrb[8].mxu1 %vm638_vm5, %v619_v46 }
 0x1f7   :  { %v676_v53 = vpop.f32.mrb[8].mxu0 }
 0x1f8   :  { %v677_v54 = vadd.f32 %v676_v53, %v637_v52  ;;  %v717_v55 = vpop.f32.mrb[8].mxu1  ;;  %v678_v56 = vpop.f32.mrb[9].mxu0 }
 0x1f9   :  { %v718_v57 = vadd.f32 %v717_v55, %v637_v52  ;;  %v679_v58 = vadd.f32 %v678_v56, %v637_v52  ;;  %v719_v60 = vpop.f32.mrb[9].mxu1  ;;  %v680_v61 = vpop.f32.mrb[10].mxu0 }
 0x1fa   :  { %v720_v62 = vadd.f32 %v719_v60, %v637_v52  ;;  %v721_v63 = vpop.f32.mrb[10].mxu1  ;;  %v681_v0 = vpop.f32.mrb[11].mxu0 }
 0x1fb   :  { %v728_v1 = vcombine.low %v677_v54, %v679_v58  ;;  %v722_v2 = vpop.f32.mrb[11].mxu1 }
 0x1fc   :  { %v729_v3 = vcombine.low %v718_v57, %v720_v62 }
 0x1fd   :  { %v736_v4 = vrot.slane %v728_v1, %v735_v59 }
 0x1fe   :  { %v743_v5 = vrot.slane %v729_v3, %v735_v59 }
 0x200   :  { %v744_v6 = vcombine.low %v736_v4, %v743_v5 }
 0x202   :  { %v751_v7 = vrot.slane %v744_v6, %v735_v59 }
 0x204   :  { %757 = vst.msk [vmem:[%s1080_s9] sm:$0xf] %vm755_vm6, %v751_v7 }

</bundles_post_ra>
